<compile_context>
chip_gen: v7x
topology: tpu7x:2x2x1
jax: 0.10.0
libtpu: 0.0.40
codegen_flags: <defaults>
</compile_context>

<pallas_src>
import functools
import math

import jax
import jax.numpy as jnp
from jax.experimental import pallas as pl
from jax.experimental.pallas import tpu as pltpu

# ---------------------------------------------------------------------------
# Model configuration (small, deterministic demo instantiation of Lightnet)
# ---------------------------------------------------------------------------
BATCH = 2
CIN = 4           # input channels  -> NCHW input (2, 4, 16, 16)
CMID = 32         # channels after block 1
COUT = 64         # channels after block 2
HEIGHT = 16
WIDTH = 16
BN_EPS = 1e-5
LEAKY_SLOPE = 0.1

LANE = 128        # TPU lane width
K1P = LANE        # conv1 im2col depth: 9*CIN = 36, lane-padded to 128
CMID_P = LANE
COUT_P = LANE
N2P = 3 * COUT_P  # conv2: the 3 dx taps packed along the matmul N axis


def _round_up(x, m):
    return (x + m - 1) // m * m


# ---------------------------------------------------------------------------
# Pallas kernel: fused (conv3x3 + folded-BN + LeakyReLU) x 2
# ---------------------------------------------------------------------------
def _lightnet_kernel(x_ref, w1_ref, b1_ref, w2_ref, b2_ref, o_ref, mid_ref,
                     *, nb, h, w, w2pad):
    """x_ref  : (nb, h*w, K1P)            bf16  conv1 im2col (host-packed, lane-dense)
       w1_ref : (K1P, CMID_P)             bf16  BN-folded conv1 weight
       b1_ref : (1, CMID_P)               f32
       w2_ref : (3, CMID_P, 3*COUT_P)     bf16  BN-folded conv2, dx taps packed on N
       b2_ref : (1, COUT_P)               f32
       o_ref  : (nb, h, w, COUT_P)        bf16
       mid_ref: (nb, h+2, w2pad, CMID_P)  bf16  haloed intermediate (VMEM only)
    """
    # ---- block 1: ONE matmul (im2col was hoisted to the wrapper) -----------
    x = x_ref[...].reshape(nb * h * w, K1P)
    h1 = jnp.dot(x, w1_ref[...], preferred_element_type=jnp.float32)
    h1 = h1 + b1_ref[...]
    h1 = jnp.where(h1 > 0, h1, LEAKY_SLOPE * h1)            # LeakyReLU(0.1), f32
    h1 = h1.astype(mid_ref.dtype).reshape(nb, h, w, CMID_P)

    # ---- stage intermediate into VMEM; zero ONLY the halo frame ------------
    # Per step (not gated on program_id -> safe under megacore, where each core
    # has its own scratch).  Columns >= w+2 are never read by the shifted
    # accumulation below, so they can stay garbage and never need zeroing.
    zrow = jnp.zeros((nb, 1, w2pad, CMID_P), mid_ref.dtype)
    zcol = jnp.zeros((nb, h, 1, CMID_P), mid_ref.dtype)
    mid_ref[:, 0:1, :, :] = zrow
    mid_ref[:, h + 1:h + 2, :, :] = zrow
    mid_ref[:, 1:h + 1, 0:1, :] = zcol
    mid_ref[:, 1:h + 1, w + 1:w + 2, :] = zcol
    mid_ref[:, 1:h + 1, 1:w + 1, :] = h1

    # ---- block 2: per-dy row-strip matmul; dx shift folded into the add ----
    acc = jnp.zeros((nb, h, w, COUT_P), jnp.float32)
    for dy in range(3):
        # Leading-dim slice + layout-preserving reshape (w2pad is a multiple of
        # the bf16 sublane packing of 16) -> no per-tap window copies.
        strip = mid_ref[:, dy:dy + h, :, :].reshape(nb * h * w2pad, CMID_P)
        # One MXU push covers all 3 dx taps (N = 384 fills the 256-wide MXU on
        # v6e/v7x); the result feeds a pure add chain (no interleaved relayout).
        p = jnp.dot(strip, w2_ref[dy], preferred_element_type=jnp.float32)
        p = p.reshape(nb, h, w2pad, N2P)
        for dx in range(3):
            acc = acc + p[:, :, dx:dx + w, dx * COUT_P:(dx + 1) * COUT_P]

    y = acc + b2_ref[...]
    y = jnp.where(y > 0, y, LEAKY_SLOPE * y)
    o_ref[...] = y.astype(o_ref.dtype)                       # bf16 writeback


# ---------------------------------------------------------------------------
# Wrapper (Lightnet.forward, eval mode: just runs the layer stack)
# ---------------------------------------------------------------------------
def _vmem_budget_bytes(nb, h, w, w2pad):
    bf2, f4 = 2, 4
    x_b = nb * h * w * K1P * bf2
    w1_b = K1P * CMID_P * bf2
    b1_b = CMID_P * f4
    w2_b = 3 * CMID_P * N2P * bf2
    b2_b = COUT_P * f4
    out_b = nb * h * w * COUT_P * bf2
    mid_b = nb * (h + 2) * w2pad * CMID_P * bf2
    acc_b = nb * h * w * COUT_P * f4           # f32 accumulator
    p_b = nb * h * w2pad * N2P * f4            # widest per-dy matmul result
    double_buffered = 2 * (x_b + w1_b + b1_b + w2_b + b2_b + out_b)
    return int(2 * (double_buffered + mid_b + acc_b + p_b)) + (8 << 20)


def lightnet_forward(x_nchw, params, *, images_per_step=1):
    """Fused conv-bn-leaky x2 forward (Lightnet eval).  NCHW f32 in, NCHW f32 out.

    images_per_step: images folded into one grid step.  Keep 1 on v7x so both
    TensorCores get a step; set it to the batch on single-TC chips (v5e/v6e) to
    amortise the ~0.35us/step grid overhead.
    """
    w1, b1, w2, b2 = params["w1"], params["b1"], params["w2"], params["b2"]
    n, c, h, w = x_nchw.shape
    nb = max(1, min(images_per_step, n))
    steps = pl.cdiv(n, nb)
    n_pad = steps * nb
    w2pad = _round_up(w + 2, 16)   # bf16 sublane packing -> free strip reshape

    # NCHW -> NHWC + conv1 im2col in one host-side XLA pass: the 3x3 neighbourhood
    # of the (few) input channels is packed onto the lane axis (9*CIN = 36 <= 128),
    # lane-padded to 128, bf16 -> lane-dense loads, single MXU matmul for block 1.
    x = jnp.transpose(x_nchw, (0, 2, 3, 1))
    if n_pad != n:
        x = jnp.pad(x, ((0, n_pad - n), (0, 0), (0, 0), (0, 0)))
    xp = jnp.pad(x, ((0, 0), (1, 1), (1, 1), (0, 0)))
    cols = jnp.concatenate(
        [xp[:, dy:dy + h, dx:dx + w, :] for dy in range(3) for dx in range(3)],
        axis=-1)
    cols = cols.reshape(n_pad, h * w, 9 * c)
    cols = jnp.pad(cols, ((0, 0), (0, 0), (0, K1P - 9 * c))).astype(jnp.bfloat16)

    kernel = functools.partial(_lightnet_kernel, nb=nb, h=h, w=w, w2pad=w2pad)

    # TODO(synk): for Darknet-scale images (e.g. 416x416) add a row-strip grid
    # axis with 1-row halo overlap (tile_h ~64-128) so blocks keep fitting v7x's
    # 64 MiB VMEM; the per-image blocks below are sized for demo shapes.
    out = pl.pallas_call(
        kernel,
        out_shape=jax.ShapeDtypeStruct((n_pad, h, w, COUT_P), jnp.bfloat16),
        grid_spec=pltpu.PrefetchScalarGridSpec(
            num_scalar_prefetch=0,
            grid=(steps,),
            in_specs=[
                pl.BlockSpec((nb, h * w, K1P), lambda i: (i, 0, 0)),
                # weights/biases: constant index_map -> single DMA, VMEM resident.
                # (pl.Buffered(1) would drop their double buffer; skipped since
                # they total < 700 KiB at these shapes.)
                pl.BlockSpec((K1P, CMID_P), lambda i: (0, 0)),
                pl.BlockSpec((1, CMID_P), lambda i: (0, 0)),
                pl.BlockSpec((3, CMID_P, N2P), lambda i: (0, 0, 0)),
                pl.BlockSpec((1, COUT_P), lambda i: (0, 0)),
            ],
            out_specs=pl.BlockSpec((nb, h, w, COUT_P), lambda i: (i, 0, 0, 0)),
            scratch_shapes=[pltpu.VMEM((nb, h + 2, w2pad, CMID_P), jnp.bfloat16)],
        ),
        compiler_params=pltpu.CompilerParams(
            dimension_semantics=("parallel",),        # batch steps -> v7x megacore
            vmem_limit_bytes=_vmem_budget_bytes(nb, h, w, w2pad),
        ),
    )(cols, w1, b1, w2, b2)

    out = out[:n, :, :, :COUT].astype(jnp.float32)   # drop channel/batch padding
    return jnp.transpose(out, (0, 3, 1, 2))          # back to NCHW


# ---------------------------------------------------------------------------
# Host-side parameter construction + eval-mode BatchNorm folding
# ---------------------------------------------------------------------------
def _fold_bn(w_oihw, gamma, beta, mean, var, eps=BN_EPS):
    scale = gamma / jnp.sqrt(var + eps)
    return w_oihw * scale[:, None, None, None], beta - mean * scale


def _pack_conv1(w_oihw, bias):
    """OIHW -> (K1P, CMID_P) with rows ordered (dy, dx, cin) to match the host im2col."""
    co, ci, _, _ = w_oihw.shape
    w = jnp.transpose(w_oihw, (2, 3, 1, 0)).reshape(9 * ci, co)
    w = jnp.pad(w, ((0, K1P - 9 * ci), (0, CMID_P - co)))
    b = jnp.pad(bias, (0, CMID_P - co))[None, :]
    return w.astype(jnp.bfloat16), b.astype(jnp.float32)


def _pack_conv2(w_oihw, bias):
    """OIHW -> (3, CMID_P, 3*COUT_P): per dy, the 3 dx taps concatenated along N."""
    co, ci, _, _ = w_oihw.shape
    w = jnp.transpose(w_oihw, (2, 3, 1, 0))                      # (3,3,ci,co) HWIO
    w = jnp.pad(w, ((0, 0), (0, 0), (0, CMID_P - ci), (0, COUT_P - co)))
    w = jnp.transpose(w, (0, 2, 1, 3)).reshape(3, CMID_P, N2P)   # dx packed along N
    b = jnp.pad(bias, (0, COUT_P - co))[None, :]
    return w.astype(jnp.bfloat16), b.astype(jnp.float32)


def init_params(key):
    ks = jax.random.split(key, 10)
    w1 = jax.random.normal(ks[0], (CMID, CIN, 3, 3), jnp.float32) * (2.0 / (9 * CIN)) ** 0.5
    g1 = 1.0 + 0.1 * jax.random.normal(ks[1], (CMID,), jnp.float32)
    be1 = 0.1 * jax.random.normal(ks[2], (CMID,), jnp.float32)
    mu1 = 0.1 * jax.random.normal(ks[3], (CMID,), jnp.float32)
    var1 = 0.5 + jax.random.uniform(ks[4], (CMID,), dtype=jnp.float32)

    w2 = jax.random.normal(ks[5], (COUT, CMID, 3, 3), jnp.float32) * (2.0 / (9 * CMID)) ** 0.5
    g2 = 1.0 + 0.1 * jax.random.normal(ks[6], (COUT,), jnp.float32)
    be2 = 0.1 * jax.random.normal(ks[7], (COUT,), jnp.float32)
    mu2 = 0.1 * jax.random.normal(ks[8], (COUT,), jnp.float32)
    var2 = 0.5 + jax.random.uniform(ks[9], (COUT,), dtype=jnp.float32)

    w1f, b1f = _fold_bn(w1, g1, be1, mu1, var1)
    w2f, b2f = _fold_bn(w2, g2, be2, mu2, var2)

    w1k, b1k = _pack_conv1(w1f, b1f)
    w2k, b2k = _pack_conv2(w2f, b2f)

    kernel_params = {"w1": w1k, "b1": b1k, "w2": w2k, "b2": b2k}
    # Unpadded folded HWIO f32 weights for the pure-JAX reference.
    ref_params = {"w1": jnp.transpose(w1f, (2, 3, 1, 0)), "b1": b1f,
                  "w2": jnp.transpose(w2f, (2, 3, 1, 0)), "b2": b2f}
    return kernel_params, ref_params


# ---------------------------------------------------------------------------
# Pure-JAX reference (same folded weights, same bf16 operand rounding)
# ---------------------------------------------------------------------------
def _conv3x3_block_ref(x_nhwc, w_hwio, bias):
    n, h, w, _ = x_nhwc.shape
    co = w_hwio.shape[-1]
    xp = jnp.pad(x_nhwc, ((0, 0), (1, 1), (1, 1), (0, 0))).astype(jnp.bfloat16)
    wb = w_hwio.astype(jnp.bfloat16)
    acc = jnp.zeros((n, h, w, co), jnp.float32)
    for dy in range(3):
        for dx in range(3):
            win = xp[:, dy:dy + h, dx:dx + w, :]
            acc = acc + jnp.einsum("nhwi,io->nhwo", win, wb[dy, dx],
                                   preferred_element_type=jnp.float32)
    y = acc + bias
    return jnp.where(y > 0, y, LEAKY_SLOPE * y)


def lightnet_forward_ref(x_nchw, ref_params):
    x = jnp.transpose(x_nchw, (0, 2, 3, 1)).astype(jnp.float32)
    h1 = _conv3x3_block_ref(x, ref_params["w1"], ref_params["b1"])
    y = _conv3x3_block_ref(h1, ref_params["w2"], ref_params["b2"])
    return jnp.transpose(y, (0, 3, 1, 2))


# ---------------------------------------------------------------------------
if __name__ == "__main__":
    key = jax.random.PRNGKey(0)
    k_x, k_p = jax.random.split(key)
    x = jax.random.normal(k_x, (BATCH, CIN, HEIGHT, WIDTH), jnp.float32)
    kernel_params, ref_params = init_params(k_p)

    y_ref = jax.block_until_ready(lightnet_forward_ref(x, ref_params))

    # v7x-style launch: one image per grid step (both TensorCores busy).
    y = jax.block_until_ready(lightnet_forward(x, kernel_params, images_per_step=1))
    assert y.shape == (BATCH, COUT, HEIGHT, WIDTH), y.shape
    if not bool(jnp.allclose(y, y_ref, atol=3e-2, rtol=3e-2)):
        max_err = float(jnp.max(jnp.abs(y - y_ref)))
        raise AssertionError(f"Pallas output mismatch vs reference (max abs err {max_err:.4g})")

    # Single-TC (v5e/v6e) launch: whole batch folded into one grid step.
    y2 = jax.block_until_ready(lightnet_forward(x, kernel_params, images_per_step=BATCH))
    if not bool(jnp.allclose(y2, y_ref, atol=3e-2, rtol=3e-2)):
        max_err = float(jnp.max(jnp.abs(y2 - y_ref)))
        raise AssertionError(f"Batch-folded output mismatch vs reference (max abs err {max_err:.4g})")

    print("KERNEL_OK")
</pallas_src>

<mosaic_0001>
module attributes {stable_mosaic.version = 11 : i64} {
  func.func @_lightnet_kernel(%arg0: i32, %arg1: memref<1x256x128xbf16, #tpu.memory_space<vmem>>, %arg2: memref<128x128xbf16, #tpu.memory_space<vmem>>, %arg3: memref<1x128xf32, #tpu.memory_space<vmem>>, %arg4: memref<3x128x384xbf16, #tpu.memory_space<vmem>>, %arg5: memref<1x128xf32, #tpu.memory_space<vmem>>, %arg6: memref<1x16x16x128xbf16, #tpu.memory_space<vmem>>, %arg7: memref<1x18x32x128xbf16, #tpu.memory_space<vmem>>) attributes {dimension_semantics = [#tpu.dimension_semantics<parallel>], iteration_bounds = array<i64: 2>, scalar_prefetch = 0 : i64, scratch_operands = 1 : i64, tpu.core_type = #tpu.core_type<tc>, window_params = [{transform_indices = @transform_0, window_bounds = array<i64: 1, 256, 128>}, {pipeline_mode = #tpu.pipeline_mode<synchronous>, transform_indices = @transform_1, window_bounds = array<i64: 128, 128>}, {pipeline_mode = #tpu.pipeline_mode<synchronous>, transform_indices = @transform_2, window_bounds = array<i64: 1, 128>}, {pipeline_mode = #tpu.pipeline_mode<synchronous>, transform_indices = @transform_3, window_bounds = array<i64: 3, 128, 384>}, {pipeline_mode = #tpu.pipeline_mode<synchronous>, transform_indices = @transform_4, window_bounds = array<i64: 1, 128>}, {transform_indices = @transform_5, window_bounds = array<i64: 1, 16, 16, 128>}]} {
    %c0 = arith.constant 0 : index
    %c0_0 = arith.constant 0 : index
    %c0_1 = arith.constant 0 : index
    %0 = vector.load %arg1[%c0, %c0_0, %c0_1] : memref<1x256x128xbf16, #tpu.memory_space<vmem>>, vector<1x256x128xbf16>
    %1 = vector.shape_cast %0 : vector<1x256x128xbf16> to vector<256x128xbf16>
    %c0_2 = arith.constant 0 : index
    %c0_3 = arith.constant 0 : index
    %2 = vector.load %arg2[%c0_2, %c0_3] : memref<128x128xbf16, #tpu.memory_space<vmem>>, vector<128x128xbf16>
    %cst = arith.constant dense<0.000000e+00> : vector<256x128xf32>
    %3 = tpu.matmul %1, %2, %cst {dimension_numbers = #tpu.dot_dimension_numbers<[1], [0], [0], [1], [0, 0, 1, 1], [], []>} : vector<256x128xbf16>, vector<128x128xbf16>, vector<256x128xf32> -> vector<256x128xf32>
    %c0_4 = arith.constant 0 : index
    %c0_5 = arith.constant 0 : index
    %4 = vector.load %arg3[%c0_4, %c0_5] : memref<1x128xf32, #tpu.memory_space<vmem>>, vector<1x128xf32>
    %5 = vector.broadcast %4 : vector<1x128xf32> to vector<256x128xf32>
    %6 = arith.addf %3, %5 : vector<256x128xf32>
    %cst_6 = arith.constant 0.000000e+00 : f32
    %7 = vector.broadcast %cst_6 : f32 to vector<256x128xf32>
    %8 = arith.cmpf ogt, %6, %7 : vector<256x128xf32>
    %cst_7 = arith.constant 1.000000e-01 : f32
    %9 = vector.broadcast %cst_7 : f32 to vector<256x128xf32>
    %10 = arith.mulf %9, %6 : vector<256x128xf32>
    %11 = arith.select %8, %6, %10 : vector<256x128xi1>, vector<256x128xf32>
    %12 = arith.truncf %11 : vector<256x128xf32> to vector<256x128xbf16>
    %13 = vector.shape_cast %12 : vector<256x128xbf16> to vector<1x16x16x128xbf16>
    %cst_8 = arith.constant 0.000000e+00 : bf16
    %14 = vector.broadcast %cst_8 : bf16 to vector<1x1x32x128xbf16>
    %cst_9 = arith.constant 0.000000e+00 : bf16
    %15 = vector.broadcast %cst_9 : bf16 to vector<1x16x1x128xbf16>
    %c0_10 = arith.constant 0 : index
    %c0_11 = arith.constant 0 : index
    %c0_12 = arith.constant 0 : index
    %c0_13 = arith.constant 0 : index
    %16 = vector.load %arg7[%c0_10, %c0_11, %c0_12, %c0_13] : memref<1x18x32x128xbf16, #tpu.memory_space<vmem>>, vector<1x1x32x128xbf16>
    tpu.vector_store %arg7[%c0_10, %c0_11, %c0_12, %c0_13], %14 {strides = array<i32>} : memref<1x18x32x128xbf16, #tpu.memory_space<vmem>>, vector<1x1x32x128xbf16>,
    %c0_14 = arith.constant 0 : index
    %c17 = arith.constant 17 : index
    %c0_15 = arith.constant 0 : index
    %c0_16 = arith.constant 0 : index
    %17 = vector.load %arg7[%c0_14, %c17, %c0_15, %c0_16] : memref<1x18x32x128xbf16, #tpu.memory_space<vmem>>, vector<1x1x32x128xbf16>
    tpu.vector_store %arg7[%c0_14, %c17, %c0_15, %c0_16], %14 {strides = array<i32>} : memref<1x18x32x128xbf16, #tpu.memory_space<vmem>>, vector<1x1x32x128xbf16>,
    %c0_17 = arith.constant 0 : index
    %c1 = arith.constant 1 : index
    %c0_18 = arith.constant 0 : index
    %c0_19 = arith.constant 0 : index
    %18 = vector.load %arg7[%c0_17, %c1, %c0_18, %c0_19] : memref<1x18x32x128xbf16, #tpu.memory_space<vmem>>, vector<1x16x1x128xbf16>
    tpu.vector_store %arg7[%c0_17, %c1, %c0_18, %c0_19], %15 {strides = array<i32>} : memref<1x18x32x128xbf16, #tpu.memory_space<vmem>>, vector<1x16x1x128xbf16>,
    %c0_20 = arith.constant 0 : index
    %c1_21 = arith.constant 1 : index
    %c17_22 = arith.constant 17 : index
    %c0_23 = arith.constant 0 : index
    %19 = vector.load %arg7[%c0_20, %c1_21, %c17_22, %c0_23] : memref<1x18x32x128xbf16, #tpu.memory_space<vmem>>, vector<1x16x1x128xbf16>
    tpu.vector_store %arg7[%c0_20, %c1_21, %c17_22, %c0_23], %15 {strides = array<i32>} : memref<1x18x32x128xbf16, #tpu.memory_space<vmem>>, vector<1x16x1x128xbf16>,
    %c0_24 = arith.constant 0 : index
    %c1_25 = arith.constant 1 : index
    %c1_26 = arith.constant 1 : index
    %c0_27 = arith.constant 0 : index
    %20 = vector.load %arg7[%c0_24, %c1_25, %c1_26, %c0_27] : memref<1x18x32x128xbf16, #tpu.memory_space<vmem>>, vector<1x16x16x128xbf16>
    tpu.vector_store %arg7[%c0_24, %c1_25, %c1_26, %c0_27], %13 {strides = array<i32>} : memref<1x18x32x128xbf16, #tpu.memory_space<vmem>>, vector<1x16x16x128xbf16>,
    %cst_28 = arith.constant 0.000000e+00 : f32
    %21 = vector.broadcast %cst_28 : f32 to vector<1x16x16x128xf32>
    %c0_29 = arith.constant 0 : index
    %c0_30 = arith.constant 0 : index
    %c0_31 = arith.constant 0 : index
    %c0_32 = arith.constant 0 : index
    %22 = vector.load %arg7[%c0_29, %c0_30, %c0_31, %c0_32] : memref<1x18x32x128xbf16, #tpu.memory_space<vmem>>, vector<1x16x32x128xbf16>
    %23 = vector.shape_cast %22 : vector<1x16x32x128xbf16> to vector<512x128xbf16>
    %c0_33 = arith.constant 0 : index
    %c0_34 = arith.constant 0 : index
    %c0_35 = arith.constant 0 : index
    %24 = vector.load %arg4[%c0_33, %c0_34, %c0_35] : memref<3x128x384xbf16, #tpu.memory_space<vmem>>, vector<1x128x384xbf16>
    %25 = vector.shape_cast %24 : vector<1x128x384xbf16> to vector<128x384xbf16>
    %cst_36 = arith.constant dense<0.000000e+00> : vector<512x384xf32>
    %26 = tpu.matmul %23, %25, %cst_36 {dimension_numbers = #tpu.dot_dimension_numbers<[1], [0], [0], [1], [0, 0, 1, 1], [], []>} : vector<512x128xbf16>, vector<128x384xbf16>, vector<512x384xf32> -> vector<512x384xf32>
    %27 = vector.shape_cast %26 : vector<512x384xf32> to vector<1x16x32x384xf32>
    %28 = vector.extract_strided_slice %27 {offsets = [0, 0, 0, 0], sizes = [1, 16, 16, 128], strides = [1, 1, 1, 1]} : vector<1x16x32x384xf32> to vector<1x16x16x128xf32>
    %29 = arith.addf %21, %28 : vector<1x16x16x128xf32>
    %30 = vector.extract_strided_slice %27 {offsets = [0, 0, 1, 128], sizes = [1, 16, 16, 128], strides = [1, 1, 1, 1]} : vector<1x16x32x384xf32> to vector<1x16x16x128xf32>
    %31 = arith.addf %29, %30 : vector<1x16x16x128xf32>
    %32 = vector.extract_strided_slice %27 {offsets = [0, 0, 2, 256], sizes = [1, 16, 16, 128], strides = [1, 1, 1, 1]} : vector<1x16x32x384xf32> to vector<1x16x16x128xf32>
    %33 = arith.addf %31, %32 : vector<1x16x16x128xf32>
    %c0_37 = arith.constant 0 : index
    %c1_38 = arith.constant 1 : index
    %c0_39 = arith.constant 0 : index
    %c0_40 = arith.constant 0 : index
    %34 = vector.load %arg7[%c0_37, %c1_38, %c0_39, %c0_40] : memref<1x18x32x128xbf16, #tpu.memory_space<vmem>>, vector<1x16x32x128xbf16>
    %35 = vector.shape_cast %34 : vector<1x16x32x128xbf16> to vector<512x128xbf16>
    %c1_41 = arith.constant 1 : index
    %c0_42 = arith.constant 0 : index
    %c0_43 = arith.constant 0 : index
    %36 = vector.load %arg4[%c1_41, %c0_42, %c0_43] : memref<3x128x384xbf16, #tpu.memory_space<vmem>>, vector<1x128x384xbf16>
    %37 = vector.shape_cast %36 : vector<1x128x384xbf16> to vector<128x384xbf16>
    %cst_44 = arith.constant dense<0.000000e+00> : vector<512x384xf32>
    %38 = tpu.matmul %35, %37, %cst_44 {dimension_numbers = #tpu.dot_dimension_numbers<[1], [0], [0], [1], [0, 0, 1, 1], [], []>} : vector<512x128xbf16>, vector<128x384xbf16>, vector<512x384xf32> -> vector<512x384xf32>
    %39 = vector.shape_cast %38 : vector<512x384xf32> to vector<1x16x32x384xf32>
    %40 = vector.extract_strided_slice %39 {offsets = [0, 0, 0, 0], sizes = [1, 16, 16, 128], strides = [1, 1, 1, 1]} : vector<1x16x32x384xf32> to vector<1x16x16x128xf32>
    %41 = arith.addf %33, %40 : vector<1x16x16x128xf32>
    %42 = vector.extract_strided_slice %39 {offsets = [0, 0, 1, 128], sizes = [1, 16, 16, 128], strides = [1, 1, 1, 1]} : vector<1x16x32x384xf32> to vector<1x16x16x128xf32>
    %43 = arith.addf %41, %42 : vector<1x16x16x128xf32>
    %44 = vector.extract_strided_slice %39 {offsets = [0, 0, 2, 256], sizes = [1, 16, 16, 128], strides = [1, 1, 1, 1]} : vector<1x16x32x384xf32> to vector<1x16x16x128xf32>
    %45 = arith.addf %43, %44 : vector<1x16x16x128xf32>
    %c0_45 = arith.constant 0 : index
    %c2 = arith.constant 2 : index
    %c0_46 = arith.constant 0 : index
    %c0_47 = arith.constant 0 : index
    %46 = vector.load %arg7[%c0_45, %c2, %c0_46, %c0_47] : memref<1x18x32x128xbf16, #tpu.memory_space<vmem>>, vector<1x16x32x128xbf16>
    %47 = vector.shape_cast %46 : vector<1x16x32x128xbf16> to vector<512x128xbf16>
    %c2_48 = arith.constant 2 : index
    %c0_49 = arith.constant 0 : index
    %c0_50 = arith.constant 0 : index
    %48 = vector.load %arg4[%c2_48, %c0_49, %c0_50] : memref<3x128x384xbf16, #tpu.memory_space<vmem>>, vector<1x128x384xbf16>
    %49 = vector.shape_cast %48 : vector<1x128x384xbf16> to vector<128x384xbf16>
    %cst_51 = arith.constant dense<0.000000e+00> : vector<512x384xf32>
    %50 = tpu.matmul %47, %49, %cst_51 {dimension_numbers = #tpu.dot_dimension_numbers<[1], [0], [0], [1], [0, 0, 1, 1], [], []>} : vector<512x128xbf16>, vector<128x384xbf16>, vector<512x384xf32> -> vector<512x384xf32>
    %51 = vector.shape_cast %50 : vector<512x384xf32> to vector<1x16x32x384xf32>
    %52 = vector.extract_strided_slice %51 {offsets = [0, 0, 0, 0], sizes = [1, 16, 16, 128], strides = [1, 1, 1, 1]} : vector<1x16x32x384xf32> to vector<1x16x16x128xf32>
    %53 = arith.addf %45, %52 : vector<1x16x16x128xf32>
    %54 = vector.extract_strided_slice %51 {offsets = [0, 0, 1, 128], sizes = [1, 16, 16, 128], strides = [1, 1, 1, 1]} : vector<1x16x32x384xf32> to vector<1x16x16x128xf32>
    %55 = arith.addf %53, %54 : vector<1x16x16x128xf32>
    %56 = vector.extract_strided_slice %51 {offsets = [0, 0, 2, 256], sizes = [1, 16, 16, 128], strides = [1, 1, 1, 1]} : vector<1x16x32x384xf32> to vector<1x16x16x128xf32>
    %57 = arith.addf %55, %56 : vector<1x16x16x128xf32>
    %c0_52 = arith.constant 0 : index
    %c0_53 = arith.constant 0 : index
    %58 = vector.load %arg5[%c0_52, %c0_53] : memref<1x128xf32, #tpu.memory_space<vmem>>, vector<1x128xf32>
    %59 = vector.shape_cast %58 : vector<1x128xf32> to vector<1x1x1x128xf32>
    %60 = vector.broadcast %59 : vector<1x1x1x128xf32> to vector<1x16x16x128xf32>
    %61 = arith.addf %57, %60 : vector<1x16x16x128xf32>
    %cst_54 = arith.constant 0.000000e+00 : f32
    %62 = vector.broadcast %cst_54 : f32 to vector<1x16x16x128xf32>
    %63 = arith.cmpf ogt, %61, %62 : vector<1x16x16x128xf32>
    %cst_55 = arith.constant 1.000000e-01 : f32
    %64 = vector.broadcast %cst_55 : f32 to vector<1x16x16x128xf32>
    %65 = arith.mulf %64, %61 : vector<1x16x16x128xf32>
    %66 = arith.select %63, %61, %65 : vector<1x16x16x128xi1>, vector<1x16x16x128xf32>
    %67 = arith.truncf %66 : vector<1x16x16x128xf32> to vector<1x16x16x128xbf16>
    %c0_56 = arith.constant 0 : index
    %c0_57 = arith.constant 0 : index
    %c0_58 = arith.constant 0 : index
    %c0_59 = arith.constant 0 : index
    %68 = vector.load %arg6[%c0_56, %c0_57, %c0_58, %c0_59] : memref<1x16x16x128xbf16, #tpu.memory_space<vmem>>, vector<1x16x16x128xbf16>
    tpu.vector_store %arg6[%c0_56, %c0_57, %c0_58, %c0_59], %67 {strides = array<i32>} : memref<1x16x16x128xbf16, #tpu.memory_space<vmem>>, vector<1x16x16x128xbf16>,
    return
  }
  func.func @transform_0(%arg0: i32) -> (i32, i32, i32) {
    %c0_i32 = arith.constant 0 : i32
    %c0_i32_0 = arith.constant 0 : i32
    %c0_i32_1 = arith.constant 0 : i32
    return %arg0, %c0_i32, %c0_i32_0 : i32, i32, i32
  }
  func.func @transform_1(%arg0: i32) -> (i32, i32) {
    %c0_i32 = arith.constant 0 : i32
    %c0_i32_0 = arith.constant 0 : i32
    %c0_i32_1 = arith.constant 0 : i32
    return %c0_i32, %c0_i32_0 : i32, i32
  }
  func.func @transform_2(%arg0: i32) -> (i32, i32) {
    %c0_i32 = arith.constant 0 : i32
    %c0_i32_0 = arith.constant 0 : i32
    %c0_i32_1 = arith.constant 0 : i32
    return %c0_i32, %c0_i32_0 : i32, i32
  }
  func.func @transform_3(%arg0: i32) -> (i32, i32, i32) {
    %c0_i32 = arith.constant 0 : i32
    %c0_i32_0 = arith.constant 0 : i32
    %c0_i32_1 = arith.constant 0 : i32
    %c0_i32_2 = arith.constant 0 : i32
    return %c0_i32, %c0_i32_0, %c0_i32_1 : i32, i32, i32
  }
  func.func @transform_4(%arg0: i32) -> (i32, i32) {
    %c0_i32 = arith.constant 0 : i32
    %c0_i32_0 = arith.constant 0 : i32
    %c0_i32_1 = arith.constant 0 : i32
    return %c0_i32, %c0_i32_0 : i32, i32
  }
  func.func @transform_5(%arg0: i32) -> (i32, i32, i32, i32) {
    %c0_i32 = arith.constant 0 : i32
    %c0_i32_0 = arith.constant 0 : i32
    %c0_i32_1 = arith.constant 0 : i32
    %c0_i32_2 = arith.constant 0 : i32
    return %arg0, %c0_i32, %c0_i32_0, %c0_i32_1 : i32, i32, i32, i32
  }
}

</mosaic_0001>

<bundles_post_ra>
// kernel: tpu_custom_call.1
= control target key start
LH: loop header
LB: loop body
LE: loop exit
PB: predicated region body
PF: predicated region fallthrough
CT: control target
= control target key end

     0   :  { %10 = vsyncpa [#allocation4], 0  ;;  %s7701_s0 = inlined_call_operand.hbm [shape: bf16[2,256,128], index: 0, kind: input, shape index: {}]   ;;  %s7702_s1 = inlined_call_operand.hbm [shape: bf16[128,128], index: 1, kind: input, shape index: {}]   ;;  %s7703_s2 = inlined_call_operand.vmem [shape: f32[1,128], index: 2, kind: input, shape index: {}]   ;;  %s7704_s3 = inlined_call_operand.hbm [shape: bf16[3,128,384], index: 3, kind: input, shape index: {}]   ;;  %s7705_s4 = inlined_call_operand.vmem [shape: f32[1,128], index: 4, kind: input, shape index: {}]   ;;  %s7706_s5 = inlined_call_operand.hbm [shape: bf16[2,16,16,128], index: 5, kind: output, shape index: {}]  }
   0x1   :  { %12 = vsyncpa [#allocation4 + $0x1], 0 }
   0x2   :  { %13 = vsyncpa [#allocation7], 0 }
   0x3   :  { %14 = vsyncpa [#allocation5], 0 }
   0x4   :  { %16 = vsyncpa [#allocation5 + $0x1], 0  ;;  %s6190_s18 = smov 0   ;;  %s6192_s19 = smov 0  }
   0x5   :  { %s6194_s20 = smov 0   ;;  %s6196_s21 = smov 0  }
   0x6 LB: > { %s6211_s22 = sadd.s32 4294967295, %s6147_s21   ;;  %s5058_s23 = sadd.s32 4294967294, %s6147_s21   ;;  %s6147_s21 = sphi %s6196_s21, %s7732_s21   ;;  %s6143_s20 = sphi %s6194_s20, %s7731_s20   ;;  %s6139_s19 = sphi %s6192_s19, %s7730_s19   ;;  %s6135_s18 = sphi %s6190_s18, %s7729_s18  }
   0x7   : > { %p42_p0 = scmp.ne.s32.totalorder %s6139_s19, %s6135_s18  ;;  %p7707_p1 = scmp.eq.s32.totalorder %s6211_s22, 0 }
   0x8   : > { %p156_p3 = scmp.eq.s32.totalorder %s5058_s23, 1  ;;  %p5059_p5 = scmp.ge.s32.totalorder %s6147_s21, 1 }
   0x9   : > { %p6220_p4 = por %p7707_p1, %p42_p0  ;;  %p163_p7 = scmp.lt.s32.totalorder %s6147_s21, 3 }
   0xa   : > { %p6225_p6 = por %p156_p3, %p42_p0  ;;  %s6149_s27 = smov [#allocation6]  }
   0xb   : > { %s7710_s24 = scalar_select %p6220_p4, 1, 0 }
   0xc   : > { %s7711_s25 = scalar_select %p6225_p6, 1, 0 }
   0xd   : > { %p6230_p8 = pnand %p5059_p5, %p163_p7  ;;  %s175_s28 = sshll.u32 %s6149_s27, 4  ;;  %s6234_s28 = int_to_ptr.vmem [resolvable:$true] %s175_s28 }
   0xe   : > { %s6150_s30 = smov [#allocation8]   ;;  %s5991_s9 = scalar_lea.hbm %s7702_s1, 1024 }
   0xf   : > { %p5795_p9 = pneg %p6230_p8  ;;  %s191_s6 = sshll.u32 %s6150_s30, 4  ;;  %s6245_s6 = int_to_ptr.vmem [resolvable:$true] %s191_s6 }
  0x10   : > { %p5992_p12 = scmp.ne.s32.totalorder %s7702_s1, %s5991_s9  ;;  %p5998_p5 = scmp.lt.u32.totalorder %s5991_s9, %s7702_s1 }
  0x11   : > { %p6241_p11 = pnand %p5795_p9, %p7707_p1 }
  0x13   : > { %p5993_p13 = pneg %p6241_p11 }
  0x15   : > { %p5994_p0 = pnand %p5993_p13, %p5992_p12 }
  0x17   : > { %p5995_p3 = pneg %p5994_p0 }
  0x19   : > { %p6000_p7 = pnand %p5998_p5, %p5995_p3 }
  0x1b   : > { %6003 = shalt.err (!%p6000_p7)
}
  0x1c   : > { %s6004_s14 = scalar_lea.vmem %s6234_s28, 1024  ;;  %p6012_p2 = scmp.lt.s32.totalorder %s6234_s28, %s6234_s28 }
  0x1d   : > { %p6005_p9 = scmp.ne.s32.totalorder %s6234_s28, %s6004_s14  ;;  %p6013_p12 = scmp.lt.s32.totalorder %s6004_s14, %s6004_s14 }
  0x1f   : > { %p6007_p10 = pnand %p6005_p9, %p5993_p13  ;;  %p6014_p0 = por %p6013_p12, %p6012_p2 }
  0x21   : > { %p6008_p1 = pneg %p6007_p10 }
  0x23   : > { %p6015_p6 = pnand %p6014_p0, %p6008_p1 }
  0x25   : > { %6018 = shalt.err (!%p6015_p6)
}
  0x26   : > { %s6151_s15 = smov 64   ;;  %s6152_s16 = smov 4  }
  0x27   : > { %5798 = dma.hbm_to_vmem [thread:$0]  (!%p6241_p11), %s7702_s1, 1024, %s6234_s28, [#allocation7], %s6151_s15, %s6151_s15, %s6152_s16  }
  0x28   : > { %s6019_s7 = scalar_lea.hbm %s7704_s3, 9216 }
  0x29   : > { %p6020_p1 = scmp.ne.s32.totalorder %s7704_s3, %s6019_s7  ;;  %p6026_p10 = scmp.lt.u32.totalorder %s6019_s7, %s7704_s3 }
  0x2b   : > { %p6022_p2 = pnand %p6020_p1, %p5993_p13 }
  0x2d   : > { %p6023_p6 = pneg %p6022_p2 }
  0x2f   : > { %p6028_p3 = pnand %p6026_p10, %p6023_p6 }
  0x31   : > { %6031 = shalt.err (!%p6028_p3)
}
  0x32   : > { %s6032_s28 = scalar_lea.vmem %s6245_s6, 9216  ;;  %p6040_p12 = scmp.lt.s32.totalorder %s6245_s6, %s6245_s6 }
  0x33   : > { %p6033_p5 = scmp.ne.s32.totalorder %s6245_s6, %s6032_s28  ;;  %p6041_p0 = scmp.lt.s32.totalorder %s6032_s28, %s6032_s28 }
  0x35   : > { %p6035_p7 = pnand %p6033_p5, %p5993_p13  ;;  %p6042_p1 = por %p6041_p0, %p6040_p12 }
  0x37   : > { %p6036_p9 = pneg %p6035_p7 }
  0x39   : > { %p6043_p2 = pnand %p6042_p1, %p6036_p9 }
  0x3b   : > { %6046 = shalt.err (!%p6043_p2)
}
  0x3c   : > { %s6153_s12 = smov 192   ;;  %s6154_s13 = smov 12  }
  0x3d   : > { %5801 = dma.hbm_to_vmem [thread:$0]  (!%p6241_p11), %s7704_s3, 9216, %s6245_s6, [#allocation7], %s6153_s12, %s6153_s12, %s6154_s13  }
  0x3e   : > { %s6303_s23 = sadd.s32 1, %s6147_s21   ;;  %s29_s30 = sadd.s32 1, %s6143_s20 }
  0x3f   : > { %s26_s27 = ssub.s32 %s6147_s21, %s6303_s23  ;;  %p36_p6 = scmp.ne.s32.totalorder %s6143_s20, %s6139_s19 }
  0x40   : > { %p27_p13 = scmp.eq.s32.totalorder %s26_s27, 0  ;;  %p37_p10 = scmp.eq.s32.totalorder %s6147_s21, 0 }
  0x41   : > { %p7714_p5 = scmp.eq.s32.totalorder %s6211_s22, 1  ;;  %p5812_p9 = scmp.lt.s32.totalorder %s6147_s21, 2 }
  0x42   : > { %s6312_s7 = scalar_select %p27_p13, %s6143_s20, %s29_s30  }
  0x43   : > { %p38_p3 = por %p37_p10, %p36_p6  ;;  %p6316_p7 = por %p7714_p5, %p36_p6 }
  0x44   : > { %s208_s29 = sand.u32 1, %s6143_s20   ;;  %s5206_s6 = sshll.u32 %s6147_s21, 11 }
  0x45   : > { %s7715_s8 = scalar_select %p6316_p7, 1, 0 }
  0x46   : > { %s5063_s9 = sshll.u32 %s208_s29, 7  ;;  %s6326_s28 = scalar_lea.hbm %s7701_s0, %s5206_s6 }
  0x47   : > { %s212_s12 = scalar_lea.vmem [#allocation3], %s5063_s9  ;;  %p6330_p11 = pnand %p5812_p9, %p38_p3 }
  0x48   : > { %s219_s13 = sshll.u32 %s212_s12, 4  ;;  %s6334_s17 = scalar_lea.sflag [#allocation4], %s208_s29  ;;  %s6328_s13 = int_to_ptr.vmem [resolvable:$true] %s219_s13 }
  0x49   : > { %s6047_s27 = scalar_lea.hbm %s6326_s28, 2048  ;;  %p6049_p0 = pneg %p6330_p11 }
  0x4a   : > { %p6048_p12 = scmp.ne.s32.totalorder %s6326_s28, %s6047_s27  ;;  %s6052_s6 = scalar_lea.hbm %s7701_s0, 4096 }
  0x4b   : > { %p6053_p13 = scmp.lt.u32.totalorder %s6326_s28, %s7701_s0  ;;  %p6054_p6 = scmp.lt.u32.totalorder %s6052_s6, %s6047_s27 }
  0x4c   : > { %p6050_p1 = pnand %p6049_p0, %p6048_p12  ;;  %p6056_p3 = scmp.lt.u32.totalorder %s6047_s27, %s6326_s28 }
  0x4d   : > { %p6055_p10 = por %p6054_p6, %p6053_p13 }
  0x4e   : > { %p6051_p2 = pneg %p6050_p1 }
  0x4f   : > { %p6057_p5 = por %p6056_p3, %p6055_p10 }
  0x51   : > { %p6058_p9 = pnand %p6057_p5, %p6051_p2 }
  0x53   : > { %6061 = shalt.err (!%p6058_p9)
}
  0x54   : > { %s6062_s29 = scalar_lea.vmem %s6328_s13, 2048  ;;  %s6155_s12 = smov [#allocation3]  }
  0x55   : > { %p6063_p12 = scmp.ne.s32.totalorder %s6328_s13, %s6062_s29  ;;  %s6067_s30 = sshll.u32 %s6155_s12, 4  ;;  %s6068_s30 = int_to_ptr.vmem [resolvable:$false] %s6067_s30 }
  0x56   : > { %s6069_s9 = scalar_lea.vmem %s6068_s30, 4096  ;;  %p6070_p4 = scmp.lt.s32.totalorder %s6328_s13, %s6068_s30 }
  0x57   : > { %p6065_p1 = pnand %p6063_p12, %p6049_p0  ;;  %p6071_p13 = scmp.lt.s32.totalorder %s6069_s9, %s6062_s29 }
  0x59   : > { %p6066_p7 = pneg %p6065_p1  ;;  %p6072_p6 = por %p6071_p13, %p6070_p4 }
  0x5b   : > { %p6073_p10 = pnand %p6072_p6, %p6066_p7 }
  0x5d   : > { %6076 = shalt.err (!%p6073_p10)
}
  0x5e   : > { %5805 = dma.hbm_to_vmem [thread:$0]  (!%p6330_p11), %s6326_s28, 2048, %s6328_s13, %s6334_s17, %s6151_s15, %s6151_s15, %s6152_s16  }
  0x5f   : > { %231 = sbr.rel (%p6230_p8) target bundleno = 1209 (0x4b9), region = 40  ;;  %s6368_s27 = sand.u32 (!%p6230_p8), 1, %s6139_s19  }
  0x60   : > { %s5067_s6 = sshll.u32 (!%p6230_p8), %s6368_s27, 7  ;;  %s234_s10 = scalar_lea.sflag (!%p6230_p8), [#allocation4], %s6368_s27 }
  0x61   : > { %s6374_s14 = scalar_lea.vmem (!%p6230_p8), [#allocation3], %s5067_s6  ;;  %p7717_p4 = scmp.ne.s32.totalorder (!%p6230_p8), %s7710_s24, 0 }
  0x66   : > { %6122 = dma.done.wait (%p7717_p4), %s234_s10, 2048  }
  0x67   : > { %6124 = vsyncadd (%p7717_p4), %s234_s10, 4294965248  ;;  %p7718_p7 = scmp.eq.s32.totalorder %s6211_s22, 0 }
  0x69   : > { %6126 = dma.done.wait (%p7718_p7), [#allocation7], 10240   ;;  %p7719_p8 = pmov %p7718_p7 }
  0x6a   : > { %v5857_v0 = vld [vmem:[#allocation6] sm:$0xff]   ;;  %v5858_v1 = vld [vmem:[#allocation6 + $0x8] sm:$0xff]   ;;  %v5859_v2 = vld [vmem:[#allocation6 + $0x10] sm:$0xff]   ;;  %v6156_v40 = vmov 0   ;;  %vm751_vm0 = vcmask 1040384   ;;  %vm996_vm9 = vcmask 1047552  }
  0x6b   : > { %6128 = vsyncadd (%p7719_p8), [#allocation7], 4294957056  ;;  %5479 = vmatprep.subr.bf16.mxu0 %v5857_v0  ;;  %v5860_v3 = vld [vmem:[#allocation6 + $0x18] sm:$0xff]   ;;  %v5865_v4 = vld [vmem:[%s6374_s14] sm:$0xff]   ;;  %745 = vst [vmem:[#allocation2] sm:$0xff] %v6156_v40  ;;  %1352 = vmatprep.mubr.bf16.mxu1 %v6156_v40  ;;  %s7471_s28 = scalar_lea.vmem [#allocation9], %s5067_s6 }
  0x6c   : > { %5480 = vmatpush3.bf16.msra.mxu0 %v5857_v0  ;;  %5495 = vmatprep.mubr.bf16.mxu0 %v5865_v4  ;;  %v5861_v5 = vld [vmem:[#allocation6 + $0x20] sm:$0xff]   ;;  %v5862_v6 = vld [vmem:[#allocation6 + $0x28] sm:$0xff]   ;;  %v5863_v7 = vld [vmem:[#allocation6 + $0x30] sm:$0xff]   ;;  %vm802_vm1 = vsmask.f32 7938  ;;  %s5239_s11 = sshll.u32 %s6211_s22, 11 }
  0x6d   : > { %5481 = vmatprep.subr.bf16.mxu0 %v5858_v1  ;;  %v5864_v8 = vld [vmem:[#allocation6 + $0x38] sm:$0xff]   ;;  %v5883_v9 = vld [vmem:[#allocation8 + $0x4] ss:$12 sps:$4 sm:$0xff]   ;;  %v5881_v10 = vld [vmem:[#allocation8] ss:$12 sps:$4 sm:$0xff]   ;;  %s4966_s29 = sshll.u32 %s7471_s28, 4  ;;  %s7654_s9 = scalar_lea.hbm %s7706_s5, %s5239_s11  ;;  %s7656_s29 = int_to_ptr.vmem [resolvable:$true] %s4966_s29 }
  0x6e   : > { %v5886_v11 = vld [vmem:[#allocation8 + $0x1c] ss:$12 sps:$4 sm:$0xff]   ;;  %5767 = vmatprep.subr.bf16.mxu1 %v5883_v9  ;;  %v5884_v13 = vld [vmem:[#allocation8 + $0x18] ss:$12 sps:$4 sm:$0xff]   ;;  %v5867_v14 = vld [vmem:[%s6374_s14 + $0x10] sm:$0xff]   ;;  %s4953_s6 = scalar_lea.sflag [#allocation5], %s6368_s27 }
  0x6f   : > { %5775 = vmatpush1.bf16.msra.mxu1 %v5881_v10  ;;  %v5866_v12 = vld [vmem:[%s6374_s14 + $0x8] sm:$0xff]   ;;  %v5889_v15 = vld [vmem:[#allocation8 + $0x34] ss:$12 sps:$4 sm:$0xff]   ;;  %v5887_v16 = vld [vmem:[#allocation8 + $0x30] ss:$12 sps:$4 sm:$0xff]   ;;  %s6077_s10 = scalar_lea.vmem %s7656_s29, 2048 }
  0x70   : > { %5482 = vmatpush3.bf16.msra.mxu0 %v5858_v1  ;;  %5768 = vmatprep.subr.bf16.mxu1 %v5886_v11  ;;  %v5892_v17 = vld [vmem:[#allocation8 + $0x4c] ss:$12 sps:$4 sm:$0xff]   ;;  %v5890_v19 = vld [vmem:[#allocation8 + $0x48] ss:$12 sps:$4 sm:$0xff]   ;;  %v5869_v20 = vld [vmem:[%s6374_s14 + $0x20] sm:$0xff]   ;;  %p6078_p11 = scmp.ne.s32.totalorder %s7656_s29, %s6077_s10  ;;  %p7726_p0 = scmp.ne.s32.totalorder %s7715_s8, 0 }
  0x71   : > { %5483 = vmatprep.subr.bf16.mxu0 %v5859_v2  ;;  %v5868_v18 = vld [vmem:[%s6374_s14 + $0x18] sm:$0xff]   ;;  %v5895_v21 = vld [vmem:[#allocation8 + $0x64] ss:$12 sps:$4 sm:$0xff]   ;;  %v5893_v22 = vld [vmem:[#allocation8 + $0x60] ss:$12 sps:$4 sm:$0xff]   ;;  %s6157_s22 = smov [#allocation9]  }
  0x72   : > { %v5898_v23 = vld [vmem:[#allocation8 + $0x7c] ss:$12 sps:$4 sm:$0xff]   ;;  %v5896_v25 = vld [vmem:[#allocation8 + $0x78] ss:$12 sps:$4 sm:$0xff]   ;;  %v5871_v26 = vld [vmem:[%s6374_s14 + $0x30] sm:$0xff]   ;;  %p6079_p2 = pnand %p6078_p11, %p7726_p0 }
  0x73   : > { %5776 = vmatpush1.bf16.msra.mxu1 %v5884_v13  ;;  %v5870_v24 = vld [vmem:[%s6374_s14 + $0x28] sm:$0xff]   ;;  %v5872_v27 = vld [vmem:[%s6374_s14 + $0x38] sm:$0xff]   ;;  %v5873_v28 = vld [vmem:[%s6374_s14 + $0x40] sm:$0xff]   ;;  %vm752_vm3 = vsmask.f32 256 }
  0x74   : > { %5484 = vmatpush3.bf16.msra.mxu0 %v5859_v2  ;;  %5769 = vmatprep.subr.bf16.mxu1 %v5889_v15  ;;  %v5874_v29 = vld [vmem:[%s6374_s14 + $0x48] sm:$0xff]   ;;  %v5875_v30 = vld [vmem:[%s6374_s14 + $0x50] sm:$0xff]   ;;  %v5876_v31 = vld [vmem:[%s6374_s14 + $0x58] sm:$0xff]   ;;  %p6080_p3 = pneg %p6079_p2 }
  0x75   : > { %5485 = vmatprep.subr.bf16.mxu0 %v5860_v3  ;;  %v5877_v32 = vld [vmem:[%s6374_s14 + $0x60] sm:$0xff]   ;;  %v5878_v33 = vld [vmem:[%s6374_s14 + $0x68] sm:$0xff]   ;;  %v5879_v34 = vld [vmem:[%s6374_s14 + $0x70] sm:$0xff]  }
  0x76   : > { %v5880_v35 = vld [vmem:[%s6374_s14 + $0x78] sm:$0xff]   ;;  %v5901_v36 = vld [vmem:[#allocation8 + $0x94] ss:$12 sps:$4 sm:$0xff]   ;;  %vm6406_vm2 = vmand %vm751_vm0, %vm802_vm1  ;;  %s6081_s14 = sshll.u32 %s6157_s22, 4  ;;  %s6082_s14 = int_to_ptr.vmem [resolvable:$false] %s6081_s14 }
  0x77   : > { %5777 = vmatpush1.bf16.msra.mxu1 %v5887_v16  ;;  %v5899_v37 = vld [vmem:[#allocation8 + $0x90] ss:$12 sps:$4 sm:$0xff]   ;;  %v5904_v38 = vld [vmem:[#allocation8 + $0xac] ss:$12 sps:$4 sm:$0xff]   ;;  %v5902_v39 = vld [vmem:[#allocation8 + $0xa8] ss:$12 sps:$4 sm:$0xff]   ;;  %p6084_p5 = scmp.lt.s32.totalorder %s7656_s29, %s6082_s14 }
  0x78   : > { %5486 = vmatpush3.bf16.msra.mxu0 %v5860_v3  ;;  %5770 = vmatprep.subr.bf16.mxu1 %v5892_v17  ;;  %v5905_v41 = vld [vmem:[#allocation8 + $0x8] ss:$12 sps:$4 sm:$0xff]   ;;  %v804_v45 = vld [vmem:[#allocation2 + $0x18] sm:$0x1]  ;;  %vm6412_vm4 = vmand %vm751_vm0, %vm752_vm3  ;;  %s6083_s24 = scalar_lea.vmem %s6082_s14, 4096 }
  0x79   : > { %5487 = vmatprep.subr.bf16.mxu0 %v5861_v5  ;;  %v807_v43 = vld [vmem:[#allocation2 + $0x28] sm:$0x1]  ;;  %v757_v47 = vld [vmem:[#allocation2 + $0x20] sm:$0x1]  ;;  %v805_v48 = vsel %vm6406_vm2, 0, %v804_v45  ;;  %vm6496_vm11 = vmand %vm996_vm9, %vm802_vm1  ;;  %p6085_p9 = scmp.lt.s32.totalorder %s6083_s24, %s6077_s10 }
  0x7a   : > { %v808_v44 = vsel %vm6406_vm2, 0, %v807_v43  ;;  %v5906_v49 = vld [vmem:[#allocation8 + $0x20] ss:$12 sps:$4 sm:$0xff]   ;;  %v758_v50 = vsel %vm6412_vm4, 0, %v757_v47  ;;  %v754_v51 = vld [vmem:[#allocation2 + $0x10] sm:$0x1] }
  0x7b   : > { %5778 = vmatpush1.bf16.msra.mxu1 %v5890_v19  ;;  %809 = vst [vmem:[#allocation2 + $0x28] sm:$0x1] %v808_v44  ;;  %806 = vst [vmem:[#allocation2 + $0x18] sm:$0x1] %v805_v48  ;;  %v755_v52 = vsel %vm6412_vm4, 0, %v754_v51  ;;  %p6086_p12 = por %p6085_p9, %p6084_p5 }
  0x7c   : > { %5488 = vmatpush3.bf16.msra.mxu0 %v5861_v5  ;;  %5771 = vmatprep.subr.bf16.mxu1 %v5895_v21  ;;  %759 = vst [vmem:[#allocation2 + $0x20] sm:$0x1] %v758_v50  ;;  %756 = vst [vmem:[#allocation2 + $0x10] sm:$0x1] %v755_v52  ;;  %v5907_v53 = vld [vmem:[#allocation8 + $0x38] ss:$12 sps:$4 sm:$0xff]  }
  0x7d   : > { %5489 = vmatprep.subr.bf16.mxu0 %v5862_v6  ;;  %v5908_v54 = vld [vmem:[#allocation8 + $0x50] ss:$12 sps:$4 sm:$0xff]   ;;  %v763_v55 = vld [vmem:[#allocation2 + $0x40] sm:$0x1]  ;;  %v813_v56 = vld [vmem:[#allocation2 + $0x48] sm:$0x1]  ;;  %p6087_p1 = pnand %p6086_p12, %p6080_p3 }
  0x7e   : > { %v764_v57 = vsel %vm6412_vm4, 0, %v763_v55  ;;  %v814_v58 = vsel %vm6406_vm2, 0, %v813_v56  ;;  %v760_v59 = vld [vmem:[#allocation2 + $0x30] sm:$0x1]  ;;  %v810_v60 = vld [vmem:[#allocation2 + $0x38] sm:$0x1] }
  0x7f   : > { %5779 = vmatpush1.bf16.msra.mxu1 %v5893_v22  ;;  %765 = vst [vmem:[#allocation2 + $0x40] sm:$0x1] %v764_v57  ;;  %815 = vst [vmem:[#allocation2 + $0x48] sm:$0x1] %v814_v58  ;;  %v761_v61 = vsel %vm6412_vm4, 0, %v760_v59  ;;  %v811_v62 = vsel %vm6406_vm2, 0, %v810_v60 }
  0x80   : > { %5490 = vmatpush3.bf16.msra.mxu0 %v5862_v6  ;;  %5772 = vmatprep.subr.bf16.mxu1 %v5898_v23  ;;  %v5910_v63 = vld [vmem:[#allocation8 + $0x68] ss:$12 sps:$4 sm:$0xff]   ;;  %762 = vst [vmem:[#allocation2 + $0x30] sm:$0x1] %v761_v61  ;;  %812 = vst [vmem:[#allocation2 + $0x38] sm:$0x1] %v811_v62 }
  0x81   : > { %5491 = vmatprep.subr.bf16.mxu0 %v5863_v7  ;;  %v5911_v0 = vld [vmem:[#allocation8 + $0x80] ss:$12 sps:$4 sm:$0xff]   ;;  %v5912_v1 = vld [vmem:[#allocation8 + $0x98] ss:$12 sps:$4 sm:$0xff]   ;;  %v6432_v2 = vld [vmem:[#allocation8 + $0xc8] ss:$12 sps:$4 sm:$0xff]  }
  0x82   : > { %v5913_v3 = vld [vmem:[#allocation8 + $0xb0] ss:$12 sps:$4 sm:$0xff]   ;;  %v769_v4 = vld [vmem:[#allocation2 + $0x60] sm:$0x1]  ;;  %v819_v5 = vld [vmem:[#allocation2 + $0x68] sm:$0x1] }
  0x83   : > { %5780 = vmatpush1.bf16.msra.mxu1 %v5896_v25  ;;  %v770_v6 = vsel %vm6412_vm4, 0, %v769_v4  ;;  %v790_v43 = vld [vmem:[#allocation2 + $0xd0] sm:$0x1]  ;;  %v840_v44 = vld [vmem:[#allocation2 + $0xd8] sm:$0x1] }
  0x84   : > { %5492 = vmatpush3.bf16.msra.mxu0 %v5863_v7  ;;  %5773 = vmatprep.subr.bf16.mxu1 %v5901_v36  ;;  %v820_v7 = vsel %vm6406_vm2, 0, %v819_v5  ;;  %771 = vst [vmem:[#allocation2 + $0x60] sm:$0x1] %v770_v6  ;;  %v791_v45 = vsel %vm6412_vm4, 0, %v790_v43  ;;  %v841_v47 = vsel %vm6406_vm2, 0, %v840_v44 }
  0x85   : > { %5493 = vmatprep.subr.bf16.mxu0 %v5864_v8  ;;  %821 = vst [vmem:[#allocation2 + $0x68] sm:$0x1] %v820_v7  ;;  %792 = vst [vmem:[#allocation2 + $0xd0] sm:$0x1] %v791_v45  ;;  %v799_v48 = vld [vmem:[#allocation2 + $0x100] sm:$0x1] }
  0x86   : > { %842 = vst [vmem:[#allocation2 + $0xd8] sm:$0x1] %v841_v47  ;;  %v849_v50 = vld [vmem:[#allocation2 + $0x108] sm:$0x1]  ;;  %v6482_v52 = vld [vmem:[%s7703_s2] ss:$0 sm:$0xff] }
  0x87   : > { %5781 = vmatpush1.bf16.msra.mxu1 %v5899_v37  ;;  %v850_v51 = vsel %vm6406_vm2, 0, %v849_v50  ;;  %v796_v56 = vld [vmem:[#allocation2 + $0xf0] sm:$0x1]  ;;  %v846_v57 = vld [vmem:[#allocation2 + $0xf8] sm:$0x1] }
  0x88   : > { %5494 = vmatpush3.bf16.msra.mxu0 %v5864_v8  ;;  %5774 = vmatprep.subr.bf16.mxu1 %v5904_v38  ;;  %v766_v8 = vld [vmem:[#allocation2 + $0x50] sm:$0x1]  ;;  %851 = vst [vmem:[#allocation2 + $0x108] sm:$0x1] %v850_v51  ;;  %v797_v60 = vsel %vm6412_vm4, 0, %v796_v56  ;;  %v847_v61 = vsel %vm6406_vm2, 0, %v846_v57 }
  0x89   : > { %1286 = vmatprep.subr.bf16.mxu0 %v5883_v9  ;;  %v816_v9 = vld [vmem:[#allocation2 + $0x58] sm:$0x1]  ;;  %798 = vst [vmem:[#allocation2 + $0xf0] sm:$0x1] %v797_v60  ;;  %848 = vst [vmem:[#allocation2 + $0xf8] sm:$0x1] %v847_v61 }
  0x8a   : > { %v5914_v44 = vld [vmem:[#allocation8 + $0xe0] ss:$12 sps:$4 sm:$0xff]   ;;  %v5944_v46 = vld [vmem:[#allocation8 + $0x170] ss:$12 sps:$4 sm:$0xff]  }
  0x8b   : > { %5496 = vmatmul.mubr.bf16.vlgmr.msra.gmra.mrb[0].mxu0 %v5866_v12  ;;  %5782 = vmatpush1.bf16.msra.mxu1 %v5902_v39  ;;  %v775_v12 = vld [vmem:[#allocation2 + $0x80] sm:$0x1] }
  0x8c   : > { %5499 = vmatprep.mubr.bf16.mxu0 %v5867_v14  ;;  %1287 = vmatpush1.bf16.msra.mxu0 %v5881_v10  ;;  %v767_v10 = vsel %vm6412_vm4, 0, %v766_v8  ;;  %v776_v14 = vsel %vm6412_vm4, 0, %v775_v12 }
  0x8d   : > { %1288 = vmatprep.subr.bf16.mxu0 %v5886_v11  ;;  %5607 = vmatprep.subr.bf16.mxu1 %v6432_v2  ;;  %v817_v11 = vsel %vm6406_vm2, 0, %v816_v9  ;;  %768 = vst [vmem:[#allocation2 + $0x50] sm:$0x1] %v767_v10  ;;  %777 = vst [vmem:[#allocation2 + $0x80] sm:$0x1] %v776_v14 }
  0x8e   : > { %818 = vst [vmem:[#allocation2 + $0x58] sm:$0x1] %v817_v11 }
  0x90   : > { %1289 = vmatpush1.bf16.msra.mxu0 %v5884_v13  ;;  %v825_v13 = vld [vmem:[#allocation2 + $0x88] sm:$0x1] }
  0x91   : > { %1290 = vmatprep.subr.bf16.mxu0 %v5889_v15  ;;  %v826_v15 = vsel %vm6406_vm2, 0, %v825_v13 }
  0x92   : > { %827 = vst [vmem:[#allocation2 + $0x88] sm:$0x1] %v826_v15  ;;  %v1007_v15 = vld [vmem:[#allocation2 + $0x28] sm:$0x1] }
  0x93   : > { %5500 = vmatmul.mubr.bf16.gmra.mrb[4].mxu0 %v5868_v18 }
  0x94   : > { %5503 = vmatprep.mubr.bf16.mxu0 %v5869_v20  ;;  %1291 = vmatpush1.bf16.msra.mxu0 %v5887_v16  ;;  %v772_v16 = vld [vmem:[#allocation2 + $0x70] sm:$0x1]  ;;  %v781_v20 = vld [vmem:[#allocation2 + $0xa0] sm:$0x1] }
  0x95   : > { %1292 = vmatprep.subr.bf16.mxu0 %v5892_v17  ;;  %v822_v17 = vld [vmem:[#allocation2 + $0x78] sm:$0x1]  ;;  %v773_v18 = vsel %vm6412_vm4, 0, %v772_v16 }
  0x96   : > { %774 = vst [vmem:[#allocation2 + $0x70] sm:$0x1] %v773_v18 }
  0x98   : > { %1293 = vmatpush1.bf16.msra.mxu0 %v5890_v19  ;;  %v823_v19 = vsel %vm6406_vm2, 0, %v822_v17 }
  0x99   : > { %1294 = vmatprep.subr.bf16.mxu0 %v5895_v21  ;;  %824 = vst [vmem:[#allocation2 + $0x78] sm:$0x1] %v823_v19  ;;  %v831_v21 = vld [vmem:[#allocation2 + $0xa8] sm:$0x1] }
  0x9b   : > { %5504 = vmatmul.mubr.bf16.gmra.mrb[8].mxu0 %v5870_v24  ;;  %v778_v24 = vld [vmem:[#allocation2 + $0x90] sm:$0x1] }
  0x9c   : > { %5507 = vmatprep.mubr.bf16.mxu0 %v5871_v26  ;;  %1295 = vmatpush1.bf16.msra.mxu0 %v5893_v22  ;;  %v782_v22 = vsel %vm6412_vm4, 0, %v781_v20  ;;  %v779_v26 = vsel %vm6412_vm4, 0, %v778_v24 }
  0x9d   : > { %1296 = vmatprep.subr.bf16.mxu0 %v5898_v23  ;;  %v832_v23 = vsel %vm6406_vm2, 0, %v831_v21  ;;  %783 = vst [vmem:[#allocation2 + $0xa0] sm:$0x1] %v782_v22  ;;  %780 = vst [vmem:[#allocation2 + $0x90] sm:$0x1] %v779_v26 }
  0x9e   : > { %833 = vst [vmem:[#allocation2 + $0xa8] sm:$0x1] %v832_v23  ;;  %v1001_v23 = vld [vmem:[#allocation2 + $0x18] sm:$0x1] }
  0xa0   : > { %1297 = vmatpush1.bf16.msra.mxu0 %v5896_v25  ;;  %v828_v25 = vld [vmem:[#allocation2 + $0x98] sm:$0x1] }
  0xa1   : > { %1298 = vmatprep.subr.bf16.mxu0 %v5901_v36  ;;  %v5919_v36 = vld [vmem:[#allocation8 + $0xc4] ss:$12 sps:$4 sm:$0xff]  }
  0xa3   : > { %5508 = vmatmul.mubr.bf16.gmra.mrb[12].mxu0 %v5872_v27  ;;  %v829_v27 = vsel %vm6406_vm2, 0, %v828_v25 }
  0xa4   : > { %5511 = vmatprep.mubr.bf16.mxu0 %v5873_v28  ;;  %1299 = vmatpush1.bf16.msra.mxu0 %v5899_v37  ;;  %830 = vst [vmem:[#allocation2 + $0x98] sm:$0x1] %v829_v27  ;;  %v787_v28 = vld [vmem:[#allocation2 + $0xc0] sm:$0x1] }
  0xa5   : > { %1300 = vmatprep.subr.bf16.mxu0 %v5904_v38  ;;  %v793_v37 = vld [vmem:[#allocation2 + $0xe0] sm:$0x1]  ;;  %v843_v38 = vld [vmem:[#allocation2 + $0xe8] sm:$0x1] }
  0xa6   : > { %v1004_v27 = vld [vmem:[#allocation2 + $0x20] sm:$0xff] }
  0xa8   : > { %1301 = vmatpush1.bf16.msra.mxu0 %v5902_v39  ;;  %v794_v39 = vsel %vm6412_vm4, 0, %v793_v37 }
  0xa9   : > { %5527 = vmatprep.subr.bf16.mxu0 %v5905_v41  ;;  %795 = vst [vmem:[#allocation2 + $0xe0] sm:$0x1] %v794_v39 }
  0xab   : > { %5512 = vmatmul.mubr.bf16.gmra.mrb[16].mxu0 %v5874_v29  ;;  %v837_v29 = vld [vmem:[#allocation2 + $0xc8] sm:$0x1] }
  0xac   : > { %5515 = vmatprep.mubr.bf16.mxu0 %v5875_v30  ;;  %v788_v30 = vsel %vm6412_vm4, 0, %v787_v28 }
  0xad   : > { %789 = vst [vmem:[#allocation2 + $0xc0] sm:$0x1] %v788_v30 }
  0xb3   : > { %5516 = vmatmul.mubr.bf16.gmra.mrb[20].mxu0 %v5876_v31  ;;  %v838_v31 = vsel %vm6406_vm2, 0, %v837_v29 }
  0xb4   : > { %5519 = vmatprep.mubr.bf16.mxu0 %v5877_v32  ;;  %839 = vst [vmem:[#allocation2 + $0xc8] sm:$0x1] %v838_v31  ;;  %v784_v32 = vld [vmem:[#allocation2 + $0xb0] sm:$0x1] }
  0xbb   : > { %5520 = vmatmul.mubr.bf16.gmra.mrb[24].mxu0 %v5878_v33  ;;  %v834_v33 = vld [vmem:[#allocation2 + $0xb8] sm:$0x1] }
  0xbc   : > { %5523 = vmatprep.mubr.bf16.mxu0 %v5879_v34  ;;  %v785_v34 = vsel %vm6412_vm4, 0, %v784_v32 }
  0xbd   : > { %786 = vst [vmem:[#allocation2 + $0xb0] sm:$0x1] %v785_v34 }
  0xc3   : > { %5524 = vmatmul.mubr.bf16.gmra.mrb[28].mxu0 %v5880_v35  ;;  %v835_v35 = vsel %vm6406_vm2, 0, %v834_v33  ;;  %v998_v33 = vld [vmem:[#allocation2 + $0x10] sm:$0xff] }
  0xc4   : > { %1318 = vmatprep.mubr.bf16.mxu0 %v6156_v40  ;;  %836 = vst [vmem:[#allocation2 + $0xb8] sm:$0x1] %v835_v35 }
  0xcb   : > { %1319 = vmatmul.mubr.bf16.vlgmr.msra.gmra.mrb[32].mxu0 %v6156_v40 }
  0xcc   : > { %1328 = vmatprep.mubr.bf16.mxu0 %v6156_v40  ;;  %5528 = vmatpush3.bf16.msra.mxu0 %v5905_v41  ;;  %v844_v41 = vsel %vm6406_vm2, 0, %v843_v38 }
  0xcd   : > { %5529 = vmatprep.subr.bf16.mxu0 %v5906_v49  ;;  %845 = vst [vmem:[#allocation2 + $0xe8] sm:$0x1] %v844_v41 }
  0xd0   : > { %5530 = vmatpush3.bf16.msra.mxu0 %v5906_v49  ;;  %v800_v49 = vsel %vm6412_vm4, 0, %v799_v48 }
  0xd1   : > { %5531 = vmatprep.subr.bf16.mxu0 %v5907_v53  ;;  %801 = vst [vmem:[#allocation2 + $0x100] sm:$0x1] %v800_v49 }
  0xd3   : > { %1329 = vmatmul.mubr.bf16.gmra.mrb[36].mxu0 %v6156_v40 }
  0xd4   : > { %1335 = vmatprep.mubr.bf16.mxu0 %v6156_v40  ;;  %5532 = vmatpush3.bf16.msra.mxu0 %v5907_v53 }
  0xd5   : > { %5533 = vmatprep.subr.bf16.mxu0 %v5908_v54 }
  0xd8   : > { %5534 = vmatpush3.bf16.msra.mxu0 %v5908_v54 }
  0xd9   : > { %5535 = vmatprep.subr.bf16.mxu0 %v5910_v63 }
  0xdc   : > { %5536 = vmatpush3.bf16.msra.mxu0 %v5910_v63 }
  0xdd   : > { %5537 = vmatprep.subr.bf16.mxu0 %v5911_v0 }
  0xe0   : > { %5538 = vmatpush3.bf16.msra.mxu0 %v5911_v0 }
  0xe1   : > { %5539 = vmatprep.subr.bf16.mxu0 %v5912_v1 }
  0xe4   : > { %5540 = vmatpush3.bf16.msra.mxu0 %v5912_v1 }
  0xe5   : > { %5541 = vmatprep.subr.bf16.mxu0 %v5913_v3 }
  0xe8   : > { %5542 = vmatpush3.bf16.msra.mxu0 %v5913_v3 }
  0xe9   : > { %2475 = vmatprep.subr.bf16.mxu0 %v5919_v36 }
 0x15e   : > { %v5497_v53 = vpop.f32.mrb[0].mxu0 }
 0x15f   : > { %v515_v54 = vadd.f32 %v5497_v53, %v6482_v52  ;;  %v506_v55 = vpop.f32.mrb[1].mxu0 }
 0x160   : > { %v507_v58 = vadd.f32 %v6482_v52, %v506_v55  ;;  %v5498_v59 = vpop.f32.mrb[2].mxu0 }
 0x161   : > { %v667_v62 = vmul.f32 0.1, %v515_v54  ;;  %v518_v63 = vadd.f32 %v5498_v59, %v6482_v52  ;;  %v509_v0 = vpop.f32.mrb[3].mxu0  ;;  %vm635_vm5 = vcmp.gt.f32.partialorder %v515_v54, 0.0  ;;  %v5915_v59 = vld [vmem:[#allocation8 + $0xf8] ss:$12 sps:$4 sm:$0xff]  }
 0x162   : > { %v665_v1 = vmul.f32 0.1, %v507_v58  ;;  %v510_v3 = vadd.f32 %v6482_v52, %v509_v0  ;;  %vm633_vm6 = vcmp.gt.f32.partialorder %v507_v58, 0.0 }
 0x163   : > { %vm636_vm7 = vcmp.gt.f32.partialorder %v518_v63, 0.0  ;;  %v668_v4 = vmul.f32 0.1, %v518_v63  ;;  %v699_v6 = vsel %vm635_vm5, %v515_v54, %v667_v62  ;;  %v1019_v62 = vld [vmem:[#allocation2 + $0x48] sm:$0x1] }
 0x164   : > { %vm634_vm8 = vcmp.gt.f32.partialorder %v510_v3, 0.0  ;;  %v666_v5 = vmul.f32 0.1, %v510_v3  ;;  %v697_v8 = vsel %vm633_vm6, %v507_v58, %v665_v1 }
 0x165   : > { %v700_v7 = vsel %vm636_vm7, %v518_v63, %v668_v4 }
 0x166   : > { %v730_v42 = vpack.c.bf16 %v700_v7, %v699_v6  ;;  %v698_v9 = vsel %vm634_vm8, %v510_v3, %v666_v5  ;;  %v5501_v10 = vpop.f32.mrb[4].mxu0  ;;  %v1013_v3 = vld [vmem:[#allocation2 + $0x38] sm:$0x1]  ;;  %v1016_v7 = vld [vmem:[#allocation2 + $0x40] sm:$0xff] }
 0x167   : > { %v729_v11 = vpack.c.bf16 %v698_v9, %v697_v8  ;;  %v531_v12 = vadd.f32 %v5501_v10, %v6482_v52  ;;  %v522_v13 = vpop.f32.mrb[5].mxu0 }
 0x168   : > { %v860_v14 = vshrl.u32 %v730_v42, 16  ;;  %v523_v16 = vadd.f32 %v6482_v52, %v522_v13  ;;  %v5502_v17 = vpop.f32.mrb[6].mxu0  ;;  %v863_v22 = vshll.u32 %v730_v42, 16 }
 0x169   : > { %v853_v18 = vshrl.u32 %v729_v11, 16  ;;  %vm639_vm10 = vcmp.gt.f32.partialorder %v531_v12, 0.0  ;;  %v671_v19 = vmul.f32 0.1, %v531_v12  ;;  %v525_v20 = vpop.f32.mrb[7].mxu0  ;;  %v534_v25 = vadd.f32 %v5502_v17, %v6482_v52 }
 0x16a   : > { %v862_v21 = vrot.slane %v860_v14, 7  ;;  %v669_v24 = vmul.f32 0.1, %v523_v16  ;;  %v856_v29 = vshll.u32 %v729_v11, 16  ;;  %vm637_vm12 = vcmp.gt.f32.partialorder %v523_v16, 0.0  ;;  %v1010_v11 = vld [vmem:[#allocation2 + $0x30] sm:$0xff] }
 0x16b   : > { %v855_v28 = vrot.slane %v853_v18, 7  ;;  %v526_v30 = vadd.f32 %v6482_v52, %v525_v20  ;;  %v703_v34 = vsel %vm639_vm10, %v531_v12, %v671_v19  ;;  %vm640_vm13 = vcmp.gt.f32.partialorder %v534_v25, 0.0 }
 0x16c   : > { %v865_v31 = vor.u32 %v863_v22, %v862_v21  ;;  %v1008_v32 = vsel %vm6412_vm4, %v862_v21, %v1007_v15  ;;  %v672_v37 = vmul.f32 0.1, %v534_v25  ;;  %v701_v39 = vsel %vm637_vm12, %v523_v16, %v669_v24  ;;  %v5916_v15 = vld [vmem:[#allocation8 + $0x110] ss:$12 sps:$4 sm:$0xff]  }
 0x16d   : > { %1009 = vst [vmem:[#allocation2 + $0x28] sm:$0x1] %v1008_v32  ;;  %v858_v35 = vor.u32 %v856_v29, %v855_v28  ;;  %v1002_v36 = vsel %vm6412_vm4, %v855_v28, %v1001_v23  ;;  %vm638_vm14 = vcmp.gt.f32.partialorder %v526_v30, 0.0  ;;  %v670_v41 = vmul.f32 0.1, %v526_v30 }
 0x16e   : > { %v6508_v38 = vsel %vm6496_vm11, %v865_v31, %v1004_v27  ;;  %1003 = vst [vmem:[#allocation2 + $0x18] sm:$0x1] %v1002_v36  ;;  %v5505_v43 = vpop.f32.mrb[8].mxu0  ;;  %v704_v47 = vsel %vm640_vm13, %v534_v25, %v672_v37 }
 0x16f   : > { %1006 = vst [vmem:[#allocation2 + $0x20] sm:$0xff] %v6508_v38  ;;  %v6513_v45 = vsel %vm6496_vm11, %v858_v35, %v998_v33  ;;  %1353 = vmatmul.mubr.bf16.vlgmr.msra.gmra.mrb[0].mxu1 %v6508_v38  ;;  %v547_v48 = vadd.f32 %v5505_v43, %v6482_v52  ;;  %v538_v49 = vpop.f32.mrb[9].mxu0  ;;  %v732_v50 = vpack.c.bf16 %v704_v47, %v703_v34  ;;  %v5923_v35 = vld [vmem:[#allocation8 + $0x128] ss:$12 sps:$4 sm:$0xff]   ;;  %v1028_v43 = vld [vmem:[#allocation2 + $0x60] sm:$0xff] }
 0x170   : > { %1000 = vst [vmem:[#allocation2 + $0x10] sm:$0xff] %v6513_v45  ;;  %v702_v51 = vsel %vm638_vm14, %v526_v30, %v670_v41  ;;  %5608 = vmatpush3.bf16.msra.mxu1 %v6432_v2  ;;  %1336 = vmatmul.mubr.bf16.gmra.mrb[40].mxu0 %v6513_v45  ;;  %v539_v53 = vadd.f32 %v6482_v52, %v538_v49  ;;  %v5506_v54 = vpop.f32.mrb[10].mxu0  ;;  %v1031_v30 = vld [vmem:[#allocation2 + $0x68] sm:$0x1] }
 0x171   : > { %v731_v55 = vpack.c.bf16 %v702_v51, %v701_v39  ;;  %1362 = vmatprep.mubr.bf16.mxu1 %v6156_v40  ;;  %1345 = vmatprep.mubr.bf16.mxu0 %v6156_v40  ;;  %vm643_vm15 = vcmp.gt.f32.partialorder %v547_v48, 0.0  ;;  %v675_v56 = vmul.f32 0.1, %v547_v48  ;;  %v550_v57 = vadd.f32 %v5506_v54, %v6482_v52  ;;  %v541_v58 = vpop.f32.mrb[11].mxu0  ;;  %v5917_v51 = vld [vmem:[#allocation8 + $0xc0] ss:$12 sps:$4 sm:$0xff]  }
 0x172   : > { %v874_v60 = vshrl.u32 %v732_v50, 16  ;;  %v877_v61 = vshll.u32 %v732_v50, 16  ;;  %vm641_vm0 = vcmp.gt.f32.partialorder %v539_v53, 0.0  ;;  %v673_v2 = vmul.f32 0.1, %v539_v53  ;;  %5609 = vmatprep.subr.bf16.mxu1 %v5914_v44 }
 0x173   : > { %v867_v63 = vshrl.u32 %v731_v55, 16  ;;  %v870_v0 = vshll.u32 %v731_v55, 16  ;;  %vm644_vm1 = vcmp.gt.f32.partialorder %v550_v57, 0.0  ;;  %v707_v4 = vsel %vm643_vm15, %v547_v48, %v675_v56  ;;  %v1025_v48 = vld [vmem:[#allocation2 + $0x58] sm:$0x1] }
 0x174   : > { %v876_v1 = vrot.slane %v874_v60, 7  ;;  %v676_v5 = vmul.f32 0.1, %v550_v57  ;;  %v542_v6 = vadd.f32 %v6482_v52, %v541_v58  ;;  %5610 = vmatpush3.bf16.msra.mxu1 %v5914_v44  ;;  %v705_v42 = vsel %vm641_vm0, %v539_v53, %v673_v2  ;;  %v6528_v12 = vld [vmem:[#allocation2 + $0x28] sm:$0xff] }
 0x175   : > { %v869_v8 = vrot.slane %v867_v63, 7  ;;  %5611 = vmatprep.subr.bf16.mxu1 %v5915_v59  ;;  %v6533_v18 = vld [vmem:[#allocation2 + $0x18] sm:$0xff] }
 0x176   : > { %v879_v9 = vor.u32 %v877_v61, %v876_v1  ;;  %v1020_v10 = vsel %vm6412_vm4, %v876_v1, %v1019_v62  ;;  %v708_v13 = vsel %vm644_vm1, %v550_v57, %v676_v5  ;;  %vm642_vm2 = vcmp.gt.f32.partialorder %v542_v6, 0.0  ;;  %v5509_v14 = vpop.f32.mrb[12].mxu0  ;;  %v5922_v53 = vld [vmem:[#allocation8 + $0xdc] ss:$12 sps:$4 sm:$0xff]  }
 0x177   : > { %1021 = vst [vmem:[#allocation2 + $0x48] sm:$0x1] %v1020_v10  ;;  %v872_v16 = vor.u32 %v870_v0, %v869_v8  ;;  %v1014_v17 = vsel %vm6412_vm4, %v869_v8, %v1013_v3  ;;  %1363 = vmatmul.mubr.bf16.gmra.mrb[4].mxu1 %v6528_v12  ;;  %v734_v19 = vpack.c.bf16 %v708_v13, %v707_v4  ;;  %v674_v20 = vmul.f32 0.1, %v542_v6  ;;  %v554_v21 = vpop.f32.mrb[13].mxu0 }
 0x178   : > { %v6537_v22 = vsel %vm6496_vm11, %v879_v9, %v1016_v7  ;;  %1015 = vst [vmem:[#allocation2 + $0x38] sm:$0x1] %v1014_v17  ;;  %1346 = vmatmul.mubr.bf16.gmra.mrb[44].mxu0 %v6533_v18  ;;  %1369 = vmatprep.mubr.bf16.mxu1 %v6156_v40  ;;  %v563_v23 = vadd.f32 %v5509_v14, %v6482_v52  ;;  %v5510_v25 = vpop.f32.mrb[14].mxu0  ;;  %v6569_v4 = vld [vmem:[#allocation8 + $0x140] ss:$12 sps:$4 sm:$0xff]  }
 0x179   : > { %v555_v24 = vadd.f32 %v6482_v52, %v554_v21  ;;  %1018 = vst [vmem:[#allocation2 + $0x40] sm:$0xff] %v6537_v22  ;;  %v6546_v27 = vsel %vm6496_vm11, %v872_v16, %v1010_v11  ;;  %5543 = vmatprep.mubr.bf16.mxu0 %v6156_v40  ;;  %v888_v28 = vshrl.u32 %v734_v19, 16  ;;  %v891_v29 = vshll.u32 %v734_v19, 16  ;;  %v557_v32 = vpop.f32.mrb[15].mxu0  ;;  %5612 = vmatpush3.bf16.msra.mxu1 %v5915_v59  ;;  %v1022_v59 = vld [vmem:[#allocation2 + $0x50] sm:$0xff]  ;;  %v1040_v21 = vld [vmem:[#allocation2 + $0x80] sm:$0xff] }
 0x17a   : > { %v706_v31 = vsel %vm642_vm2, %v542_v6, %v674_v20  ;;  %1012 = vst [vmem:[#allocation2 + $0x30] sm:$0xff] %v6546_v27  ;;  %vm647_vm3 = vcmp.gt.f32.partialorder %v563_v23, 0.0  ;;  %v679_v34 = vmul.f32 0.1, %v563_v23  ;;  %5613 = vmatprep.subr.bf16.mxu1 %v5916_v15  ;;  %v566_v39 = vadd.f32 %v5510_v25, %v6482_v52  ;;  %v1043_v10 = vld [vmem:[#allocation2 + $0x88] sm:$0x1] }
 0x17b   : > { %v733_v33 = vpack.c.bf16 %v706_v31, %v705_v42  ;;  %v890_v36 = vrot.slane %v888_v28, 7  ;;  %v677_v37 = vmul.f32 0.1, %v555_v24  ;;  %v558_v41 = vadd.f32 %v6482_v52, %v557_v32  ;;  %v5920_v42 = vld [vmem:[#allocation8 + $0xd8] ss:$12 sps:$4 sm:$0xff]  }
 0x17c   : > { %vm645_vm5 = vcmp.gt.f32.partialorder %v555_v24, 0.0  ;;  %vm648_vm6 = vcmp.gt.f32.partialorder %v566_v39, 0.0  ;;  %v711_v55 = vsel %vm647_vm3, %v563_v23, %v679_v34  ;;  %v680_v56 = vmul.f32 0.1, %v566_v39  ;;  %v1037_v17 = vld [vmem:[#allocation2 + $0x78] sm:$0x1] }
 0x17d   : > { %v881_v44 = vshrl.u32 %v733_v33, 16  ;;  %v884_v47 = vshll.u32 %v733_v33, 16  ;;  %v893_v49 = vor.u32 %v891_v29, %v890_v36  ;;  %v1032_v50 = vsel %vm6412_vm4, %v890_v36, %v1031_v30  ;;  %5614 = vmatpush3.bf16.msra.mxu1 %v5916_v15  ;;  %v5924_v20 = vld [vmem:[#allocation8 + $0xf0] ss:$12 sps:$4 sm:$0xff]   ;;  %v5929_v31 = vld [vmem:[#allocation8 + $0x10c] ss:$12 sps:$4 sm:$0xff]  }
 0x17e   : > { %1033 = vst [vmem:[#allocation2 + $0x68] sm:$0x1] %v1032_v50  ;;  %vm646_vm7 = vcmp.gt.f32.partialorder %v558_v41, 0.0  ;;  %v5513_v57 = vpop.f32.mrb[16].mxu0  ;;  %5615 = vmatprep.subr.bf16.mxu1 %v5923_v35  ;;  %v709_v60 = vsel %vm645_vm5, %v555_v24, %v677_v37  ;;  %v678_v61 = vmul.f32 0.1, %v558_v41  ;;  %v712_v1 = vsel %vm648_vm6, %v566_v39, %v680_v56 }
 0x17f   : > { %v883_v54 = vrot.slane %v881_v44, 7  ;;  %1370 = vmatmul.mubr.bf16.gmra.mrb[8].mxu1 %v6546_v27  ;;  %v6559_v58 = vsel %vm6496_vm11, %v893_v49, %v1028_v43  ;;  %v579_v2 = vadd.f32 %v5513_v57, %v6482_v52  ;;  %v570_v62 = vpop.f32.mrb[17].mxu0  ;;  %v736_v5 = vpack.c.bf16 %v712_v1, %v711_v55  ;;  %v6583_v32 = vld [vmem:[#allocation2 + $0x38] sm:$0xff]  ;;  %v5927_v57 = vld [vmem:[#allocation8 + $0x108] ss:$12 sps:$4 sm:$0xff]  }
 0x180   : > { %1030 = vst [vmem:[#allocation2 + $0x60] sm:$0xff] %v6559_v58  ;;  %5544 = vmatmul.mubr.bf16.vlgmr.msra.gmra.mrb[48].mxu0 %v6156_v40  ;;  %1379 = vmatprep.mubr.bf16.mxu1 %v6156_v40  ;;  %v5514_v3 = vpop.f32.mrb[18].mxu0  ;;  %v710_v6 = vsel %vm646_vm7, %v558_v41, %v678_v61  ;;  %v571_v13 = vadd.f32 %v6482_v52, %v570_v62  ;;  %v1034_v41 = vld [vmem:[#allocation2 + $0x70] sm:$0xff]  ;;  %v1055_v62 = vld [vmem:[#allocation2 + $0xa8] sm:$0x1] }
 0x181   : > { %v886_v63 = vor.u32 %v884_v47, %v883_v54  ;;  %v1026_v0 = vsel %vm6412_vm4, %v883_v54, %v1025_v48  ;;  %5547 = vmatprep.mubr.bf16.mxu0 %v6513_v45  ;;  %vm651_vm8 = vcmp.gt.f32.partialorder %v579_v2, 0.0  ;;  %v683_v7 = vmul.f32 0.1, %v579_v2  ;;  %v573_v8 = vpop.f32.mrb[19].mxu0  ;;  %2476 = vmatpush1.bf16.msra.mxu0 %v5917_v51  ;;  %v5926_v45 = vld [vmem:[#allocation8 + $0xf4] ss:$12 sps:$4 sm:$0xff]  }
 0x182   : > { %1027 = vst [vmem:[#allocation2 + $0x58] sm:$0x1] %v1026_v0  ;;  %v735_v11 = vpack.c.bf16 %v710_v6, %v709_v60  ;;  %v582_v14 = vadd.f32 %v5514_v3, %v6482_v52  ;;  %2477 = vmatprep.subr.bf16.mxu0 %v5922_v53  ;;  %v902_v15 = vshrl.u32 %v736_v5, 16  ;;  %v905_v16 = vshll.u32 %v736_v5, 16  ;;  %5616 = vmatpush3.bf16.msra.mxu1 %v5923_v35  ;;  %v1052_v6 = vld [vmem:[#allocation2 + $0xa0] sm:$0xff] }
 0x183   : > { %v6575_v9 = vsel %vm6496_vm11, %v886_v63, %v1022_v59  ;;  %v574_v19 = vadd.f32 %v6482_v52, %v573_v8  ;;  %vm649_vm9 = vcmp.gt.f32.partialorder %v571_v13, 0.0  ;;  %v681_v25 = vmul.f32 0.1, %v571_v13  ;;  %5617 = vmatprep.subr.bf16.mxu1 %v6569_v4  ;;  %v1049_v63 = vld [vmem:[#allocation2 + $0x98] sm:$0x1] }
 0x184   : > { %1024 = vst [vmem:[#allocation2 + $0x50] sm:$0xff] %v6575_v9  ;;  %v895_v23 = vshrl.u32 %v735_v11, 16  ;;  %v898_v24 = vshll.u32 %v735_v11, 16  ;;  %v904_v28 = vrot.slane %v902_v15, 7  ;;  %v715_v29 = vsel %vm651_vm8, %v579_v2, %v683_v7  ;;  %v5932_v2 = vld [vmem:[#allocation8 + $0x124] ss:$12 sps:$4 sm:$0xff]  }
 0x185   : > { %vm652_vm10 = vcmp.gt.f32.partialorder %v582_v14, 0.0  ;;  %v684_v30 = vmul.f32 0.1, %v582_v14  ;;  %2478 = vmatpush1.bf16.msra.mxu0 %v5920_v42  ;;  %v713_v34 = vsel %vm649_vm9, %v571_v13, %v681_v25  ;;  %vm650_vm12 = vcmp.gt.f32.partialorder %v574_v19, 0.0 }
 0x186   : > { %v897_v33 = vrot.slane %v895_v23, 7  ;;  %v682_v35 = vmul.f32 0.1, %v574_v19  ;;  %v5517_v36 = vpop.f32.mrb[20].mxu0  ;;  %2479 = vmatprep.subr.bf16.mxu0 %v5926_v45  ;;  %v907_v37 = vor.u32 %v905_v16, %v904_v28  ;;  %v1044_v39 = vsel %vm6412_vm4, %v904_v28, %v1043_v10  ;;  %5618 = vmatpush3.bf16.msra.mxu1 %v6569_v4  ;;  %v5930_v10 = vld [vmem:[#allocation8 + $0x120] ss:$12 sps:$4 sm:$0xff]  }
 0x187   : > { %1380 = vmatmul.mubr.bf16.gmra.mrb[12].mxu1 %v6583_v32  ;;  %v716_v43 = vsel %vm652_vm10, %v582_v14, %v684_v30  ;;  %v595_v44 = vadd.f32 %v5517_v36, %v6482_v52  ;;  %v586_v47 = vpop.f32.mrb[21].mxu0  ;;  %1045 = vst [vmem:[#allocation2 + $0x88] sm:$0x1] %v1044_v39  ;;  %v5935_v16 = vld [vmem:[#allocation8 + $0x13c] ss:$12 sps:$4 sm:$0xff]  }
 0x188   : > { %5548 = vmatmul.mubr.bf16.gmra.mrb[52].mxu0 %v6533_v18  ;;  %1386 = vmatprep.mubr.bf16.mxu1 %v6156_v40  ;;  %v900_v48 = vor.u32 %v898_v24, %v897_v33  ;;  %v1038_v49 = vsel %vm6412_vm4, %v897_v33, %v1037_v17  ;;  %v738_v50 = vpack.c.bf16 %v716_v43, %v715_v29  ;;  %v5518_v51 = vpop.f32.mrb[22].mxu0  ;;  %v1046_v17 = vld [vmem:[#allocation2 + $0x90] sm:$0xff]  ;;  %v5933_v36 = vld [vmem:[#allocation8 + $0x138] ss:$12 sps:$4 sm:$0xff]   ;;  %v1067_v39 = vld [vmem:[#allocation2 + $0xc8] sm:$0x1] }
 0x189   : > { %5551 = vmatprep.mubr.bf16.mxu0 %v6508_v38  ;;  %v6596_v53 = vsel %vm6496_vm11, %v907_v37, %v1040_v21  ;;  %1039 = vst [vmem:[#allocation2 + $0x78] sm:$0x1] %v1038_v49  ;;  %v714_v54 = vsel %vm650_vm12, %v574_v19, %v682_v35  ;;  %vm655_vm13 = vcmp.gt.f32.partialorder %v595_v44, 0.0  ;;  %v687_v55 = vmul.f32 0.1, %v595_v44  ;;  %v589_v56 = vpop.f32.mrb[23].mxu0  ;;  %2480 = vmatpush1.bf16.msra.mxu0 %v5924_v20 }
 0x18a   : > { %1042 = vst [vmem:[#allocation2 + $0x80] sm:$0xff] %v6596_v53  ;;  %v6602_v59 = vsel %vm6496_vm11, %v900_v48, %v1034_v41  ;;  %v916_v60 = vshrl.u32 %v738_v50, 16  ;;  %v919_v38 = vshll.u32 %v738_v50, 16  ;;  %v737_v61 = vpack.c.bf16 %v714_v54, %v713_v34  ;;  %2481 = vmatprep.subr.bf16.mxu0 %v5929_v31  ;;  %v5943_v31 = vld [vmem:[#allocation8 + $0x158] ss:$12 sps:$4 sm:$0xff]  }
 0x18b   : > { %1036 = vst [vmem:[#allocation2 + $0x70] sm:$0xff] %v6602_v59  ;;  %v587_v0 = vadd.f32 %v6482_v52, %v586_v47  ;;  %v598_v1 = vadd.f32 %v5518_v51, %v6482_v52  ;;  %v590_v3 = vadd.f32 %v6482_v52, %v589_v56  ;;  %v719_v42 = vsel %vm655_vm13, %v595_v44, %v687_v55  ;;  %v5938_v44 = vld [vmem:[#allocation8 + $0x154] ss:$12 sps:$4 sm:$0xff]   ;;  %v1061_v49 = vld [vmem:[#allocation2 + $0xb8] sm:$0x1] }
 0x18c   : > { %v918_v5 = vrot.slane %v916_v60, 7  ;;  %v909_v7 = vshrl.u32 %v737_v61, 16  ;;  %v912_v8 = vshll.u32 %v737_v61, 16  ;;  %v5936_v51 = vld [vmem:[#allocation8 + $0x150] ss:$12 sps:$4 sm:$0xff]   ;;  %5619 = vmatprep.subr.bf16.mxu1 %v5943_v31  ;;  %v1064_v54 = vld [vmem:[#allocation2 + $0xc0] sm:$0xff] }
 0x18d   : > { %vm653_vm14 = vcmp.gt.f32.partialorder %v587_v0, 0.0  ;;  %v685_v11 = vmul.f32 0.1, %v587_v0  ;;  %vm656_vm15 = vcmp.gt.f32.partialorder %v598_v1, 0.0  ;;  %v688_v4 = vmul.f32 0.1, %v598_v1  ;;  %2482 = vmatpush1.bf16.msra.mxu0 %v5927_v57  ;;  %5620 = vmatpush3.bf16.msra.mxu1 %v5943_v31 }
 0x18e   : > { %v921_v13 = vor.u32 %v919_v38, %v918_v5  ;;  %v1056_v14 = vsel %vm6412_vm4, %v918_v5, %v1055_v62  ;;  %v911_v45 = vrot.slane %v909_v7, 7  ;;  %vm654_vm0 = vcmp.gt.f32.partialorder %v590_v3, 0.0  ;;  %v5521_v15 = vpop.f32.mrb[24].mxu0  ;;  %2483 = vmatprep.subr.bf16.mxu0 %v5932_v2  ;;  %v5942_v2 = vld [vmem:[#allocation8 + $0x16c] ss:$12 sps:$4 sm:$0xff]   ;;  %v1058_v7 = vld [vmem:[#allocation2 + $0xb0] sm:$0xff]  ;;  %5621 = vmatprep.subr.bf16.mxu1 %v5944_v46 }
 0x18f   : > { %1387 = vmatmul.mubr.bf16.gmra.mrb[16].mxu1 %v6537_v22  ;;  %1057 = vst [vmem:[#allocation2 + $0xa8] sm:$0x1] %v1056_v14  ;;  %v717_v19 = vsel %vm653_vm14, %v587_v0, %v685_v11  ;;  %v720_v20 = vsel %vm656_vm15, %v598_v1, %v688_v4  ;;  %v686_v21 = vmul.f32 0.1, %v590_v3  ;;  %v611_v23 = vadd.f32 %v5521_v15, %v6482_v52  ;;  %v602_v24 = vpop.f32.mrb[25].mxu0  ;;  %v6634_v62 = vld [vmem:[#allocation2 + $0x48] sm:$0xff] }
 0x190   : > { %5552 = vmatmul.mubr.bf16.gmra.mrb[56].mxu0 %v6528_v12  ;;  %1396 = vmatprep.mubr.bf16.mxu1 %v6156_v40  ;;  %v6618_v25 = vsel %vm6496_vm11, %v921_v13, %v1052_v6  ;;  %v914_v28 = vor.u32 %v912_v8, %v911_v45  ;;  %v1050_v29 = vsel %vm6412_vm4, %v911_v45, %v1049_v63  ;;  %v5522_v30 = vpop.f32.mrb[26].mxu0  ;;  %v1076_v31 = vld [vmem:[#allocation2 + $0xe0] sm:$0xff] }
 0x191   : > { %5555 = vmatprep.mubr.bf16.mxu0 %v6546_v27  ;;  %1054 = vst [vmem:[#allocation2 + $0xa0] sm:$0xff] %v6618_v25  ;;  %1051 = vst [vmem:[#allocation2 + $0x98] sm:$0x1] %v1050_v29  ;;  %v740_v33 = vpack.c.bf16 %v720_v20, %v719_v42  ;;  %v718_v12 = vsel %vm654_vm0, %v590_v3, %v686_v21  ;;  %vm659_vm1 = vcmp.gt.f32.partialorder %v611_v23, 0.0  ;;  %v691_v34 = vmul.f32 0.1, %v611_v23 }
 0x192   : > { %v605_v35 = vpop.f32.mrb[27].mxu0  ;;  %2484 = vmatpush1.bf16.msra.mxu0 %v5930_v10  ;;  %v6627_v37 = vsel %vm6496_vm11, %v914_v28, %v1046_v17  ;;  %v739_v41 = vpack.c.bf16 %v718_v12, %v717_v19  ;;  %v603_v43 = vadd.f32 %v6482_v52, %v602_v24  ;;  %v614_v27 = vadd.f32 %v5522_v30, %v6482_v52 }
 0x193   : > { %2485 = vmatprep.subr.bf16.mxu0 %v5935_v16  ;;  %1048 = vst [vmem:[#allocation2 + $0x90] sm:$0xff] %v6627_v37  ;;  %v930_v47 = vshrl.u32 %v740_v33, 16  ;;  %v933_v48 = vshll.u32 %v740_v33, 16  ;;  %v606_v50 = vadd.f32 %v6482_v52, %v605_v35  ;;  %v723_v38 = vsel %vm659_vm1, %v611_v23, %v691_v34  ;;  %v1079_v23 = vld [vmem:[#allocation2 + $0xe8] sm:$0x1]  ;;  %5622 = vmatpush3.bf16.msra.mxu1 %v5944_v46 }
 0x194   : > { %v923_v55 = vshrl.u32 %v739_v41, 16  ;;  %v926_v56 = vshll.u32 %v739_v41, 16  ;;  %vm657_vm2 = vcmp.gt.f32.partialorder %v603_v43, 0.0  ;;  %v689_v57 = vmul.f32 0.1, %v603_v43 }
 0x195   : > { %v932_v60 = vrot.slane %v930_v47, 7  ;;  %vm660_vm3 = vcmp.gt.f32.partialorder %v614_v27, 0.0  ;;  %v692_v61 = vmul.f32 0.1, %v614_v27  ;;  %vm658_vm5 = vcmp.gt.f32.partialorder %v606_v50, 0.0 }
 0x196   : > { %2486 = vmatpush1.bf16.msra.mxu0 %v5933_v36  ;;  %v925_v63 = vrot.slane %v923_v55, 7  ;;  %v721_v0 = vsel %vm657_vm2, %v603_v43, %v689_v57  ;;  %v690_v1 = vmul.f32 0.1, %v606_v50  ;;  %v5525_v3 = vpop.f32.mrb[28].mxu0  ;;  %v1073_v34 = vld [vmem:[#allocation2 + $0xd8] sm:$0x1] }
 0x197   : > { %2487 = vmatprep.subr.bf16.mxu0 %v5938_v44  ;;  %1397 = vmatmul.mubr.bf16.gmra.mrb[20].mxu1 %v6634_v62  ;;  %v935_v5 = vor.u32 %v933_v48, %v932_v60  ;;  %v1068_v6 = vsel %vm6412_vm4, %v932_v60, %v1067_v39  ;;  %v724_v8 = vsel %vm660_vm3, %v614_v27, %v692_v61  ;;  %v618_v10 = vpop.f32.mrb[29].mxu0 }
 0x198   : > { %v627_v42 = vadd.f32 %v5525_v3, %v6482_v52  ;;  %5556 = vmatmul.mubr.bf16.gmra.mrb[60].mxu0 %v6583_v32  ;;  %1403 = vmatprep.mubr.bf16.mxu1 %v6156_v40  ;;  %1069 = vst [vmem:[#allocation2 + $0xc8] sm:$0x1] %v1068_v6  ;;  %v928_v11 = vor.u32 %v926_v56, %v925_v63  ;;  %v5526_v14 = vpop.f32.mrb[30].mxu0  ;;  %v5940_v40 = vld [vmem:[#allocation8 + $0x168] ss:$12 sps:$4 sm:$0xff]   ;;  %v1088_v6 = vld [vmem:[#allocation2 + $0x100] sm:$0xff] }
 0x199   : > { %v1062_v4 = vsel %vm6412_vm4, %v925_v63, %v1061_v49  ;;  %v742_v13 = vpack.c.bf16 %v724_v8, %v723_v38  ;;  %5559 = vmatprep.mubr.bf16.mxu0 %v6537_v22  ;;  %v6647_v45 = vsel %vm6496_vm11, %v935_v5, %v1064_v54  ;;  %v722_v15 = vsel %vm658_vm5, %v606_v50, %v690_v1  ;;  %v621_v17 = vpop.f32.mrb[31].mxu0  ;;  %v6664_v49 = vld [vmem:[#allocation2] sm:$0xff]  ;;  %v1085_v3 = vld [vmem:[#allocation2 + $0xf8] sm:$0x1] }
 0x19a   : > { %1063 = vst [vmem:[#allocation2 + $0xb8] sm:$0x1] %v1062_v4  ;;  %vm663_vm6 = vcmp.gt.f32.partialorder %v627_v42, 0.0  ;;  %v695_v16 = vmul.f32 0.1, %v627_v42  ;;  %2488 = vmatpush1.bf16.msra.mxu0 %v5936_v51  ;;  %1066 = vst [vmem:[#allocation2 + $0xc0] sm:$0xff] %v6647_v45  ;;  %v6653_v19 = vsel %vm6496_vm11, %v928_v11, %v1058_v7  ;;  %v741_v21 = vpack.c.bf16 %v722_v15, %v721_v0 }
 0x19b   : > { %v944_v20 = vshrl.u32 %v742_v13, 16  ;;  %v947_v22 = vshll.u32 %v742_v13, 16  ;;  %2489 = vmatprep.subr.bf16.mxu0 %v5942_v2  ;;  %1060 = vst [vmem:[#allocation2 + $0xb0] sm:$0xff] %v6653_v19  ;;  %v619_v24 = vadd.f32 %v6482_v52, %v618_v10  ;;  %v630_v28 = vadd.f32 %v5526_v14, %v6482_v52  ;;  %v1091_v2 = vld [vmem:[#allocation2 + $0x108] sm:$0x1]  ;;  %v6681_v5 = vld [vmem:[#allocation2 + $0x58] sm:$0xff] }
 0x19c   : > { %v622_v29 = vadd.f32 %v6482_v52, %v621_v17  ;;  %v937_v33 = vshrl.u32 %v741_v21, 16  ;;  %v940_v12 = vshll.u32 %v741_v21, 16  ;;  %v727_v35 = vsel %vm663_vm6, %v627_v42, %v695_v16  ;;  %v1070_v52 = vld [vmem:[#allocation2 + $0xd0] sm:$0xff]  ;;  %v6699_v15 = vld [vmem:[#allocation2 + $0x68] sm:$0xff]  ;;  %v6704_v16 = vld [vmem:[#allocation2 + $0x78] sm:$0xff] }
 0x19d   : > { %v946_v30 = vrot.slane %v944_v20, 7  ;;  %vm661_vm7 = vcmp.gt.f32.partialorder %v619_v24, 0.0  ;;  %v693_v36 = vmul.f32 0.1, %v619_v24  ;;  %vm664_vm8 = vcmp.gt.f32.partialorder %v630_v28, 0.0  ;;  %v1082_v10 = vld [vmem:[#allocation2 + $0xf0] sm:$0xff] }
 0x19e   : > { %v696_v39 = vmul.f32 0.1, %v630_v28  ;;  %2490 = vmatpush1.bf16.msra.mxu0 %v5940_v40  ;;  %v939_v27 = vrot.slane %v937_v33, 7  ;;  %vm662_vm9 = vcmp.gt.f32.partialorder %v622_v29, 0.0  ;;  %v694_v48 = vmul.f32 0.1, %v622_v29 }
 0x19f   : > { %v949_v41 = vor.u32 %v947_v22, %v946_v30  ;;  %v1080_v43 = vsel %vm6412_vm4, %v946_v30, %v1079_v23  ;;  %1404 = vmatmul.mubr.bf16.gmra.mrb[24].mxu1 %v6575_v9  ;;  %v725_v44 = vsel %vm661_vm7, %v619_v24, %v693_v36  ;;  %v6709_v26 = vpop.f32.mrb[32].mxu0  ;;  %v6718_v22 = vld [vmem:[#allocation2 + $0x88] sm:$0xff]  ;;  %v5947_v30 = vld [vmem:[#allocation8 + $0x184] ss:$12 sps:$4 sm:$0xff]  }
 0x1a0   : > { %1081 = vst [vmem:[#allocation2 + $0xe8] sm:$0x1] %v1080_v43  ;;  %v728_v47 = vsel %vm664_vm8, %v630_v28, %v696_v39  ;;  %5560 = vmatmul.mubr.bf16.gmra.mrb[64].mxu0 %v6634_v62  ;;  %1413 = vmatprep.mubr.bf16.mxu1 %v6664_v49  ;;  %v942_v51 = vor.u32 %v940_v12, %v939_v27  ;;  %v6724_v28 = vld [vmem:[#allocation2 + $0x98] sm:$0xff]  ;;  %v6742_v12 = vld [vmem:[#allocation2 + $0xc8] sm:$0xff] }
 0x1a1   : > { %v6669_v50 = vsel %vm6496_vm11, %v949_v41, %v1076_v31  ;;  %v1074_v54 = vsel %vm6412_vm4, %v939_v27, %v1073_v34  ;;  %5563 = vmatprep.mubr.bf16.mxu0 %v6575_v9  ;;  %v744_v55 = vpack.c.bf16 %v728_v47, %v727_v35  ;;  %v726_v56 = vsel %vm662_vm9, %v622_v29, %v694_v48  ;;  %v6730_v29 = vld [vmem:[#allocation2 + $0xa8] sm:$0xff]  ;;  %v6736_v33 = vld [vmem:[#allocation2 + $0xb8] sm:$0xff] }
 0x1a2   : > { %1078 = vst [vmem:[#allocation2 + $0xe0] sm:$0xff] %v6669_v50  ;;  %1075 = vst [vmem:[#allocation2 + $0xd8] sm:$0x1] %v1074_v54  ;;  %v6678_v57 = vsel %vm6496_vm11, %v942_v51, %v1070_v52  ;;  %v743_v60 = vpack.c.bf16 %v726_v56, %v725_v44  ;;  %v5948_v31 = vld [vmem:[#allocation8 + $0x188] ss:$12 sps:$4 sm:$0xff]   ;;  %3663 = vmatprep.subr.bf16.mxu1 %v5947_v30  ;;  %v6787_v44 = vld [vmem:[#allocation2 + $0x20] sm:$0xff] }
 0x1a3   : > { %1072 = vst [vmem:[#allocation2 + $0xd0] sm:$0xff] %v6678_v57  ;;  %v958_v38 = vshrl.u32 %v744_v55, 16  ;;  %v961_v61 = vshll.u32 %v744_v55, 16  ;;  %5687 = vmatprep.subr.bf16.mxu0 %v5948_v31  ;;  %v5955_v35 = vld [vmem:[#allocation8 + $0x1a0] ss:$12 sps:$4 sm:$0xff]  }
 0x1a4   : > { %v951_v63 = vshrl.u32 %v743_v60, 16  ;;  %v954_v0 = vshll.u32 %v743_v60, 16  ;;  %v5962_v47 = vld [vmem:[#allocation8 + $0x1b8] ss:$12 sps:$4 sm:$0xff]   ;;  %v6793_v48 = vld [vmem:[#allocation2 + $0x28] sm:$0xff] }
 0x1a5   : > { %v960_v1 = vrot.slane %v958_v38, 7  ;;  %v5969_v51 = vld [vmem:[#allocation8 + $0x1d0] ss:$12 sps:$4 sm:$0xff]   ;;  %v6809_v54 = vld [vmem:[#allocation2 + $0x40] sm:$0xff]  ;;  %v5973_v30 = vld [vmem:[#allocation8 + $0x1e8] ss:$12 sps:$4 sm:$0xff]  }
 0x1a6   : > { %v953_v7 = vrot.slane %v951_v63, 7 }
 0x1a7   : > { %1414 = vmatmul.mubr.bf16.gmra.mrb[28].mxu1 %v6681_v5  ;;  %v963_v8 = vor.u32 %v961_v61, %v960_v1  ;;  %v1092_v42 = vsel %vm6412_vm4, %v960_v1, %v1091_v2  ;;  %v6754_v34 = vld [vmem:[#allocation2 + $0xe8] sm:$0xff] }
 0x1a8   : > { %5564 = vmatmul.mubr.bf16.gmra.mrb[68].mxu0 %v6681_v5  ;;  %1420 = vmatprep.mubr.bf16.mxu1 %v6664_v49  ;;  %1093 = vst [vmem:[#allocation2 + $0x108] sm:$0x1] %v1092_v42  ;;  %v956_v11 = vor.u32 %v954_v0, %v953_v7  ;;  %v1086_v4 = vsel %vm6412_vm4, %v953_v7, %v1085_v3  ;;  %vm1944_vm4 = vcmask 1046528  }
 0x1a9   : > { %5567 = vmatprep.mubr.bf16.mxu0 %v6559_v58  ;;  %v1089_v13 = vsel %vm6496_vm11, %v963_v8, %v1088_v6  ;;  %1087 = vst [vmem:[#allocation2 + $0xf8] sm:$0x1] %v1086_v4 }
 0x1aa   : > { %1090 = vst [vmem:[#allocation2 + $0x100] sm:$0xff] %v1089_v13  ;;  %v6695_v14 = vsel %vm6496_vm11, %v956_v11, %v1082_v10  ;;  %vm2137_vm11 = vcmask 1045504  }
 0x1ab   : > { %1084 = vst [vmem:[#allocation2 + $0xf0] sm:$0xff] %v6695_v14 }
 0x1af   : > { %1421 = vmatmul.mubr.bf16.gmra.mrb[32].mxu1 %v6559_v58  ;;  %v6712_v58 = vpop.f32.mrb[33].mxu0 }
 0x1b0   : > { %5568 = vmatmul.mubr.bf16.gmra.mrb[72].mxu0 %v6699_v15  ;;  %1430 = vmatprep.mubr.bf16.mxu1 %v6664_v49  ;;  %v6714_v17 = vpop.f32.mrb[34].mxu0  ;;  %v1945_v36 = vrot.slane %v6712_v58, 1 }
 0x1b1   : > { %5571 = vmatprep.mubr.bf16.mxu0 %v6602_v59  ;;  %v6716_v40 = vpop.f32.mrb[35].mxu0 }
 0x1b2   : > { %v1330_v20 = vpop.f32.mrb[36].mxu0  ;;  %v1946_v39 = vrot.slane %v6716_v40, 1 }
 0x1b3   : > { %v1331_v21 = vpop.f32.mrb[37].mxu0 }
 0x1b4   : > { %v1333_v23 = vpop.f32.mrb[38].mxu0  ;;  %v1948_v41 = vrot.slane %v1331_v21, 1  ;;  %v1947_v43 = vsel %vm1944_vm4, %v1945_v36, %v1946_v39 }
 0x1b5   : > { %v1334_v24 = vpop.f32.mrb[39].mxu0  ;;  %v6777_v27 = vadd.f32 %v1947_v43, %v6709_v26  ;;  %v5954_v43 = vld [vmem:[#allocation8 + $0x1b4] ss:$12 sps:$4 sm:$0xff]  }
 0x1b6   : > { %v5951_v24 = vld [vmem:[#allocation8 + $0x19c] ss:$12 sps:$4 sm:$0xff]  }
 0x1b7   : > { %1431 = vmatmul.mubr.bf16.gmra.mrb[36].mxu1 %v6699_v15 }
 0x1b8   : > { %5572 = vmatmul.mubr.bf16.gmra.mrb[76].mxu0 %v6704_v16  ;;  %1437 = vmatprep.mubr.bf16.mxu1 %v6664_v49 }
 0x1b9   : > { %5575 = vmatprep.mubr.bf16.mxu0 %v6596_v53 }
 0x1bf   : > { %1438 = vmatmul.mubr.bf16.gmra.mrb[40].mxu1 %v6602_v59 }
 0x1c0   : > { %5576 = vmatmul.mubr.bf16.gmra.mrb[80].mxu0 %v6718_v22  ;;  %1447 = vmatprep.mubr.bf16.mxu1 %v6664_v49 }
 0x1c1   : > { %5579 = vmatprep.mubr.bf16.mxu0 %v6627_v37 }
 0x1c7   : > { %1448 = vmatmul.mubr.bf16.gmra.mrb[44].mxu1 %v6704_v16 }
 0x1c8   : > { %5580 = vmatmul.mubr.bf16.gmra.mrb[84].mxu0 %v6724_v28  ;;  %1454 = vmatprep.mubr.bf16.mxu1 %v6664_v49 }
 0x1c9   : > { %5583 = vmatprep.mubr.bf16.mxu0 %v6618_v25 }
 0x1cf   : > { %1455 = vmatmul.mubr.bf16.gmra.mrb[48].mxu1 %v6596_v53  ;;  %v6748_v53 = vld [vmem:[#allocation2 + $0xd8] sm:$0xff] }
 0x1d0   : > { %5584 = vmatmul.mubr.bf16.gmra.mrb[88].mxu0 %v6730_v29  ;;  %1464 = vmatprep.mubr.bf16.mxu1 %v6664_v49 }
 0x1d1   : > { %5587 = vmatprep.mubr.bf16.mxu0 %v6653_v19 }
 0x1d7   : > { %1465 = vmatmul.mubr.bf16.gmra.mrb[52].mxu1 %v6718_v22 }
 0x1d8   : > { %5588 = vmatmul.mubr.bf16.gmra.mrb[92].mxu0 %v6736_v33  ;;  %1471 = vmatprep.mubr.bf16.mxu1 %v6664_v49 }
 0x1d9   : > { %5591 = vmatprep.mubr.bf16.mxu0 %v6647_v45 }
 0x1df   : > { %1472 = vmatmul.mubr.bf16.gmra.mrb[56].mxu1 %v6627_v37  ;;  %v6760_v37 = vld [vmem:[#allocation2 + $0xf8] sm:$0xff] }
 0x1e0   : > { %5592 = vmatmul.mubr.bf16.gmra.mrb[96].mxu0 %v6742_v12  ;;  %1481 = vmatprep.mubr.bf16.mxu1 %v6664_v49 }
 0x1e1   : > { %5595 = vmatprep.mubr.bf16.mxu0 %v6678_v57 }
 0x1e7   : > { %1482 = vmatmul.mubr.bf16.gmra.mrb[60].mxu1 %v6724_v28 }
 0x1e8   : > { %5596 = vmatmul.mubr.bf16.gmra.mrb[100].mxu0 %v6748_v53  ;;  %1488 = vmatprep.mubr.bf16.mxu1 %v6664_v49 }
 0x1e9   : > { %5599 = vmatprep.mubr.bf16.mxu0 %v6669_v50 }
 0x1ef   : > { %1489 = vmatmul.mubr.bf16.gmra.mrb[64].mxu1 %v6618_v25  ;;  %v6767_v25 = vld [vmem:[#allocation2 + $0x10] sm:$0xff] }
 0x1f0   : > { %5600 = vmatmul.mubr.bf16.gmra.mrb[104].mxu0 %v6754_v34  ;;  %1498 = vmatprep.mubr.bf16.mxu1 %v6664_v49 }
 0x1f1   : > { %5603 = vmatprep.mubr.bf16.mxu0 %v6695_v14 }
 0x1f7   : > { %1499 = vmatmul.mubr.bf16.gmra.mrb[68].mxu1 %v6730_v29 }
 0x1f8   : > { %5604 = vmatmul.mubr.bf16.gmra.mrb[108].mxu0 %v6760_v37  ;;  %1505 = vmatprep.mubr.bf16.mxu1 %v6664_v49 }
 0x1f9   : > { %2507 = vmatprep.mubr.bf16.mxu0 %v6664_v49 }
 0x1ff   : > { %1506 = vmatmul.mubr.bf16.gmra.mrb[72].mxu1 %v6653_v19  ;;  %v1949_v19 = vsel %vm1944_vm4, %v1946_v39, %v1948_v41  ;;  %v5949_v39 = vld [vmem:[#allocation8 + $0x198] ss:$12 sps:$4 sm:$0xff]  }
 0x200   : > { %2508 = vmatmul.mubr.bf16.vlgmr.msra.gmra.mrb[112].mxu0 %v6767_v25  ;;  %1515 = vmatprep.mubr.bf16.mxu1 %v6664_v49  ;;  %v6780_v52 = vadd.f32 %v1949_v19, %v6714_v17  ;;  %v5945_v17 = vld [vmem:[#allocation8 + $0x180] ss:$12 sps:$4 sm:$0xff]  }
 0x201   : > { %2517 = vmatprep.mubr.bf16.mxu0 %v6664_v49  ;;  %5688 = vmatpush3.bf16.msra.mxu0 %v5948_v31 }
 0x202   : > { %5689 = vmatprep.subr.bf16.mxu0 %v5955_v35 }
 0x205   : > { %5690 = vmatpush3.bf16.msra.mxu0 %v5955_v35  ;;  %v6834_v35 = vld [vmem:[#allocation2 + $0x60] sm:$0xff] }
 0x206   : > { %5691 = vmatprep.subr.bf16.mxu0 %v5962_v47 }
 0x207   : > { %1516 = vmatmul.mubr.bf16.gmra.mrb[76].mxu1 %v6736_v33 }
 0x208   : > { %2518 = vmatmul.mubr.bf16.gmra.mrb[116].mxu0 %v6533_v18  ;;  %1522 = vmatprep.mubr.bf16.mxu1 %v6664_v49 }
 0x209   : > { %2524 = vmatprep.mubr.bf16.mxu0 %v6664_v49  ;;  %5692 = vmatpush3.bf16.msra.mxu0 %v5962_v47 }
 0x20a   : > { %5693 = vmatprep.subr.bf16.mxu0 %v5969_v51 }
 0x20d   : > { %5694 = vmatpush3.bf16.msra.mxu0 %v5969_v51 }
 0x20e   : > { %5695 = vmatprep.subr.bf16.mxu0 %v5973_v30 }
 0x20f   : > { %1523 = vmatmul.mubr.bf16.gmra.mrb[80].mxu1 %v6647_v45  ;;  %v6799_v45 = vld [vmem:[#allocation2 + $0x30] sm:$0xff] }
 0x210   : > { %2525 = vmatmul.mubr.bf16.gmra.mrb[120].mxu0 %v6787_v44  ;;  %1532 = vmatprep.mubr.bf16.mxu1 %v6664_v49 }
 0x211   : > { %2534 = vmatprep.mubr.bf16.mxu0 %v6664_v49  ;;  %5696 = vmatpush3.bf16.msra.mxu0 %v5973_v30 }
 0x217   : > { %1533 = vmatmul.mubr.bf16.gmra.mrb[84].mxu1 %v6742_v12 }
 0x218   : > { %2535 = vmatmul.mubr.bf16.gmra.mrb[124].mxu0 %v6793_v48  ;;  %1539 = vmatprep.mubr.bf16.mxu1 %v6664_v49 }
 0x219   : > { %2541 = vmatprep.mubr.bf16.mxu0 %v6664_v49 }
 0x21f   : > { %1540 = vmatmul.mubr.bf16.gmra.mrb[88].mxu1 %v6678_v57 }
 0x220   : > { %2542 = vmatmul.mubr.bf16.gmra.mrb[128].mxu0 %v6799_v45  ;;  %1549 = vmatprep.mubr.bf16.mxu1 %v6664_v49 }
 0x221   : > { %2551 = vmatprep.mubr.bf16.mxu0 %v6664_v49 }
 0x227   : > { %1550 = vmatmul.mubr.bf16.gmra.mrb[92].mxu1 %v6748_v53 }
 0x228   : > { %2552 = vmatmul.mubr.bf16.gmra.mrb[132].mxu0 %v6583_v32  ;;  %1556 = vmatprep.mubr.bf16.mxu1 %v6664_v49 }
 0x229   : > { %2558 = vmatprep.mubr.bf16.mxu0 %v6664_v49 }
 0x22f   : > { %1557 = vmatmul.mubr.bf16.gmra.mrb[96].mxu1 %v6669_v50 }
 0x230   : > { %2559 = vmatmul.mubr.bf16.gmra.mrb[136].mxu0 %v6809_v54  ;;  %1566 = vmatprep.mubr.bf16.mxu1 %v6664_v49 }
 0x231   : > { %2568 = vmatprep.mubr.bf16.mxu0 %v6664_v49 }
 0x237   : > { %1567 = vmatmul.mubr.bf16.gmra.mrb[100].mxu1 %v6754_v34 }
 0x238   : > { %2569 = vmatmul.mubr.bf16.gmra.mrb[140].mxu0 %v6634_v62  ;;  %1573 = vmatprep.mubr.bf16.mxu1 %v6664_v49 }
 0x239   : > { %2575 = vmatprep.mubr.bf16.mxu0 %v6664_v49 }
 0x23f   : > { %1574 = vmatmul.mubr.bf16.gmra.mrb[104].mxu1 %v6695_v14 }
 0x240   : > { %2576 = vmatmul.mubr.bf16.gmra.mrb[144].mxu0 %v6575_v9  ;;  %1583 = vmatprep.mubr.bf16.mxu1 %v6664_v49 }
 0x241   : > { %2585 = vmatprep.mubr.bf16.mxu0 %v6664_v49 }
 0x242   : > { %v1354_v50 = vpop.f32.mrb[0].mxu1 }
 0x243   : > { %v1337_v55 = vpop.f32.mrb[40].mxu0  ;;  %v1356_v56 = vpop.f32.mrb[1].mxu1 }
 0x244   : > { %v1339_v60 = vpop.f32.mrb[41].mxu0  ;;  %v1358_v38 = vpop.f32.mrb[2].mxu1  ;;  %v1955_v63 = vrot.slane %v1356_v56, 1 }
 0x245   : > { %v1341_v61 = vpop.f32.mrb[42].mxu0  ;;  %v1360_v2 = vpop.f32.mrb[3].mxu1  ;;  %v1950_v3 = vrot.slane %v1339_v60, 1 }
 0x246   : > { %v1956_v0 = vrot.slane %v1360_v2, 1  ;;  %v1343_v1 = vpop.f32.mrb[43].mxu0 }
 0x247   : > { %v1951_v6 = vrot.slane %v1343_v1, 1  ;;  %1584 = vmatmul.mubr.bf16.gmra.mrb[108].mxu1 %v6760_v37  ;;  %v5958_v1 = vld [vmem:[#allocation8 + $0x1cc] ss:$12 sps:$4 sm:$0xff]  }
 0x248   : > { %2586 = vmatmul.mubr.bf16.gmra.mrb[148].mxu0 %v6681_v5  ;;  %5623 = vmatprep.mubr.bf16.mxu1 %v6767_v25  ;;  %v1957_v7 = vsel %vm1944_vm4, %v1955_v63, %v1956_v0 }
 0x249   : > { %2592 = vmatprep.mubr.bf16.mxu0 %v6664_v49  ;;  %v1952_v8 = vsel %vm1944_vm4, %v1950_v3, %v1951_v6  ;;  %v6828_v42 = vadd.f32 %v1957_v7, %v1354_v50  ;;  %v5956_v7 = vld [vmem:[#allocation8 + $0x1c8] ss:$12 sps:$4 sm:$0xff]  }
 0x24a   : > { %v1364_v10 = vpop.f32.mrb[4].mxu1  ;;  %v6830_v11 = vadd.f32 %v1952_v8, %v1337_v55 }
 0x24b   : > { %v1347_v4 = vpop.f32.mrb[44].mxu0  ;;  %v1365_v13 = vpop.f32.mrb[5].mxu1 }
 0x24c   : > { %v1958_v46 = vrot.slane %v1365_v13, 1  ;;  %v1348_v26 = vpop.f32.mrb[45].mxu0  ;;  %v1367_v58 = vpop.f32.mrb[6].mxu1 }
 0x24d   : > { %v1953_v40 = vrot.slane %v1348_v26, 1  ;;  %v1350_v20 = vpop.f32.mrb[46].mxu0  ;;  %v1368_v21 = vpop.f32.mrb[7].mxu1 }
 0x24e   : > { %v1351_v23 = vpop.f32.mrb[47].mxu0  ;;  %v1959_v31 = vsel %vm1944_vm4, %v1956_v0, %v1958_v46  ;;  %v5961_v46 = vld [vmem:[#allocation8 + $0x1e4] ss:$12 sps:$4 sm:$0xff]  }
 0x24f   : > { %5624 = vmatmul.mubr.bf16.vlgmr.msra.gmra.mrb[112].mxu1 %v6533_v18  ;;  %v1954_v25 = vsel %vm1944_vm4, %v1951_v6, %v1953_v40  ;;  %v6837_v36 = vadd.f32 %v1959_v31, %v1358_v38  ;;  %v5959_v31 = vld [vmem:[#allocation8 + $0x1e0] ss:$12 sps:$4 sm:$0xff]  }
 0x250   : > { %3664 = vmatpush1.bf16.msra.mxu1 %v5945_v17  ;;  %2593 = vmatmul.mubr.bf16.gmra.mrb[152].mxu0 %v6834_v35  ;;  %v6840_v41 = vadd.f32 %v1954_v25, %v1341_v61  ;;  %v5952_v61 = vld [vmem:[#allocation8 + $0x1b0] ss:$12 sps:$4 sm:$0xff]  }
 0x251   : > { %5627 = vmatprep.mubr.bf16.mxu1 %v6787_v44  ;;  %2602 = vmatprep.mubr.bf16.mxu0 %v6664_v49 }
 0x252   : > { %v1371_v19 = vpop.f32.mrb[8].mxu1  ;;  %3665 = vmatprep.subr.bf16.mxu1 %v5951_v24 }
 0x253   : > { %v1373_v18 = vpop.f32.mrb[9].mxu1  ;;  %v5545_v47 = vpop.f32.mrb[48].mxu0 }
 0x254   : > { %v1375_v51 = vpop.f32.mrb[10].mxu1  ;;  %v1625_v50 = vpop.f32.mrb[49].mxu0  ;;  %3666 = vmatpush1.bf16.msra.mxu1 %v5949_v39  ;;  %v2141_v56 = vrot.slane %v5545_v47, 2  ;;  %v1960_v2 = vrot.slane %v1373_v18, 1  ;;  %v5965_v39 = vld [vmem:[#allocation8 + $0x1fc] ss:$12 sps:$4 sm:$0xff]  }
 0x255   : > { %v1377_v55 = vpop.f32.mrb[11].mxu1  ;;  %v2138_v60 = vrot.slane %v1625_v50, 2  ;;  %v5546_v38 = vpop.f32.mrb[50].mxu0  ;;  %3667 = vmatprep.subr.bf16.mxu1 %v5954_v43  ;;  %v5963_v47 = vld [vmem:[#allocation8 + $0x1f8] ss:$12 sps:$4 sm:$0xff]  }
 0x256   : > { %v1961_v63 = vrot.slane %v1377_v55, 1  ;;  %v1628_v0 = vpop.f32.mrb[51].mxu0 }
 0x257   : > { %5628 = vmatmul.mubr.bf16.gmra.mrb[116].mxu1 %v6793_v48  ;;  %v2139_v3 = vrot.slane %v1628_v0, 2 }
 0x258   : > { %2603 = vmatmul.mubr.bf16.gmra.mrb[156].mxu0 %v6699_v15  ;;  %5631 = vmatprep.mubr.bf16.mxu1 %v6799_v45  ;;  %v1962_v6 = vsel %vm1944_vm4, %v1960_v2, %v1961_v63 }
 0x259   : > { %2609 = vmatprep.mubr.bf16.mxu0 %v6664_v49  ;;  %3668 = vmatpush1.bf16.msra.mxu1 %v5952_v61  ;;  %v2140_v8 = vsel %vm2137_vm11, %v2138_v60, %v2139_v3  ;;  %v2142_v10 = vsel %vm2137_vm11, %v2139_v3, %v2141_v56  ;;  %v6851_v4 = vadd.f32 %v1962_v6, %v1371_v19  ;;  %v5968_v60 = vld [vmem:[#allocation8 + $0x214] ss:$12 sps:$4 sm:$0xff]  }
 0x25a   : > { %v1381_v13 = vpop.f32.mrb[12].mxu1  ;;  %3669 = vmatprep.subr.bf16.mxu1 %v5958_v1  ;;  %v6854_v26 = vadd.f32 %v2140_v8, %v6777_v27  ;;  %v6857_v58 = vadd.f32 %v2142_v10, %v6780_v52  ;;  %v5966_v1 = vld [vmem:[#allocation8 + $0x210] ss:$12 sps:$4 sm:$0xff]   ;;  %v5972_v8 = vld [vmem:[#allocation8 + $0x22c] ss:$12 sps:$4 sm:$0xff]  }
 0x25b   : > { %v1382_v17 = vpop.f32.mrb[13].mxu1  ;;  %v5549_v40 = vpop.f32.mrb[52].mxu0 }
 0x25c   : > { %v1963_v20 = vrot.slane %v1382_v17, 1  ;;  %v1384_v21 = vpop.f32.mrb[14].mxu1  ;;  %v1640_v23 = vpop.f32.mrb[53].mxu0  ;;  %v2146_v19 = vrot.slane %v5549_v40, 2 }
 0x25d   : > { %v1385_v24 = vpop.f32.mrb[15].mxu1  ;;  %v5550_v30 = vpop.f32.mrb[54].mxu0  ;;  %3670 = vmatpush1.bf16.msra.mxu1 %v5956_v7  ;;  %v2143_v27 = vrot.slane %v1640_v23, 2 }
 0x25e   : > { %v1643_v25 = vpop.f32.mrb[55].mxu0  ;;  %3671 = vmatprep.subr.bf16.mxu1 %v5961_v46  ;;  %v1964_v43 = vsel %vm1944_vm4, %v1961_v63, %v1963_v20  ;;  %v5970_v46 = vld [vmem:[#allocation8 + $0x228] ss:$12 sps:$4 sm:$0xff]  }
 0x25f   : > { %v2144_v18 = vrot.slane %v1643_v25, 2  ;;  %5632 = vmatmul.mubr.bf16.gmra.mrb[120].mxu1 %v6583_v32  ;;  %v6861_v52 = vadd.f32 %v1964_v43, %v1375_v51 }
 0x260   : > { %2610 = vmatmul.mubr.bf16.gmra.mrb[160].mxu0 %v6602_v59  ;;  %5635 = vmatprep.mubr.bf16.mxu1 %v6809_v54 }
 0x261   : > { %2619 = vmatprep.mubr.bf16.mxu0 %v6664_v49  ;;  %3672 = vmatpush1.bf16.msra.mxu1 %v5959_v31  ;;  %v2145_v50 = vsel %vm2137_vm11, %v2143_v27, %v2144_v18  ;;  %v2147_v55 = vsel %vm2137_vm11, %v2144_v18, %v2146_v19 }
 0x262   : > { %v1388_v56 = vpop.f32.mrb[16].mxu1  ;;  %3673 = vmatprep.subr.bf16.mxu1 %v5965_v39  ;;  %v6869_v38 = vadd.f32 %v2145_v50, %v6830_v11  ;;  %v6872_v32 = vadd.f32 %v2147_v55, %v6840_v41  ;;  %v5974_v55 = vld [vmem:[#allocation8 + $0x200] ss:$12 sps:$4 sm:$0xff]  }
 0x263   : > { %v1390_v51 = vpop.f32.mrb[17].mxu1  ;;  %v5553_v61 = vpop.f32.mrb[56].mxu0  ;;  %5697 = vmatprep.subr.bf16.mxu0 %v5974_v55 }
 0x264   : > { %v1392_v54 = vpop.f32.mrb[18].mxu1  ;;  %v1655_v2 = vpop.f32.mrb[57].mxu0  ;;  %v1965_v3 = vrot.slane %v1390_v51, 1  ;;  %v2151_v10 = vrot.slane %v5553_v61, 2  ;;  %5698 = vmatpush3.bf16.msra.mxu0 %v5974_v55 }
 0x265   : > { %v1394_v63 = vpop.f32.mrb[19].mxu1  ;;  %v5554_v0 = vpop.f32.mrb[58].mxu0  ;;  %3674 = vmatpush1.bf16.msra.mxu1 %v5963_v47  ;;  %v2148_v13 = vrot.slane %v1655_v2, 2 }
 0x266   : > { %v1966_v6 = vrot.slane %v1394_v63, 1  ;;  %v1658_v7 = vpop.f32.mrb[59].mxu0  ;;  %3675 = vmatprep.subr.bf16.mxu1 %v5968_v60 }
 0x267   : > { %v2149_v11 = vrot.slane %v1658_v7, 2  ;;  %5636 = vmatmul.mubr.bf16.gmra.mrb[124].mxu1 %v6634_v62 }
 0x268   : > { %2620 = vmatmul.mubr.bf16.gmra.mrb[164].mxu0 %v6704_v16  ;;  %5639 = vmatprep.mubr.bf16.mxu1 %v6575_v9  ;;  %v1967_v41 = vsel %vm1944_vm4, %v1965_v3, %v1966_v6 }
 0x269   : > { %2626 = vmatprep.mubr.bf16.mxu0 %v6664_v49  ;;  %3676 = vmatpush1.bf16.msra.mxu1 %v5966_v1  ;;  %v2150_v17 = vsel %vm2137_vm11, %v2148_v13, %v2149_v11  ;;  %v2152_v40 = vsel %vm2137_vm11, %v2149_v11, %v2151_v10  ;;  %v2065_v20 = vadd.f32 %v1967_v41, %v1388_v56 }
 0x26a   : > { %v1398_v21 = vpop.f32.mrb[20].mxu1  ;;  %3677 = vmatprep.subr.bf16.mxu1 %v5972_v8  ;;  %v6882_v23 = vadd.f32 %v2150_v17, %v6828_v42  ;;  %v6885_v62 = vadd.f32 %v2152_v40, %v6837_v36  ;;  %v2296_v42 = vld [vmem:[#allocation2 + $0x80] sm:$0xff] }
 0x26b   : > { %v1399_v9 = vpop.f32.mrb[21].mxu1  ;;  %v5557_v24 = vpop.f32.mrb[60].mxu0 }
 0x26c   : > { %v1968_v30 = vrot.slane %v1399_v9, 1  ;;  %v1401_v31 = vpop.f32.mrb[22].mxu1  ;;  %v1670_v25 = vpop.f32.mrb[61].mxu0  ;;  %v2156_v18 = vrot.slane %v5557_v24, 2 }
 0x26d   : > { %v1402_v39 = vpop.f32.mrb[23].mxu1  ;;  %v5558_v43 = vpop.f32.mrb[62].mxu0  ;;  %3678 = vmatpush1.bf16.msra.mxu1 %v5970_v46  ;;  %v2153_v47 = vrot.slane %v1670_v25, 2  ;;  %v5976_v31 = vld [vmem:[#allocation8 + $0x230] ss:$12 sps:$4 sm:$0xff]  }
 0x26e   : > { %v1673_v19 = vpop.f32.mrb[63].mxu0  ;;  %v1969_v27 = vsel %vm1944_vm4, %v1966_v6, %v1968_v30 }
 0x26f   : > { %v2154_v50 = vrot.slane %v1673_v19, 2  ;;  %5640 = vmatmul.mubr.bf16.gmra.mrb[128].mxu1 %v6681_v5  ;;  %v2066_v36 = vadd.f32 %v1969_v27, %v1392_v54 }
 0x270   : > { %2627 = vmatmul.mubr.bf16.gmra.mrb[168].mxu0 %v2296_v42  ;;  %5643 = vmatprep.mubr.bf16.mxu1 %v6834_v35 }
 0x271   : > { %2636 = vmatprep.mubr.bf16.mxu0 %v6664_v49  ;;  %v2155_v56 = vsel %vm2137_vm11, %v2153_v47, %v2154_v50  ;;  %v2157_v60 = vsel %vm2137_vm11, %v2154_v50, %v2156_v18 }
 0x272   : > { %v1405_v51 = vpop.f32.mrb[24].mxu1  ;;  %v6894_v61 = vadd.f32 %v2155_v56, %v6851_v4  ;;  %v6897_v5 = vadd.f32 %v2157_v60, %v6861_v52  ;;  %v5975_v4 = vld [vmem:[#allocation8 + $0x218] ss:$12 sps:$4 sm:$0xff]  }
 0x273   : > { %v1407_v2 = vpop.f32.mrb[25].mxu1  ;;  %v5561_v54 = vpop.f32.mrb[64].mxu0  ;;  %5699 = vmatprep.subr.bf16.mxu0 %v5975_v4 }
 0x274   : > { %v1409_v63 = vpop.f32.mrb[26].mxu1  ;;  %v1685_v0 = vpop.f32.mrb[65].mxu0  ;;  %v1970_v3 = vrot.slane %v1407_v2, 1  ;;  %v2161_v8 = vrot.slane %v5561_v54, 2  ;;  %5700 = vmatpush3.bf16.msra.mxu0 %v5975_v4 }
 0x275   : > { %v1411_v35 = vpop.f32.mrb[27].mxu1  ;;  %v5562_v1 = vpop.f32.mrb[66].mxu0  ;;  %v2158_v10 = vrot.slane %v1685_v0, 2  ;;  %5701 = vmatprep.subr.bf16.mxu0 %v5976_v31 }
 0x276   : > { %v1971_v6 = vrot.slane %v1411_v35, 1  ;;  %v1688_v7 = vpop.f32.mrb[67].mxu0 }
 0x277   : > { %v2159_v13 = vrot.slane %v1688_v7, 2  ;;  %5644 = vmatmul.mubr.bf16.gmra.mrb[132].mxu1 %v6699_v15 }
 0x278   : > { %2637 = vmatmul.mubr.bf16.gmra.mrb[172].mxu0 %v6718_v22  ;;  %5647 = vmatprep.mubr.bf16.mxu1 %v6602_v59  ;;  %v1972_v52 = vsel %vm1944_vm4, %v1970_v3, %v1971_v6 }
 0x279   : > { %2643 = vmatprep.mubr.bf16.mxu0 %v6664_v49  ;;  %v2160_v11 = vsel %vm2137_vm11, %v2158_v10, %v2159_v13  ;;  %v2162_v41 = vsel %vm2137_vm11, %v2159_v13, %v2161_v8  ;;  %v2067_v46 = vadd.f32 %v1972_v52, %v1405_v51  ;;  %5702 = vmatpush3.bf16.msra.mxu0 %v5976_v31 }
 0x27a   : > { %v1415_v17 = vpop.f32.mrb[28].mxu1  ;;  %v6906_v40 = vadd.f32 %v2160_v11, %v2065_v20  ;;  %v6908_v21 = vadd.f32 %v2162_v41, %v2066_v36  ;;  %v2298_v20 = vld [vmem:[#allocation2 + $0x90] sm:$0xff] }
 0x27b   : > { %v1416_v15 = vpop.f32.mrb[29].mxu1  ;;  %v5565_v9 = vpop.f32.mrb[68].mxu0 }
 0x27c   : > { %v1973_v59 = vrot.slane %v1416_v15, 1  ;;  %v1418_v24 = vpop.f32.mrb[30].mxu1  ;;  %v1700_v30 = vpop.f32.mrb[69].mxu0  ;;  %v2166_v27 = vrot.slane %v5565_v9, 2 }
 0x27d   : > { %v1419_v25 = vpop.f32.mrb[31].mxu1  ;;  %v5566_v39 = vpop.f32.mrb[70].mxu0  ;;  %v2163_v18 = vrot.slane %v1700_v30, 2 }
 0x27e   : > { %v1703_v43 = vpop.f32.mrb[71].mxu0  ;;  %v1974_v19 = vsel %vm1944_vm4, %v1971_v6, %v1973_v59 }
 0x27f   : > { %v2164_v47 = vrot.slane %v1703_v43, 2  ;;  %5648 = vmatmul.mubr.bf16.gmra.mrb[136].mxu1 %v6704_v16  ;;  %v2068_v50 = vadd.f32 %v1974_v19, %v1409_v63  ;;  %v6929_v19 = vld [vmem:[#allocation2 + $0xa0] sm:$0xff] }
 0x280   : > { %2644 = vmatmul.mubr.bf16.gmra.mrb[176].mxu0 %v2298_v20  ;;  %5651 = vmatprep.mubr.bf16.mxu1 %v2296_v42 }
 0x281   : > { %2653 = vmatprep.mubr.bf16.mxu0 %v6664_v49  ;;  %v2165_v55 = vsel %vm2137_vm11, %v2163_v18, %v2164_v47  ;;  %v2167_v36 = vsel %vm2137_vm11, %v2164_v47, %v2166_v27 }
 0x282   : > { %v1422_v56 = vpop.f32.mrb[32].mxu1  ;;  %v6915_v60 = vadd.f32 %v2165_v55, %v2067_v46  ;;  %v6917_v51 = vadd.f32 %v2167_v36, %v2068_v50 }
 0x283   : > { %v1424_v2 = vpop.f32.mrb[33].mxu1  ;;  %v5569_v54 = vpop.f32.mrb[72].mxu0 }
 0x284   : > { %v1426_v0 = vpop.f32.mrb[34].mxu1  ;;  %v1715_v16 = vpop.f32.mrb[73].mxu0  ;;  %v1975_v63 = vrot.slane %v1424_v2, 1  ;;  %v2171_v6 = vrot.slane %v5569_v54, 2 }
 0x285   : > { %v1428_v35 = vpop.f32.mrb[35].mxu1  ;;  %v5570_v1 = vpop.f32.mrb[74].mxu0  ;;  %v2168_v7 = vrot.slane %v1715_v16, 2 }
 0x286   : > { %v1976_v3 = vrot.slane %v1428_v35, 1  ;;  %v1718_v42 = vpop.f32.mrb[75].mxu0 }
 0x287   : > { %v2169_v8 = vrot.slane %v1718_v42, 2  ;;  %5652 = vmatmul.mubr.bf16.gmra.mrb[140].mxu1 %v6718_v22  ;;  %v6939_v42 = vld [vmem:[#allocation2 + $0xb0] sm:$0xff] }
 0x288   : > { %2654 = vmatmul.mubr.bf16.gmra.mrb[180].mxu0 %v6724_v28  ;;  %5655 = vmatprep.mubr.bf16.mxu1 %v2298_v20  ;;  %v1977_v10 = vsel %vm1944_vm4, %v1975_v63, %v1976_v3 }
 0x289   : > { %2660 = vmatprep.mubr.bf16.mxu0 %v6664_v49  ;;  %v2069_v13 = vadd.f32 %v1977_v10, %v1422_v56  ;;  %v2170_v4 = vsel %vm2137_vm11, %v2168_v7, %v2169_v8  ;;  %v2172_v52 = vsel %vm2137_vm11, %v2169_v8, %v2171_v6 }
 0x28a   : > { %v1432_v11 = vpop.f32.mrb[36].mxu1 }
 0x28b   : > { %v1433_v41 = vpop.f32.mrb[37].mxu1  ;;  %v5573_v46 = vpop.f32.mrb[76].mxu0  ;;  %v6925_v17 = vadd.f32 %v2170_v4, %v2069_v13 }
 0x28c   : > { %v1978_v15 = vrot.slane %v1433_v41, 1  ;;  %v1435_v9 = vpop.f32.mrb[38].mxu1  ;;  %v1730_v22 = vpop.f32.mrb[77].mxu0  ;;  %v2176_v59 = vrot.slane %v5573_v46, 2 }
 0x28d   : > { %v2173_v24 = vrot.slane %v1730_v22, 2  ;;  %v1436_v30 = vpop.f32.mrb[39].mxu1  ;;  %v5574_v31 = vpop.f32.mrb[78].mxu0 }
 0x28e   : > { %v1733_v25 = vpop.f32.mrb[79].mxu0  ;;  %v1979_v39 = vsel %vm1944_vm4, %v1976_v3, %v1978_v15  ;;  %v2304_v31 = vld [vmem:[#allocation2 + $0xc0] sm:$0xff] }
 0x28f   : > { %v2174_v43 = vrot.slane %v1733_v25, 2  ;;  %5656 = vmatmul.mubr.bf16.gmra.mrb[144].mxu1 %v6724_v28  ;;  %v2070_v27 = vadd.f32 %v1979_v39, %v1426_v0 }
 0x290   : > { %2661 = vmatmul.mubr.bf16.gmra.mrb[184].mxu0 %v6929_v19  ;;  %5659 = vmatprep.mubr.bf16.mxu1 %v6929_v19 }
 0x291   : > { %2670 = vmatprep.mubr.bf16.mxu0 %v6664_v49  ;;  %v6934_v18 = vadd.f32 %v2172_v52, %v2070_v27  ;;  %v2175_v47 = vsel %vm2137_vm11, %v2173_v24, %v2174_v43  ;;  %v2177_v20 = vsel %vm2137_vm11, %v2174_v43, %v2176_v59 }
 0x292   : > { %v1439_v50 = vpop.f32.mrb[40].mxu1 }
 0x293   : > { %v1441_v55 = vpop.f32.mrb[41].mxu1  ;;  %v5577_v36 = vpop.f32.mrb[80].mxu0 }
 0x294   : > { %v1443_v56 = vpop.f32.mrb[42].mxu1  ;;  %v1745_v28 = vpop.f32.mrb[81].mxu0  ;;  %v1980_v0 = vrot.slane %v1441_v55, 1  ;;  %v2181_v1 = vrot.slane %v5577_v36, 2 }
 0x295   : > { %v1445_v2 = vpop.f32.mrb[43].mxu1  ;;  %v5578_v54 = vpop.f32.mrb[82].mxu0  ;;  %v2178_v63 = vrot.slane %v1745_v28, 2 }
 0x296   : > { %v1981_v16 = vrot.slane %v1445_v2, 1  ;;  %v1748_v35 = vpop.f32.mrb[83].mxu0 }
 0x297   : > { %v2179_v3 = vrot.slane %v1748_v35, 2  ;;  %5660 = vmatmul.mubr.bf16.gmra.mrb[148].mxu1 %v6730_v29 }
 0x298   : > { %2671 = vmatmul.mubr.bf16.gmra.mrb[188].mxu0 %v6730_v29  ;;  %5663 = vmatprep.mubr.bf16.mxu1 %v6939_v42  ;;  %v1982_v6 = vsel %vm1944_vm4, %v1980_v0, %v1981_v16 }
 0x299   : > { %2677 = vmatprep.mubr.bf16.mxu0 %v6664_v49  ;;  %v2071_v7 = vadd.f32 %v1982_v6, %v1439_v50  ;;  %v2180_v8 = vsel %vm2137_vm11, %v2178_v63, %v2179_v3  ;;  %v6947_v10 = vsel %vm2137_vm11, %v2179_v3, %v2181_v1 }
 0x29a   : > { %v1449_v13 = vpop.f32.mrb[44].mxu1 }
 0x29b   : > { %v1450_v4 = vpop.f32.mrb[45].mxu1  ;;  %v5581_v52 = vpop.f32.mrb[84].mxu0  ;;  %v6949_v11 = vadd.f32 %v2175_v47, %v2071_v7 }
 0x29c   : > { %v1983_v41 = vrot.slane %v1450_v4, 1  ;;  %v1452_v46 = vpop.f32.mrb[46].mxu1  ;;  %v1760_v29 = vpop.f32.mrb[85].mxu0  ;;  %v2186_v9 = vrot.slane %v5581_v52, 2 }
 0x29d   : > { %v1453_v15 = vpop.f32.mrb[47].mxu1  ;;  %v2183_v22 = vrot.slane %v1760_v29, 2  ;;  %v5582_v59 = vpop.f32.mrb[86].mxu0 }
 0x29e   : > { %v1763_v24 = vpop.f32.mrb[87].mxu0  ;;  %v1984_v30 = vsel %vm1944_vm4, %v1981_v16, %v1983_v41 }
 0x29f   : > { %5664 = vmatmul.mubr.bf16.gmra.mrb[152].mxu1 %v6736_v33  ;;  %v2184_v25 = vrot.slane %v1763_v24, 2  ;;  %v2072_v39 = vadd.f32 %v1984_v30, %v1443_v56 }
 0x2a0   : > { %2678 = vmatmul.mubr.bf16.gmra.mrb[192].mxu0 %v6939_v42  ;;  %5667 = vmatprep.mubr.bf16.mxu1 %v2304_v31 }
 0x2a1   : > { %2687 = vmatprep.mubr.bf16.mxu0 %v6664_v49  ;;  %v6955_v43 = vadd.f32 %v2177_v20, %v2072_v39  ;;  %v6958_v27 = vsel %vm2137_vm11, %v2183_v22, %v2184_v25  ;;  %v6961_v47 = vsel %vm2137_vm11, %v2184_v25, %v2186_v9  ;;  %v6978_v25 = vld [vmem:[#allocation2 + $0xe0] sm:$0xff] }
 0x2a2   : > { %v1456_v50 = vpop.f32.mrb[48].mxu1 }
 0x2a3   : > { %v1458_v55 = vpop.f32.mrb[49].mxu1  ;;  %v5585_v36 = vpop.f32.mrb[88].mxu0 }
 0x2a4   : > { %v1460_v28 = vpop.f32.mrb[50].mxu1  ;;  %v1775_v2 = vpop.f32.mrb[89].mxu0  ;;  %v2191_v56 = vrot.slane %v5585_v36, 2  ;;  %v1985_v35 = vrot.slane %v1458_v55, 1 }
 0x2a5   : > { %v1462_v54 = vpop.f32.mrb[51].mxu1  ;;  %v2188_v0 = vrot.slane %v1775_v2, 2  ;;  %v5586_v16 = vpop.f32.mrb[90].mxu0 }
 0x2a6   : > { %v1986_v1 = vrot.slane %v1462_v54, 1  ;;  %v1778_v63 = vpop.f32.mrb[91].mxu0 }
 0x2a7   : > { %5668 = vmatmul.mubr.bf16.gmra.mrb[156].mxu1 %v6742_v12  ;;  %v2189_v20 = vrot.slane %v1778_v63, 2 }
 0x2a8   : > { %v1987_v3 = vsel %vm1944_vm4, %v1985_v35, %v1986_v1  ;;  %2688 = vmatmul.mubr.bf16.gmra.mrb[196].mxu0 %v6736_v33  ;;  %5671 = vmatprep.mubr.bf16.mxu1 %v6678_v57 }
 0x2a9   : > { %2694 = vmatprep.mubr.bf16.mxu0 %v6664_v49  ;;  %v2073_v6 = vadd.f32 %v1987_v3, %v1456_v50  ;;  %v6969_v7 = vsel %vm2137_vm11, %v2188_v0, %v2189_v20  ;;  %v6972_v13 = vsel %vm2137_vm11, %v2189_v20, %v2191_v56 }
 0x2aa   : > { %v1466_v4 = vpop.f32.mrb[52].mxu1 }
 0x2ab   : > { %v1467_v52 = vpop.f32.mrb[53].mxu1  ;;  %v5589_v41 = vpop.f32.mrb[92].mxu0  ;;  %v6974_v46 = vadd.f32 %v2180_v8, %v2073_v6  ;;  %v6995_v6 = vld [vmem:[#allocation2] sm:$0xff] }
 0x2ac   : > { %v1988_v29 = vrot.slane %v1467_v52, 1  ;;  %v1469_v15 = vpop.f32.mrb[54].mxu1  ;;  %v1790_v9 = vpop.f32.mrb[93].mxu0  ;;  %v2196_v22 = vrot.slane %v5589_v41, 2 }
 0x2ad   : > { %v1470_v33 = vpop.f32.mrb[55].mxu1  ;;  %v2193_v57 = vrot.slane %v1790_v9, 2  ;;  %v5590_v59 = vpop.f32.mrb[94].mxu0 }
 0x2ae   : > { %v1989_v24 = vsel %vm1944_vm4, %v1986_v1, %v1988_v29  ;;  %v1793_v30 = vpop.f32.mrb[95].mxu0 }
 0x2af   : > { %5672 = vmatmul.mubr.bf16.gmra.mrb[160].mxu1 %v6748_v53  ;;  %v2194_v39 = vrot.slane %v1793_v30, 2  ;;  %v2074_v50 = vadd.f32 %v1989_v24, %v1460_v28 }
 0x2b0   : > { %2695 = vmatmul.mubr.bf16.gmra.mrb[200].mxu0 %v2304_v31  ;;  %5675 = vmatprep.mubr.bf16.mxu1 %v6978_v25 }
 0x2b1   : > { %2704 = vmatprep.mubr.bf16.mxu0 %v6664_v49  ;;  %v6983_v8 = vadd.f32 %v6947_v10, %v2074_v50  ;;  %v6986_v55 = vsel %vm2137_vm11, %v2193_v57, %v2194_v39  ;;  %v6989_v36 = vsel %vm2137_vm11, %v2194_v39, %v2196_v22 }
 0x2b2   : > { %v1473_v2 = vpop.f32.mrb[56].mxu1 }
 0x2b3   : > { %v1475_v54 = vpop.f32.mrb[57].mxu1  ;;  %v5593_v56 = vpop.f32.mrb[96].mxu0 }
 0x2b4   : > { %v1477_v0 = vpop.f32.mrb[58].mxu1  ;;  %v1805_v16 = vpop.f32.mrb[97].mxu0  ;;  %v2201_v31 = vrot.slane %v5593_v56, 2  ;;  %v1990_v63 = vrot.slane %v1475_v54, 1  ;;  %v5979_v54 = vld [vmem:[#allocation2 + $0xd0] sm:$0xff]  ;;  %v7009_v56 = vld [vmem:[#allocation2 + $0x100] sm:$0xff] }
 0x2b5   : > { %v1479_v28 = vpop.f32.mrb[59].mxu1  ;;  %v2198_v35 = vrot.slane %v1805_v16, 2  ;;  %v5594_v1 = vpop.f32.mrb[98].mxu0 }
 0x2b6   : > { %v1991_v49 = vrot.slane %v1479_v28, 1  ;;  %v1808_v20 = vpop.f32.mrb[99].mxu0 }
 0x2b7   : > { %5676 = vmatmul.mubr.bf16.gmra.mrb[164].mxu1 %v6754_v34  ;;  %v2199_v10 = vrot.slane %v1808_v20, 2 }
 0x2b8   : > { %v1992_v3 = vsel %vm1944_vm4, %v1990_v63, %v1991_v49  ;;  %2705 = vmatmul.mubr.bf16.gmra.mrb[204].mxu0 %v6742_v12  ;;  %5679 = vmatprep.mubr.bf16.mxu1 %v6695_v14 }
 0x2b9   : > { %2711 = vmatprep.mubr.bf16.mxu0 %v6995_v6  ;;  %v2075_v4 = vadd.f32 %v1992_v3, %v1473_v2  ;;  %v6999_v52 = vsel %vm2137_vm11, %v2198_v35, %v2199_v10  ;;  %v7002_v41 = vsel %vm2137_vm11, %v2199_v10, %v2201_v31 }
 0x2ba   : > { %v1483_v29 = vpop.f32.mrb[60].mxu1 }
 0x2bb   : > { %v1484_v34 = vpop.f32.mrb[61].mxu1  ;;  %v5597_v15 = vpop.f32.mrb[100].mxu0  ;;  %v7005_v9 = vadd.f32 %v6958_v27, %v2075_v4  ;;  %v7022_v29 = vld [vmem:[#allocation2 + $0x108] sm:$0xff] }
 0x2bc   : > { %v1993_v12 = vrot.slane %v1484_v34, 1  ;;  %v1486_v33 = vpop.f32.mrb[62].mxu1  ;;  %v1820_v14 = vpop.f32.mrb[101].mxu0  ;;  %v2206_v57 = vrot.slane %v5597_v15, 2 }
 0x2bd   : > { %v1487_v22 = vpop.f32.mrb[63].mxu1  ;;  %v2203_v59 = vrot.slane %v1820_v14, 2  ;;  %v5598_v24 = vpop.f32.mrb[102].mxu0 }
 0x2be   : > { %v1994_v30 = vsel %vm1944_vm4, %v1991_v49, %v1993_v12  ;;  %v1823_v39 = vpop.f32.mrb[103].mxu0 }
 0x2bf   : > { %5680 = vmatmul.mubr.bf16.gmra.mrb[168].mxu1 %v6760_v37  ;;  %v2204_v50 = vrot.slane %v1823_v39, 2  ;;  %v2076_v2 = vadd.f32 %v1994_v30, %v1477_v0 }
 0x2c0   : > { %2712 = vmatmul.mubr.bf16.gmra.mrb[208].mxu0 %v5979_v54  ;;  %5683 = vmatprep.mubr.bf16.mxu1 %v7009_v56 }
 0x2c1   : > { %2721 = vmatprep.mubr.bf16.mxu0 %v6995_v6  ;;  %v7014_v27 = vadd.f32 %v6961_v47, %v2076_v2  ;;  %v7017_v16 = vsel %vm2137_vm11, %v2203_v59, %v2204_v50  ;;  %v7020_v28 = vsel %vm2137_vm11, %v2204_v50, %v2206_v57 }
 0x2c2   : > { %v1490_v37 = vpop.f32.mrb[64].mxu1 }
 0x2c3   : > { %v1492_v31 = vpop.f32.mrb[65].mxu1  ;;  %v5601_v0 = vpop.f32.mrb[104].mxu0 }
 0x2c4   : > { %v1494_v35 = vpop.f32.mrb[66].mxu1  ;;  %v1835_v1 = vpop.f32.mrb[105].mxu0  ;;  %v2211_v49 = vrot.slane %v5601_v0, 2  ;;  %v1995_v3 = vrot.slane %v1492_v31, 1 }
 0x2c5   : > { %v1496_v63 = vpop.f32.mrb[67].mxu1  ;;  %v2208_v20 = vrot.slane %v1835_v1, 2  ;;  %v5602_v10 = vpop.f32.mrb[106].mxu0 }
 0x2c6   : > { %v1996_v4 = vrot.slane %v1496_v63, 1  ;;  %v1838_v47 = vpop.f32.mrb[107].mxu0 }
 0x2c7   : > { %5684 = vmatmul.mubr.bf16.gmra.mrb[172].mxu1 %v7022_v29  ;;  %v2209_v34 = vrot.slane %v1838_v47, 2 }
 0x2c8   : > { %v1997_v15 = vsel %vm1944_vm4, %v1995_v3, %v1996_v4  ;;  %2722 = vmatmul.mubr.bf16.gmra.mrb[212].mxu0 %v6748_v53  ;;  %3695 = vmatprep.mubr.bf16.mxu1 %v6995_v6 }
 0x2c9   : > { %2728 = vmatprep.mubr.bf16.mxu0 %v6995_v6  ;;  %v2077_v12 = vadd.f32 %v1997_v15, %v1490_v37  ;;  %v7030_v33 = vsel %vm2137_vm11, %v2208_v20, %v2209_v34  ;;  %v7033_v14 = vsel %vm2137_vm11, %v2209_v34, %v2211_v49 }
 0x2ca   : > { %v1500_v22 = vpop.f32.mrb[68].mxu1 }
 0x2cb   : > { %v1501_v57 = vpop.f32.mrb[69].mxu1  ;;  %v5605_v59 = vpop.f32.mrb[108].mxu0  ;;  %v7036_v24 = vadd.f32 %v6969_v7, %v2077_v12 }
 0x2cc   : > { %v1998_v30 = vrot.slane %v1501_v57, 1  ;;  %v1503_v39 = vpop.f32.mrb[70].mxu1  ;;  %v1850_v53 = vpop.f32.mrb[109].mxu0  ;;  %v2216_v2 = vrot.slane %v5605_v59, 2 }
 0x2cd   : > { %v1504_v50 = vpop.f32.mrb[71].mxu1  ;;  %v2213_v54 = vrot.slane %v1850_v53, 2  ;;  %v5606_v31 = vpop.f32.mrb[110].mxu0  ;;  %v5981_v39 = vld [vmem:[#allocation2 + $0xe8] sm:$0xff] }
 0x2ce   : > { %v1999_v37 = vsel %vm1944_vm4, %v1996_v4, %v1998_v30  ;;  %v1853_v0 = vpop.f32.mrb[111].mxu0 }
 0x2cf   : > { %3696 = vmatmul.mubr.bf16.vlgmr.msra.gmra.mrb[176].mxu1 %v6787_v44  ;;  %v2214_v1 = vrot.slane %v1853_v0, 2  ;;  %v2078_v63 = vadd.f32 %v1999_v37, %v1494_v35 }
 0x2d0   : > { %2729 = vmatmul.mubr.bf16.gmra.mrb[216].mxu0 %v6978_v25  ;;  %3705 = vmatprep.mubr.bf16.mxu1 %v6995_v6 }
 0x2d1   : > { %2738 = vmatprep.mubr.bf16.mxu0 %v6995_v6  ;;  %v7044_v7 = vadd.f32 %v6972_v13, %v2078_v63  ;;  %v7047_v49 = vsel %vm2137_vm11, %v2213_v54, %v2214_v1  ;;  %v7050_v20 = vsel %vm2137_vm11, %v2214_v1, %v2216_v2 }
 0x2d2   : > { %v1507_v10 = vpop.f32.mrb[72].mxu1 }
 0x2d3   : > { %v1509_v3 = vpop.f32.mrb[73].mxu1  ;;  %v2509_v44 = vpop.f32.mrb[112].mxu0 }
 0x2d4   : > { %v3053_v35 = vadd.f32 %v2509_v44, %v6854_v26  ;;  %v1511_v4 = vpop.f32.mrb[74].mxu1  ;;  %v2511_v25 = vpop.f32.mrb[113].mxu0  ;;  %v2000_v15 = vrot.slane %v1509_v3, 1 }
 0x2d5   : > { %v1513_v47 = vpop.f32.mrb[75].mxu1  ;;  %v2513_v34 = vpop.f32.mrb[114].mxu0  ;;  %v3133_v57 = vrot.slane %v2511_v25, 1 }
 0x2d6   : > { %v2001_v12 = vrot.slane %v1513_v47, 1  ;;  %v3054_v13 = vadd.f32 %v2513_v34, %v6857_v58  ;;  %v2515_v22 = vpop.f32.mrb[115].mxu0 }
 0x2d7   : > { %v3134_v59 = vrot.slane %v2515_v22, 1  ;;  %3706 = vmatmul.mubr.bf16.gmra.mrb[180].mxu1 %v6793_v48 }
 0x2d8   : > { %v2002_v30 = vsel %vm1944_vm4, %v2000_v15, %v2001_v12  ;;  %2739 = vmatmul.mubr.bf16.gmra.mrb[220].mxu0 %v5981_v39  ;;  %3712 = vmatprep.mubr.bf16.mxu1 %v6995_v6 }
 0x2d9   : > { %v3135_v26 = vsel %vm1944_vm4, %v3133_v57, %v3134_v59  ;;  %2745 = vmatprep.mubr.bf16.mxu0 %v6995_v6  ;;  %v2079_v53 = vadd.f32 %v2002_v30, %v1507_v10 }
 0x2da   : > { %v1517_v50 = vpop.f32.mrb[76].mxu1  ;;  %v7059_v2 = vadd.f32 %v3135_v26, %v3053_v35  ;;  %v5982_v35 = vld [vmem:[#allocation2 + $0xf0] sm:$0xff] }
 0x2db   : > { %v1518_v58 = vpop.f32.mrb[77].mxu1  ;;  %v2519_v54 = vpop.f32.mrb[116].mxu0  ;;  %v7062_v31 = vadd.f32 %v6986_v55, %v2079_v53  ;;  %v7076_v50 = vld [vmem:[#allocation2 + $0x38] sm:$0xff] }
 0x2dc   : > { %v2003_v48 = vrot.slane %v1518_v58, 1  ;;  %v1520_v37 = vpop.f32.mrb[78].mxu1  ;;  %v2520_v0 = vpop.f32.mrb[117].mxu0 }
 0x2dd   : > { %v3136_v1 = vrot.slane %v2520_v0, 1  ;;  %v1521_v63 = vpop.f32.mrb[79].mxu1  ;;  %v2522_v3 = vpop.f32.mrb[118].mxu0 }
 0x2de   : > { %v2004_v44 = vsel %vm1944_vm4, %v2001_v12, %v2003_v48  ;;  %v2523_v25 = vpop.f32.mrb[119].mxu0  ;;  %v5983_v48 = vld [vmem:[#allocation2 + $0xf8] sm:$0xff] }
 0x2df   : > { %v3137_v47 = vsel %vm1944_vm4, %v3134_v59, %v3136_v1  ;;  %3713 = vmatmul.mubr.bf16.gmra.mrb[184].mxu1 %v6799_v45  ;;  %v2080_v10 = vadd.f32 %v2004_v44, %v1511_v4 }
 0x2e0   : > { %2746 = vmatmul.mubr.bf16.gmra.mrb[224].mxu0 %v5982_v35  ;;  %3722 = vmatprep.mubr.bf16.mxu1 %v6995_v6  ;;  %v7068_v55 = vadd.f32 %v3137_v47, %v3054_v13 }
 0x2e1   : > { %2755 = vmatprep.mubr.bf16.mxu0 %v6995_v6  ;;  %v7072_v34 = vadd.f32 %v6989_v36, %v2080_v10 }
 0x2e2   : > { %v1524_v15 = vpop.f32.mrb[80].mxu1 }
 0x2e3   : > { %v1526_v22 = vpop.f32.mrb[81].mxu1  ;;  %v2526_v12 = vpop.f32.mrb[120].mxu0 }
 0x2e4   : > { %v3055_v57 = vadd.f32 %v2526_v12, %v6869_v38  ;;  %v1528_v59 = vpop.f32.mrb[82].mxu1  ;;  %v2528_v30 = vpop.f32.mrb[121].mxu0  ;;  %v2005_v39 = vrot.slane %v1526_v22, 1 }
 0x2e5   : > { %v1530_v45 = vpop.f32.mrb[83].mxu1  ;;  %v2530_v4 = vpop.f32.mrb[122].mxu0  ;;  %v3138_v58 = vrot.slane %v2528_v30, 1 }
 0x2e6   : > { %v2006_v26 = vrot.slane %v1530_v45, 1  ;;  %v3056_v53 = vadd.f32 %v2530_v4, %v6872_v32  ;;  %v2532_v13 = vpop.f32.mrb[123].mxu0  ;;  %v7089_v45 = vld [vmem:[#allocation2 + $0x40] sm:$0xff] }
 0x2e7   : > { %v3139_v54 = vrot.slane %v2532_v13, 1  ;;  %3723 = vmatmul.mubr.bf16.gmra.mrb[188].mxu1 %v7076_v50 }
 0x2e8   : > { %v2007_v36 = vsel %vm1944_vm4, %v2005_v39, %v2006_v26  ;;  %2756 = vmatmul.mubr.bf16.gmra.mrb[228].mxu0 %v5983_v48  ;;  %3729 = vmatprep.mubr.bf16.mxu1 %v6995_v6 }
 0x2e9   : > { %v3140_v38 = vsel %vm1944_vm4, %v3138_v58, %v3139_v54  ;;  %2762 = vmatprep.mubr.bf16.mxu0 %v6995_v6  ;;  %v2081_v37 = vadd.f32 %v2007_v36, %v1524_v15 }
 0x2ea   : > { %v1534_v0 = vpop.f32.mrb[84].mxu1  ;;  %v7083_v32 = vadd.f32 %v3140_v38, %v3055_v57 }
 0x2eb   : > { %v1535_v1 = vpop.f32.mrb[85].mxu1  ;;  %v2536_v63 = vpop.f32.mrb[124].mxu0  ;;  %v7086_v3 = vadd.f32 %v6999_v52, %v2081_v37  ;;  %v7103_v0 = vld [vmem:[#allocation2 + $0x48] sm:$0xff] }
 0x2ec   : > { %v2008_v44 = vrot.slane %v1535_v1, 1  ;;  %v1537_v25 = vpop.f32.mrb[86].mxu1  ;;  %v2537_v47 = vpop.f32.mrb[125].mxu0 }
 0x2ed   : > { %v3141_v10 = vrot.slane %v2537_v47, 1  ;;  %v1538_v35 = vpop.f32.mrb[87].mxu1  ;;  %v2539_v22 = vpop.f32.mrb[126].mxu0 }
 0x2ee   : > { %v2009_v12 = vsel %vm1944_vm4, %v2006_v26, %v2008_v44  ;;  %v2540_v30 = vpop.f32.mrb[127].mxu0  ;;  %v5984_v44 = vld [vmem:[#allocation2 + $0x20] sm:$0xff] }
 0x2ef   : > { %v3142_v15 = vsel %vm1944_vm4, %v3139_v54, %v3141_v10  ;;  %3730 = vmatmul.mubr.bf16.gmra.mrb[192].mxu1 %v7089_v45  ;;  %v2082_v57 = vadd.f32 %v2009_v12, %v1528_v59 }
 0x2f0   : > { %2763 = vmatmul.mubr.bf16.gmra.mrb[232].mxu0 %v7009_v56  ;;  %3739 = vmatprep.mubr.bf16.mxu1 %v6995_v6  ;;  %v7095_v52 = vadd.f32 %v3142_v15, %v3056_v53 }
 0x2f1   : > { %2772 = vmatprep.mubr.bf16.mxu0 %v6995_v6  ;;  %v7099_v4 = vadd.f32 %v7002_v41, %v2082_v57 }
 0x2f2   : > { %v1541_v39 = vpop.f32.mrb[88].mxu1 }
 0x2f3   : > { %v1543_v26 = vpop.f32.mrb[89].mxu1  ;;  %v2543_v13 = vpop.f32.mrb[128].mxu0 }
 0x2f4   : > { %v3057_v58 = vadd.f32 %v2543_v13, %v6882_v23  ;;  %v1545_v54 = vpop.f32.mrb[90].mxu1  ;;  %v2545_v36 = vpop.f32.mrb[129].mxu0  ;;  %v2010_v38 = vrot.slane %v1543_v26, 1 }
 0x2f5   : > { %v1547_v48 = vpop.f32.mrb[91].mxu1  ;;  %v2547_v59 = vpop.f32.mrb[130].mxu0  ;;  %v3143_v1 = vrot.slane %v2545_v36, 1 }
 0x2f6   : > { %v2011_v56 = vrot.slane %v1547_v48, 1  ;;  %v3058_v37 = vadd.f32 %v2547_v59, %v6885_v62  ;;  %v2549_v53 = vpop.f32.mrb[131].mxu0  ;;  %v3476_v48 = vld [vmem:[#allocation2 + $0x50] sm:$0xff]  ;;  %v5985_v59 = vld [vmem:[#allocation2 + $0x28] sm:$0xff] }
 0x2f7   : > { %v3144_v63 = vrot.slane %v2549_v53, 1  ;;  %3740 = vmatmul.mubr.bf16.gmra.mrb[196].mxu1 %v7103_v0 }
 0x2f8   : > { %v2012_v41 = vsel %vm1944_vm4, %v2010_v38, %v2011_v56  ;;  %2773 = vmatmul.mubr.bf16.gmra.mrb[236].mxu0 %v7022_v29  ;;  %3746 = vmatprep.mubr.bf16.mxu1 %v6995_v6  ;;  %v5986_v38 = vld [vmem:[#allocation2 + $0x30] sm:$0xff] }
 0x2f9   : > { %v3145_v23 = vsel %vm1944_vm4, %v3143_v1, %v3144_v63  ;;  %5703 = vmatprep.mubr.bf16.mxu0 %v5984_v44  ;;  %v2083_v25 = vadd.f32 %v2012_v41, %v1541_v39 }
 0x2fa   : > { %v1551_v47 = vpop.f32.mrb[92].mxu1  ;;  %v7110_v62 = vadd.f32 %v3145_v23, %v3057_v58 }
 0x2fb   : > { %v1552_v10 = vpop.f32.mrb[93].mxu1  ;;  %v2553_v35 = vpop.f32.mrb[132].mxu0  ;;  %v7113_v22 = vadd.f32 %v7017_v16, %v2083_v25 }
 0x2fc   : > { %v2013_v12 = vrot.slane %v1552_v10, 1  ;;  %v1554_v30 = vpop.f32.mrb[94].mxu1  ;;  %v2554_v15 = vpop.f32.mrb[133].mxu0 }
 0x2fd   : > { %v3146_v57 = vrot.slane %v2554_v15, 1  ;;  %v1555_v29 = vpop.f32.mrb[95].mxu1  ;;  %v2556_v26 = vpop.f32.mrb[134].mxu0 }
 0x2fe   : > { %v2014_v13 = vsel %vm1944_vm4, %v2011_v56, %v2013_v12  ;;  %v2557_v36 = vpop.f32.mrb[135].mxu0  ;;  %v3477_v12 = vld [vmem:[#allocation2 + $0x58] sm:$0xff] }
 0x2ff   : > { %v3147_v39 = vsel %vm1944_vm4, %v3144_v63, %v3146_v57  ;;  %3747 = vmatmul.mubr.bf16.gmra.mrb[200].mxu1 %v3476_v48  ;;  %v2084_v58 = vadd.f32 %v2014_v13, %v1545_v54 }
 0x300   : > { %5704 = vmatmul.mubr.bf16.vlgmr.msra.gmra.mrb[240].mxu0 %v5985_v59  ;;  %3756 = vmatprep.mubr.bf16.mxu1 %v6995_v6  ;;  %v7118_v16 = vadd.f32 %v3147_v39, %v3058_v37 }
 0x301   : > { %5707 = vmatprep.mubr.bf16.mxu0 %v5986_v38  ;;  %v7121_v53 = vadd.f32 %v7020_v28, %v2084_v58 }
 0x302   : > { %v1558_v1 = vpop.f32.mrb[96].mxu1 }
 0x303   : > { %v1560_v41 = vpop.f32.mrb[97].mxu1  ;;  %v2560_v56 = vpop.f32.mrb[136].mxu0 }
 0x304   : > { %v3059_v23 = vadd.f32 %v2560_v56, %v6894_v61  ;;  %v1562_v44 = vpop.f32.mrb[98].mxu1  ;;  %v2562_v63 = vpop.f32.mrb[137].mxu0  ;;  %v2015_v47 = vrot.slane %v1560_v41, 1 }
 0x305   : > { %v1564_v25 = vpop.f32.mrb[99].mxu1  ;;  %v2564_v54 = vpop.f32.mrb[138].mxu0  ;;  %v3148_v30 = vrot.slane %v2562_v63, 1 }
 0x306   : > { %v2016_v10 = vrot.slane %v1564_v25, 1  ;;  %v3060_v35 = vadd.f32 %v2564_v54, %v6897_v5  ;;  %v2566_v37 = vpop.f32.mrb[139].mxu0  ;;  %v3478_v25 = vld [vmem:[#allocation2 + $0x60] sm:$0xff] }
 0x307   : > { %v3149_v15 = vrot.slane %v2566_v37, 1  ;;  %3757 = vmatmul.mubr.bf16.gmra.mrb[204].mxu1 %v3477_v12 }
 0x308   : > { %v2017_v28 = vsel %vm1944_vm4, %v2015_v47, %v2016_v10  ;;  %5708 = vmatmul.mubr.bf16.gmra.mrb[244].mxu0 %v7076_v50  ;;  %3763 = vmatprep.mubr.bf16.mxu1 %v6995_v6 }
 0x309   : > { %v3150_v61 = vsel %vm1944_vm4, %v3148_v30, %v3149_v15  ;;  %5711 = vmatprep.mubr.bf16.mxu0 %v7089_v45  ;;  %v2085_v57 = vadd.f32 %v2017_v28, %v1558_v1 }
 0x30a   : > { %v1568_v29 = vpop.f32.mrb[100].mxu1  ;;  %v7130_v26 = vadd.f32 %v3150_v61, %v3059_v23 }
 0x30b   : > { %v1569_v5 = vpop.f32.mrb[101].mxu1  ;;  %v2570_v13 = vpop.f32.mrb[140].mxu0  ;;  %v7133_v36 = vadd.f32 %v7030_v33, %v2085_v57 }
 0x30c   : > { %v2018_v39 = vrot.slane %v1569_v5, 1  ;;  %v1571_v58 = vpop.f32.mrb[102].mxu1  ;;  %v2571_v59 = vpop.f32.mrb[141].mxu0 }
 0x30d   : > { %v3151_v38 = vrot.slane %v2571_v59, 1  ;;  %v1572_v50 = vpop.f32.mrb[103].mxu1  ;;  %v2573_v41 = vpop.f32.mrb[142].mxu0 }
 0x30e   : > { %v2019_v56 = vsel %vm1944_vm4, %v2016_v10, %v2018_v39  ;;  %v2574_v63 = vpop.f32.mrb[143].mxu0 }
 0x30f   : > { %v3152_v45 = vsel %vm1944_vm4, %v3149_v15, %v3151_v38  ;;  %3764 = vmatmul.mubr.bf16.gmra.mrb[208].mxu1 %v3478_v25  ;;  %v2086_v1 = vadd.f32 %v2019_v56, %v1562_v44 }
 0x310   : > { %5712 = vmatmul.mubr.bf16.gmra.mrb[248].mxu0 %v7103_v0  ;;  %3773 = vmatprep.mubr.bf16.mxu1 %v6995_v6  ;;  %v7139_v33 = vadd.f32 %v3152_v45, %v3060_v35  ;;  %v3479_v35 = vld [vmem:[#allocation2 + $0x68] sm:$0xff] }
 0x311   : > { %5715 = vmatprep.mubr.bf16.mxu0 %v3476_v48  ;;  %v7142_v23 = vadd.f32 %v7033_v14, %v2086_v1 }
 0x312   : > { %v1575_v54 = vpop.f32.mrb[104].mxu1 }
 0x313   : > { %v1577_v47 = vpop.f32.mrb[105].mxu1  ;;  %v2577_v37 = vpop.f32.mrb[144].mxu0 }
 0x314   : > { %v3061_v10 = vadd.f32 %v2577_v37, %v6906_v40  ;;  %v1579_v30 = vpop.f32.mrb[106].mxu1  ;;  %v2579_v28 = vpop.f32.mrb[145].mxu0  ;;  %v2020_v44 = vrot.slane %v1577_v47, 1  ;;  %v3480_v37 = vld [vmem:[#allocation2 + $0x70] sm:$0xff] }
 0x315   : > { %v1581_v15 = vpop.f32.mrb[107].mxu1  ;;  %v2581_v61 = vpop.f32.mrb[146].mxu0  ;;  %v3153_v5 = vrot.slane %v2579_v28, 1 }
 0x316   : > { %v2021_v57 = vrot.slane %v1581_v15, 1  ;;  %v3062_v0 = vadd.f32 %v2581_v61, %v6908_v21  ;;  %v2583_v29 = vpop.f32.mrb[147].mxu0 }
 0x317   : > { %v3154_v48 = vrot.slane %v2583_v29, 1  ;;  %3774 = vmatmul.mubr.bf16.gmra.mrb[212].mxu1 %v3479_v35 }
 0x318   : > { %v2022_v14 = vsel %vm1944_vm4, %v2020_v44, %v2021_v57  ;;  %5716 = vmatmul.mubr.bf16.gmra.mrb[252].mxu0 %v3477_v12  ;;  %3780 = vmatprep.mubr.bf16.mxu1 %v6995_v6 }
 0x319   : > { %v3155_v40 = vsel %vm1944_vm4, %v3153_v5, %v3154_v48  ;;  %5719 = vmatprep.mubr.bf16.mxu0 %v3478_v25  ;;  %v2087_v13 = vadd.f32 %v2022_v14, %v1575_v54 }
 0x31a   : > { %v1585_v39 = vpop.f32.mrb[108].mxu1  ;;  %v7149_v58 = vadd.f32 %v3155_v40, %v3061_v10 }
 0x31b   : > { %v1586_v59 = vpop.f32.mrb[109].mxu1  ;;  %v2587_v38 = vpop.f32.mrb[148].mxu0  ;;  %v7152_v21 = vadd.f32 %v7047_v49, %v2087_v13  ;;  %v3481_v13 = vld [vmem:[#allocation2 + $0x78] sm:$0xff] }
 0x31c   : > { %v2023_v50 = vrot.slane %v1586_v59, 1  ;;  %v1588_v41 = vpop.f32.mrb[110].mxu1  ;;  %v2588_v56 = vpop.f32.mrb[149].mxu0 }
 0x31d   : > { %v3156_v63 = vrot.slane %v2588_v56, 1  ;;  %v1589_v45 = vpop.f32.mrb[111].mxu1  ;;  %v2590_v12 = vpop.f32.mrb[150].mxu0 }
 0x31e   : > { %v2024_v1 = vsel %vm1944_vm4, %v2021_v57, %v2023_v50  ;;  %v2591_v47 = vpop.f32.mrb[151].mxu0 }
 0x31f   : > { %v3157_v25 = vsel %vm1944_vm4, %v3154_v48, %v3156_v63  ;;  %3781 = vmatmul.mubr.bf16.gmra.mrb[216].mxu1 %v3480_v37  ;;  %v2088_v54 = vadd.f32 %v2024_v1, %v1579_v30 }
 0x320   : > { %5720 = vmatmul.mubr.bf16.gmra.mrb[0].mxu0 %v3479_v35  ;;  %3790 = vmatprep.mubr.bf16.mxu1 %v6995_v6  ;;  %v7157_v10 = vadd.f32 %v3157_v25, %v3062_v0 }
 0x321   : > { %5723 = vmatprep.mubr.bf16.mxu0 %v3480_v37  ;;  %v7160_v49 = vadd.f32 %v7050_v20, %v2088_v54  ;;  %v3482_v20 = vld [vmem:[#allocation2 + $0x80] sm:$0xff] }
 0x322   : > { %v5625_v28 = vpop.f32.mrb[112].mxu1 }
 0x323   : > { %v2594_v15 = vpop.f32.mrb[152].mxu0  ;;  %v2814_v61 = vpop.f32.mrb[113].mxu1  ;;  %v3328_v14 = vrot.slane %v5625_v28, 2 }
 0x324   : > { %v3063_v44 = vadd.f32 %v2594_v15, %v6915_v60  ;;  %v2596_v57 = vpop.f32.mrb[153].mxu0  ;;  %v5626_v29 = vpop.f32.mrb[114].mxu1  ;;  %v3325_v30 = vrot.slane %v2814_v61, 2 }
 0x325   : > { %v2598_v5 = vpop.f32.mrb[154].mxu0  ;;  %v2817_v48 = vpop.f32.mrb[115].mxu1  ;;  %v3158_v39 = vrot.slane %v2596_v57, 1  ;;  %v3483_v29 = vld [vmem:[#allocation2 + $0x88] sm:$0xff] }
 0x326   : > { %v3064_v35 = vadd.f32 %v2598_v5, %v6917_v51  ;;  %v3326_v40 = vrot.slane %v2817_v48, 2  ;;  %v2600_v0 = vpop.f32.mrb[155].mxu0 }
 0x327   : > { %v3159_v59 = vrot.slane %v2600_v0, 1  ;;  %3791 = vmatmul.mubr.bf16.gmra.mrb[220].mxu1 %v3481_v13 }
 0x328   : > { %5724 = vmatmul.mubr.bf16.gmra.mrb[4].mxu0 %v3481_v13  ;;  %3797 = vmatprep.mubr.bf16.mxu1 %v6995_v6  ;;  %v3327_v60 = vsel %vm2137_vm11, %v3325_v30, %v3326_v40  ;;  %v3329_v38 = vsel %vm2137_vm11, %v3326_v40, %v3328_v14 }
 0x329   : > { %v3160_v50 = vsel %vm1944_vm4, %v3158_v39, %v3159_v59  ;;  %5727 = vmatprep.mubr.bf16.mxu0 %v3482_v20  ;;  %v7169_v41 = vadd.f32 %v3327_v60, %v7059_v2  ;;  %v7172_v51 = vadd.f32 %v3329_v38, %v7068_v55  ;;  %v3484_v55 = vld [vmem:[#allocation2 + $0x90] sm:$0xff] }
 0x32a   : > { %v5629_v56 = vpop.f32.mrb[116].mxu1  ;;  %v7174_v63 = vadd.f32 %v3160_v50, %v3063_v44 }
 0x32b   : > { %v2604_v45 = vpop.f32.mrb[156].mxu0  ;;  %v2829_v12 = vpop.f32.mrb[117].mxu1  ;;  %v3333_v28 = vrot.slane %v5629_v56, 2 }
 0x32c   : > { %v2605_v1 = vpop.f32.mrb[157].mxu0  ;;  %v5630_v47 = vpop.f32.mrb[118].mxu1  ;;  %v3330_v15 = vrot.slane %v2829_v12, 2 }
 0x32d   : > { %v3161_v37 = vrot.slane %v2605_v1, 1  ;;  %v2607_v25 = vpop.f32.mrb[158].mxu0  ;;  %v2832_v54 = vpop.f32.mrb[119].mxu1 }
 0x32e   : > { %v3331_v61 = vrot.slane %v2832_v54, 2  ;;  %v2608_v57 = vpop.f32.mrb[159].mxu0 }
 0x32f   : > { %v3162_v2 = vsel %vm1944_vm4, %v3159_v59, %v3161_v37  ;;  %3798 = vmatmul.mubr.bf16.gmra.mrb[224].mxu1 %v3482_v20 }
 0x330   : > { %5728 = vmatmul.mubr.bf16.gmra.mrb[8].mxu0 %v3483_v29  ;;  %3807 = vmatprep.mubr.bf16.mxu1 %v6995_v6  ;;  %v3332_v44 = vsel %vm2137_vm11, %v3330_v15, %v3331_v61  ;;  %v3334_v5 = vsel %vm2137_vm11, %v3331_v61, %v3333_v28  ;;  %v7180_v48 = vadd.f32 %v3162_v2, %v3064_v35 }
 0x331   : > { %5731 = vmatprep.mubr.bf16.mxu0 %v3484_v55  ;;  %v7183_v14 = vadd.f32 %v3332_v44, %v7083_v32  ;;  %v7186_v30 = vadd.f32 %v3334_v5, %v7095_v52  ;;  %v3485_v52 = vld [vmem:[#allocation2 + $0x98] sm:$0xff] }
 0x332   : > { %v5633_v40 = vpop.f32.mrb[120].mxu1 }
 0x333   : > { %v2611_v0 = vpop.f32.mrb[160].mxu0  ;;  %v2844_v13 = vpop.f32.mrb[121].mxu1  ;;  %v3338_v50 = vrot.slane %v5633_v40, 2 }
 0x334   : > { %v3065_v39 = vadd.f32 %v2611_v0, %v6925_v17  ;;  %v2613_v59 = vpop.f32.mrb[161].mxu0  ;;  %v5634_v20 = vpop.f32.mrb[122].mxu1  ;;  %v3335_v56 = vrot.slane %v2844_v13, 2 }
 0x335   : > { %v2615_v60 = vpop.f32.mrb[162].mxu0  ;;  %v2847_v38 = vpop.f32.mrb[123].mxu1  ;;  %v3163_v32 = vrot.slane %v2613_v59, 1  ;;  %v7204_v59 = vld [vmem:[#allocation2 + $0xa8] sm:$0xff] }
 0x336   : > { %v3066_v35 = vadd.f32 %v2615_v60, %v6934_v18  ;;  %v3336_v45 = vrot.slane %v2847_v38, 2  ;;  %v2617_v12 = vpop.f32.mrb[163].mxu0 }
 0x337   : > { %v3164_v1 = vrot.slane %v2617_v12, 1  ;;  %3808 = vmatmul.mubr.bf16.gmra.mrb[228].mxu1 %v3483_v29 }
 0x338   : > { %5732 = vmatmul.mubr.bf16.gmra.mrb[12].mxu0 %v3485_v52  ;;  %3814 = vmatprep.mubr.bf16.mxu1 %v6995_v6  ;;  %v3337_v47 = vsel %vm2137_vm11, %v3335_v56, %v3336_v45  ;;  %v3339_v17 = vsel %vm2137_vm11, %v3336_v45, %v3338_v50 }
 0x339   : > { %v3165_v37 = vsel %vm1944_vm4, %v3163_v32, %v3164_v1  ;;  %5735 = vmatprep.mubr.bf16.mxu0 %v6929_v19  ;;  %v7196_v25 = vadd.f32 %v3337_v47, %v7110_v62  ;;  %v7199_v18 = vadd.f32 %v3339_v17, %v7118_v16 }
 0x33a   : > { %v5637_v54 = vpop.f32.mrb[124].mxu1  ;;  %v7201_v28 = vadd.f32 %v3165_v37, %v3065_v39 }
 0x33b   : > { %v2621_v15 = vpop.f32.mrb[164].mxu0  ;;  %v2859_v61 = vpop.f32.mrb[125].mxu1  ;;  %v3343_v40 = vrot.slane %v5637_v54, 2 }
 0x33c   : > { %v2622_v57 = vpop.f32.mrb[165].mxu0  ;;  %v5638_v2 = vpop.f32.mrb[126].mxu1  ;;  %v3340_v0 = vrot.slane %v2859_v61, 2  ;;  %v7224_v61 = vld [vmem:[#allocation2 + $0xc0] sm:$0xff] }
 0x33d   : > { %v3166_v29 = vrot.slane %v2622_v57, 1  ;;  %v2624_v44 = vpop.f32.mrb[166].mxu0  ;;  %v2862_v5 = vpop.f32.mrb[127].mxu1 }
 0x33e   : > { %v3341_v13 = vrot.slane %v2862_v5, 2  ;;  %v2625_v19 = vpop.f32.mrb[167].mxu0 }
 0x33f   : > { %v3167_v62 = vsel %vm1944_vm4, %v3164_v1, %v3166_v29  ;;  %3815 = vmatmul.mubr.bf16.gmra.mrb[232].mxu1 %v3484_v55 }
 0x340   : > { %5736 = vmatmul.mubr.bf16.gmra.mrb[16].mxu0 %v7204_v59  ;;  %3824 = vmatprep.mubr.bf16.mxu1 %v6995_v6  ;;  %v3342_v16 = vsel %vm2137_vm11, %v3340_v0, %v3341_v13  ;;  %v3344_v39 = vsel %vm2137_vm11, %v3341_v13, %v3343_v40  ;;  %v7210_v20 = vadd.f32 %v3167_v62, %v3066_v35 }
 0x341   : > { %5739 = vmatprep.mubr.bf16.mxu0 %v6939_v42  ;;  %v7214_v60 = vadd.f32 %v3342_v16, %v7130_v26  ;;  %v7217_v38 = vadd.f32 %v3344_v39, %v7139_v33  ;;  %v7221_v33 = vld [vmem:[#allocation2 + $0xb8] sm:$0xff] }
 0x342   : > { %v5641_v55 = vpop.f32.mrb[128].mxu1 }
 0x343   : > { %v2628_v50 = vpop.f32.mrb[168].mxu0  ;;  %v2874_v56 = vpop.f32.mrb[129].mxu1  ;;  %v3348_v17 = vrot.slane %v5641_v55, 2 }
 0x344   : > { %v3067_v45 = vadd.f32 %v2628_v50, %v6949_v11  ;;  %v2630_v12 = vpop.f32.mrb[169].mxu0  ;;  %v5642_v32 = vpop.f32.mrb[130].mxu1  ;;  %v3345_v35 = vrot.slane %v2874_v56, 2 }
 0x345   : > { %v2632_v1 = vpop.f32.mrb[170].mxu0  ;;  %v2877_v47 = vpop.f32.mrb[131].mxu1  ;;  %v3168_v26 = vrot.slane %v2630_v12, 1  ;;  %v5987_v12 = vld [vmem:[#allocation2 + $0xa0] sm:$0xff] }
 0x346   : > { %v3068_v37 = vadd.f32 %v2632_v1, %v6955_v43  ;;  %v3346_v42 = vrot.slane %v2877_v47, 2  ;;  %v2634_v54 = vpop.f32.mrb[171].mxu0 }
 0x347   : > { %v3169_v15 = vrot.slane %v2634_v54, 1  ;;  %3825 = vmatmul.mubr.bf16.gmra.mrb[236].mxu1 %v3485_v52 }
 0x348   : > { %5740 = vmatmul.mubr.bf16.gmra.mrb[20].mxu0 %v7221_v33  ;;  %3831 = vmatprep.mubr.bf16.mxu1 %v6995_v6  ;;  %v3347_v11 = vsel %vm2137_vm11, %v3345_v35, %v3346_v42  ;;  %v3349_v57 = vsel %vm2137_vm11, %v3346_v42, %v3348_v17 }
 0x349   : > { %v3170_v2 = vsel %vm1944_vm4, %v3168_v26, %v3169_v15  ;;  %5743 = vmatprep.mubr.bf16.mxu0 %v7224_v61  ;;  %v7232_v43 = vadd.f32 %v3347_v11, %v7149_v58  ;;  %v7235_v52 = vadd.f32 %v3349_v57, %v7157_v10  ;;  %v7240_v10 = vld [vmem:[#allocation2 + $0xc8] sm:$0xff] }
 0x34a   : > { %v5645_v29 = vpop.f32.mrb[132].mxu1  ;;  %v7237_v44 = vadd.f32 %v3170_v2, %v3067_v45  ;;  %v7243_v45 = vld [vmem:[#allocation2 + $0xd0] sm:$0xff] }
 0x34b   : > { %v2638_v5 = vpop.f32.mrb[172].mxu0  ;;  %v2889_v40 = vpop.f32.mrb[133].mxu1  ;;  %v3353_v39 = vrot.slane %v5645_v29, 2 }
 0x34c   : > { %v2639_v0 = vpop.f32.mrb[173].mxu0  ;;  %v5646_v13 = vpop.f32.mrb[134].mxu1  ;;  %v3350_v55 = vrot.slane %v2889_v40, 2 }
 0x34d   : > { %v3171_v19 = vrot.slane %v2639_v0, 1  ;;  %v2641_v62 = vpop.f32.mrb[174].mxu0  ;;  %v2892_v16 = vpop.f32.mrb[135].mxu1 }
 0x34e   : > { %v3351_v50 = vrot.slane %v2892_v16, 2  ;;  %v2642_v56 = vpop.f32.mrb[175].mxu0  ;;  %v7261_v62 = vld [vmem:[#allocation2 + $0xe0] sm:$0xff] }
 0x34f   : > { %v3172_v58 = vsel %vm1944_vm4, %v3169_v15, %v3171_v19  ;;  %3832 = vmatmul.mubr.bf16.gmra.mrb[240].mxu1 %v5987_v12 }
 0x350   : > { %5744 = vmatmul.mubr.bf16.gmra.mrb[24].mxu0 %v7240_v10  ;;  %3841 = vmatprep.mubr.bf16.mxu1 %v6995_v6  ;;  %v3352_v32 = vsel %vm2137_vm11, %v3350_v55, %v3351_v50  ;;  %v3354_v1 = vsel %vm2137_vm11, %v3351_v50, %v3353_v39  ;;  %v3260_v47 = vadd.f32 %v3172_v58, %v3068_v37 }
 0x351   : > { %5747 = vmatprep.mubr.bf16.mxu0 %v7243_v45  ;;  %v7250_v17 = vadd.f32 %v3352_v32, %v7174_v63  ;;  %v7253_v35 = vadd.f32 %v3354_v1, %v7180_v48  ;;  %v7258_v48 = vld [vmem:[#allocation2 + $0xd8] sm:$0xff] }
 0x352   : > { %v5649_v42 = vpop.f32.mrb[136].mxu1 }
 0x353   : > { %v2645_v54 = vpop.f32.mrb[176].mxu0  ;;  %v2904_v26 = vpop.f32.mrb[137].mxu1  ;;  %v3358_v5 = vrot.slane %v5649_v42, 2 }
 0x354   : > { %v3069_v15 = vadd.f32 %v2645_v54, %v6974_v46  ;;  %v2647_v11 = vpop.f32.mrb[177].mxu0  ;;  %v5650_v57 = vpop.f32.mrb[138].mxu1  ;;  %v3355_v40 = vrot.slane %v2904_v26, 2 }
 0x355   : > { %v2649_v2 = vpop.f32.mrb[178].mxu0  ;;  %v2907_v29 = vpop.f32.mrb[139].mxu1  ;;  %v3173_v63 = vrot.slane %v2647_v11, 1 }
 0x356   : > { %v3070_v37 = vadd.f32 %v2649_v2, %v6983_v8  ;;  %v3356_v0 = vrot.slane %v2907_v29, 2  ;;  %v2651_v13 = vpop.f32.mrb[179].mxu0 }
 0x357   : > { %v3174_v19 = vrot.slane %v2651_v13, 1  ;;  %3842 = vmatmul.mubr.bf16.gmra.mrb[244].mxu1 %v7204_v59 }
 0x358   : > { %5748 = vmatmul.mubr.bf16.gmra.mrb[28].mxu0 %v7258_v48  ;;  %3848 = vmatprep.mubr.bf16.mxu1 %v6995_v6  ;;  %v3357_v46 = vsel %vm2137_vm11, %v3355_v40, %v3356_v0  ;;  %v3359_v16 = vsel %vm2137_vm11, %v3356_v0, %v3358_v5  ;;  %v7275_v5 = vld [vmem:[#allocation2 + $0xe8] sm:$0xff] }
 0x359   : > { %v3175_v8 = vsel %vm1944_vm4, %v3173_v63, %v3174_v19  ;;  %5751 = vmatprep.mubr.bf16.mxu0 %v7261_v62  ;;  %v7269_v39 = vadd.f32 %v3357_v46, %v7201_v28  ;;  %v7272_v59 = vadd.f32 %v3359_v16, %v7210_v20  ;;  %v5988_v28 = vld [vmem:[#allocation2 + $0xb0] sm:$0xff] }
 0x35a   : > { %v5653_v55 = vpop.f32.mrb[140].mxu1  ;;  %v3261_v50 = vadd.f32 %v3175_v8, %v3069_v15  ;;  %v7278_v20 = vld [vmem:[#allocation2 + $0xf0] sm:$0xff] }
 0x35b   : > { %v2655_v56 = vpop.f32.mrb[180].mxu0  ;;  %v2919_v58 = vpop.f32.mrb[141].mxu1  ;;  %v3363_v26 = vrot.slane %v5653_v55, 2 }
 0x35c   : > { %v2656_v12 = vpop.f32.mrb[181].mxu0  ;;  %v5654_v32 = vpop.f32.mrb[142].mxu1  ;;  %v3360_v11 = vrot.slane %v2919_v58, 2 }
 0x35d   : > { %v3176_v1 = vrot.slane %v2656_v12, 1  ;;  %v2658_v42 = vpop.f32.mrb[182].mxu0  ;;  %v2922_v54 = vpop.f32.mrb[143].mxu1 }
 0x35e   : > { %v3361_v57 = vrot.slane %v2922_v54, 2  ;;  %v2659_v2 = vpop.f32.mrb[183].mxu0 }
 0x35f   : > { %v3177_v29 = vsel %vm1944_vm4, %v3174_v19, %v3176_v1  ;;  %3849 = vmatmul.mubr.bf16.gmra.mrb[248].mxu1 %v5988_v28 }
 0x360   : > { %5752 = vmatmul.mubr.bf16.gmra.mrb[32].mxu0 %v7275_v5  ;;  %3858 = vmatprep.mubr.bf16.mxu1 %v6995_v6  ;;  %v3362_v15 = vsel %vm2137_vm11, %v3360_v11, %v3361_v57  ;;  %v3364_v40 = vsel %vm2137_vm11, %v3361_v57, %v3363_v26  ;;  %v3262_v0 = vadd.f32 %v3177_v29, %v3070_v37  ;;  %v7295_v11 = vld [vmem:[#allocation2 + $0x100] sm:$0xff] }
 0x361   : > { %5755 = vmatprep.mubr.bf16.mxu0 %v7278_v20  ;;  %v7285_v13 = vadd.f32 %v3362_v15, %v7237_v44  ;;  %v7287_v63 = vadd.f32 %v3364_v40, %v3260_v47  ;;  %v7292_v47 = vld [vmem:[#allocation2 + $0xf8] sm:$0xff] }
 0x362   : > { %v5657_v19 = vpop.f32.mrb[144].mxu1 }
 0x363   : > { %v2662_v46 = vpop.f32.mrb[184].mxu0  ;;  %v2934_v16 = vpop.f32.mrb[145].mxu1  ;;  %v3368_v32 = vrot.slane %v5657_v19, 2 }
 0x364   : > { %v3071_v8 = vadd.f32 %v2662_v46, %v7005_v9  ;;  %v2664_v55 = vpop.f32.mrb[185].mxu0  ;;  %v5658_v56 = vpop.f32.mrb[146].mxu1  ;;  %v3365_v1 = vrot.slane %v2934_v16, 2 }
 0x365   : > { %v2666_v58 = vpop.f32.mrb[186].mxu0  ;;  %v2937_v12 = vpop.f32.mrb[147].mxu1  ;;  %v3178_v26 = vrot.slane %v2664_v55, 1 }
 0x366   : > { %v3072_v37 = vadd.f32 %v2666_v58, %v7014_v27  ;;  %v3366_v42 = vrot.slane %v2937_v12, 2  ;;  %v2668_v54 = vpop.f32.mrb[187].mxu0 }
 0x367   : > { %v3179_v44 = vrot.slane %v2668_v54, 1  ;;  %3859 = vmatmul.mubr.bf16.gmra.mrb[252].mxu1 %v7221_v33 }
 0x368   : > { %5756 = vmatmul.mubr.bf16.gmra.mrb[36].mxu0 %v7292_v47  ;;  %3865 = vmatprep.mubr.bf16.mxu1 %v6995_v6  ;;  %v3367_v9 = vsel %vm2137_vm11, %v3365_v1, %v3366_v42  ;;  %v3369_v57 = vsel %vm2137_vm11, %v3366_v42, %v3368_v32 }
 0x369   : > { %v3180_v27 = vsel %vm1944_vm4, %v3178_v26, %v3179_v44  ;;  %5759 = vmatprep.mubr.bf16.mxu0 %v7295_v11  ;;  %v7302_v2 = vadd.f32 %v3367_v9, %v3261_v50  ;;  %v7304_v29 = vadd.f32 %v3369_v57, %v3262_v0  ;;  %v7308_v50 = vld [vmem:[#allocation2 + $0x108] sm:$0xff]  ;;  %v7311_v0 = vld [vmem:[#allocation2] sm:$0xff] }
 0x36a   : > { %v5661_v33 = vpop.f32.mrb[148].mxu1  ;;  %v3263_v28 = vadd.f32 %v3180_v27, %v3071_v8 }
 0x36b   : > { %v2672_v15 = vpop.f32.mrb[188].mxu0  ;;  %v2949_v40 = vpop.f32.mrb[149].mxu1  ;;  %v3373_v56 = vrot.slane %v5661_v33, 2 }
 0x36c   : > { %v2673_v19 = vpop.f32.mrb[189].mxu0  ;;  %v5662_v46 = vpop.f32.mrb[150].mxu1  ;;  %v3370_v58 = vrot.slane %v2949_v40, 2 }
 0x36d   : > { %v3181_v16 = vrot.slane %v2673_v19, 1  ;;  %v2675_v6 = vpop.f32.mrb[190].mxu0  ;;  %v2952_v55 = vpop.f32.mrb[151].mxu1 }
 0x36e   : > { %v3371_v12 = vrot.slane %v2952_v55, 2  ;;  %v2676_v32 = vpop.f32.mrb[191].mxu0 }
 0x36f   : > { %v3182_v1 = vsel %vm1944_vm4, %v3179_v44, %v3181_v16  ;;  %3866 = vmatmul.mubr.bf16.gmra.mrb[0].mxu1 %v7224_v61 }
 0x370   : > { %5760 = vmatmul.mubr.bf16.gmra.mrb[40].mxu0 %v7308_v50  ;;  %3875 = vmatprep.mubr.bf16.mxu1 %v7311_v0  ;;  %v3372_v8 = vsel %vm2137_vm11, %v3370_v58, %v3371_v12  ;;  %v3264_v42 = vadd.f32 %v3182_v1, %v3072_v37  ;;  %v3374_v54 = vsel %vm2137_vm11, %v3371_v12, %v3373_v56 }
 0x371   : > { %5763 = vmatprep.mubr.bf16.mxu0 %v7311_v0  ;;  %v7317_v26 = vadd.f32 %v3372_v8, %v3263_v28 }
 0x372   : > { %v5665_v44 = vpop.f32.mrb[152].mxu1  ;;  %v7319_v9 = vadd.f32 %v3374_v54, %v3264_v42 }
 0x373   : > { %v2679_v61 = vpop.f32.mrb[192].mxu0  ;;  %v2964_v57 = vpop.f32.mrb[153].mxu1  ;;  %v3378_v46 = vrot.slane %v5665_v44, 2 }
 0x374   : > { %v3073_v27 = vadd.f32 %v2679_v61, %v7036_v24  ;;  %v2681_v33 = vpop.f32.mrb[193].mxu0  ;;  %v5666_v15 = vpop.f32.mrb[154].mxu1  ;;  %v3375_v16 = vrot.slane %v2964_v57, 2 }
 0x375   : > { %v2683_v40 = vpop.f32.mrb[194].mxu0  ;;  %v2967_v19 = vpop.f32.mrb[155].mxu1  ;;  %v3183_v56 = vrot.slane %v2681_v33, 1 }
 0x376   : > { %v3074_v37 = vadd.f32 %v2683_v40, %v7044_v7  ;;  %v3376_v6 = vrot.slane %v2967_v19, 2  ;;  %v2685_v55 = vpop.f32.mrb[195].mxu0 }
 0x377   : > { %v3184_v28 = vrot.slane %v2685_v55, 1  ;;  %3876 = vmatmul.mubr.bf16.gmra.mrb[4].mxu1 %v7240_v10 }
 0x378   : > { %3882 = vmatprep.mubr.bf16.mxu1 %v7311_v0  ;;  %5764 = vmatmul.mubr.bf16.gmra.mrb[44].mxu0 %v7311_v0  ;;  %v3377_v24 = vsel %vm2137_vm11, %v3375_v16, %v3376_v6  ;;  %v3379_v58 = vsel %vm2137_vm11, %v3376_v6, %v3378_v46 }
 0x379   : > { %v3185_v12 = vsel %vm1944_vm4, %v3183_v56, %v3184_v28 }
 0x37a   : > { %v5669_v32 = vpop.f32.mrb[156].mxu1  ;;  %v3265_v1 = vadd.f32 %v3185_v12, %v3073_v27 }
 0x37b   : > { %v2689_v8 = vpop.f32.mrb[196].mxu0  ;;  %v2979_v7 = vpop.f32.mrb[157].mxu1  ;;  %v3383_v33 = vrot.slane %v5669_v32, 2 }
 0x37c   : > { %v2690_v42 = vpop.f32.mrb[197].mxu0  ;;  %v5670_v54 = vpop.f32.mrb[158].mxu1  ;;  %v7329_v44 = vadd.f32 %v3377_v24, %v3265_v1  ;;  %v3380_v15 = vrot.slane %v2979_v7, 2 }
 0x37d   : > { %v3186_v61 = vrot.slane %v2690_v42, 1  ;;  %v2692_v10 = vpop.f32.mrb[198].mxu0  ;;  %v2982_v57 = vpop.f32.mrb[159].mxu1 }
 0x37e   : > { %v3381_v40 = vrot.slane %v2982_v57, 2  ;;  %v2693_v19 = vpop.f32.mrb[199].mxu0 }
 0x37f   : > { %v3187_v16 = vsel %vm1944_vm4, %v3184_v28, %v3186_v61  ;;  %3883 = vmatmul.mubr.bf16.gmra.mrb[8].mxu1 %v7243_v45 }
 0x380   : > { %3892 = vmatprep.mubr.bf16.mxu1 %v7311_v0  ;;  %v3266_v27 = vadd.f32 %v3187_v16, %v3074_v37  ;;  %v3382_v46 = vsel %vm2137_vm11, %v3380_v15, %v3381_v40  ;;  %v3384_v6 = vsel %vm2137_vm11, %v3381_v40, %v3383_v33 }
 0x382   : > { %v5673_v55 = vpop.f32.mrb[160].mxu1  ;;  %v7336_v56 = vadd.f32 %v3379_v58, %v3266_v27 }
 0x383   : > { %v2696_v24 = vpop.f32.mrb[200].mxu0  ;;  %v2994_v12 = vpop.f32.mrb[161].mxu1  ;;  %v3388_v42 = vrot.slane %v5673_v55, 2 }
 0x384   : > { %v3075_v32 = vadd.f32 %v2696_v24, %v7062_v31  ;;  %v2698_v1 = vpop.f32.mrb[201].mxu0  ;;  %v5674_v8 = vpop.f32.mrb[162].mxu1  ;;  %v3385_v45 = vrot.slane %v2994_v12, 2 }
 0x385   : > { %v2700_v7 = vpop.f32.mrb[202].mxu0  ;;  %v2997_v28 = vpop.f32.mrb[163].mxu1  ;;  %v3188_v10 = vrot.slane %v2698_v1, 1 }
 0x386   : > { %v3076_v54 = vadd.f32 %v2700_v7, %v7072_v34  ;;  %v3386_v37 = vrot.slane %v2997_v28, 2  ;;  %v2702_v61 = vpop.f32.mrb[203].mxu0 }
 0x387   : > { %v3189_v57 = vrot.slane %v2702_v61, 1  ;;  %3893 = vmatmul.mubr.bf16.gmra.mrb[12].mxu1 %v7258_v48 }
 0x388   : > { %3899 = vmatprep.mubr.bf16.mxu1 %v7311_v0  ;;  %v3387_v58 = vsel %vm2137_vm11, %v3385_v45, %v3386_v37  ;;  %v7344_v31 = vsel %vm2137_vm11, %v3386_v37, %v3388_v42 }
 0x389   : > { %v3190_v33 = vsel %vm1944_vm4, %v3188_v10, %v3189_v57 }
 0x38a   : > { %v5677_v15 = vpop.f32.mrb[164].mxu1  ;;  %v3267_v40 = vadd.f32 %v3190_v33, %v3075_v32 }
 0x38b   : > { %v2706_v19 = vpop.f32.mrb[204].mxu0  ;;  %v3009_v16 = vpop.f32.mrb[165].mxu1  ;;  %v3393_v1 = vrot.slane %v5677_v15, 2 }
 0x38c   : > { %v2707_v34 = vpop.f32.mrb[205].mxu0  ;;  %v5678_v27 = vpop.f32.mrb[166].mxu1  ;;  %v7347_v55 = vadd.f32 %v3382_v46, %v3267_v40  ;;  %v3390_v8 = vrot.slane %v3009_v16, 2 }
 0x38d   : > { %v3191_v24 = vrot.slane %v2707_v34, 1  ;;  %v2709_v12 = vpop.f32.mrb[206].mxu0  ;;  %v3012_v48 = vpop.f32.mrb[167].mxu1 }
 0x38e   : > { %v3391_v7 = vrot.slane %v3012_v48, 2  ;;  %v2710_v28 = vpop.f32.mrb[207].mxu0 }
 0x38f   : > { %v3192_v42 = vsel %vm1944_vm4, %v3189_v57, %v3191_v24  ;;  %3900 = vmatmul.mubr.bf16.gmra.mrb[16].mxu1 %v7261_v62 }
 0x390   : > { %3909 = vmatprep.mubr.bf16.mxu1 %v7311_v0  ;;  %v3268_v32 = vadd.f32 %v3192_v42, %v3076_v54  ;;  %v7353_v45 = vsel %vm2137_vm11, %v3390_v8, %v3391_v7  ;;  %v7356_v46 = vsel %vm2137_vm11, %v3391_v7, %v3393_v1 }
 0x392   : > { %v5681_v37 = vpop.f32.mrb[168].mxu1  ;;  %v7358_v61 = vadd.f32 %v3384_v6, %v3268_v32 }
 0x393   : > { %v2713_v10 = vpop.f32.mrb[208].mxu0  ;;  %v3024_v33 = vpop.f32.mrb[169].mxu1  ;;  %v3398_v16 = vrot.slane %v5681_v37, 2 }
 0x394   : > { %v3077_v15 = vadd.f32 %v2713_v10, %v7086_v3  ;;  %v2715_v40 = vpop.f32.mrb[209].mxu0  ;;  %v5682_v57 = vpop.f32.mrb[170].mxu1  ;;  %v3395_v34 = vrot.slane %v3024_v33, 2 }
 0x395   : > { %v2717_v19 = vpop.f32.mrb[210].mxu0  ;;  %v3027_v62 = vpop.f32.mrb[171].mxu1  ;;  %v3193_v12 = vrot.slane %v2715_v40, 1 }
 0x396   : > { %v3078_v54 = vadd.f32 %v2717_v19, %v7099_v4  ;;  %v3396_v27 = vrot.slane %v3027_v62, 2  ;;  %v2719_v24 = vpop.f32.mrb[211].mxu0 }
 0x397   : > { %v3194_v48 = vrot.slane %v2719_v24, 1  ;;  %3910 = vmatmul.mubr.bf16.gmra.mrb[20].mxu1 %v7275_v5 }
 0x398   : > { %3916 = vmatprep.mubr.bf16.mxu1 %v7311_v0  ;;  %v7365_v6 = vsel %vm2137_vm11, %v3395_v34, %v3396_v27  ;;  %v7368_v3 = vsel %vm2137_vm11, %v3396_v27, %v3398_v16 }
 0x399   : > { %v3195_v1 = vsel %vm1944_vm4, %v3193_v12, %v3194_v48 }
 0x39a   : > { %v5685_v8 = vpop.f32.mrb[172].mxu1  ;;  %v3269_v7 = vadd.f32 %v3195_v1, %v3077_v15 }
 0x39b   : > { %v2723_v28 = vpop.f32.mrb[212].mxu0  ;;  %v3039_v4 = vpop.f32.mrb[173].mxu1  ;;  %v3403_v40 = vrot.slane %v5685_v8, 2 }
 0x39c   : > { %v2724_v42 = vpop.f32.mrb[213].mxu0  ;;  %v5686_v32 = vpop.f32.mrb[174].mxu1  ;;  %v7371_v37 = vadd.f32 %v3387_v58, %v3269_v7  ;;  %v3400_v57 = vrot.slane %v3039_v4, 2 }
 0x39d   : > { %v3196_v10 = vrot.slane %v2724_v42, 1  ;;  %v2726_v5 = vpop.f32.mrb[214].mxu0  ;;  %v3042_v33 = vpop.f32.mrb[175].mxu1 }
 0x39e   : > { %v3401_v19 = vrot.slane %v3042_v33, 2  ;;  %v2727_v62 = vpop.f32.mrb[215].mxu0 }
 0x39f   : > { %v3197_v16 = vsel %vm1944_vm4, %v3194_v48, %v3196_v10  ;;  %3917 = vmatmul.mubr.bf16.gmra.mrb[24].mxu1 %v7278_v20 }
 0x3a0   : > { %3926 = vmatprep.mubr.bf16.mxu1 %v7311_v0  ;;  %v3270_v15 = vadd.f32 %v3197_v16, %v3078_v54  ;;  %v7377_v34 = vsel %vm2137_vm11, %v3400_v57, %v3401_v19  ;;  %v7380_v58 = vsel %vm2137_vm11, %v3401_v19, %v3403_v40 }
 0x3a2   : > { %v3697_v27 = vpop.f32.mrb[176].mxu1  ;;  %v7383_v24 = vadd.f32 %v7344_v31, %v3270_v15 }
 0x3a3   : > { %v4241_v12 = vadd.f32 %v3697_v27, %v7169_v41  ;;  %v2730_v1 = vpop.f32.mrb[216].mxu0  ;;  %v3699_v8 = vpop.f32.mrb[177].mxu1 }
 0x3a4   : > { %v3079_v48 = vadd.f32 %v2730_v1, %v7113_v22  ;;  %v2732_v20 = vpop.f32.mrb[217].mxu0  ;;  %v3701_v7 = vpop.f32.mrb[178].mxu1  ;;  %v4321_v42 = vrot.slane %v3699_v8, 1 }
 0x3a5   : > { %v4242_v54 = vadd.f32 %v3701_v7, %v7172_v51  ;;  %v2734_v28 = vpop.f32.mrb[218].mxu0  ;;  %v3703_v4 = vpop.f32.mrb[179].mxu1  ;;  %v3198_v33 = vrot.slane %v2732_v20, 1 }
 0x3a6   : > { %v3080_v32 = vadd.f32 %v2734_v28, %v7121_v53  ;;  %v4322_v10 = vrot.slane %v3703_v4, 1  ;;  %v2736_v5 = vpop.f32.mrb[219].mxu0 }
 0x3a7   : > { %v3199_v31 = vrot.slane %v2736_v5, 1  ;;  %3927 = vmatmul.mubr.bf16.gmra.mrb[28].mxu1 %v7292_v47 }
 0x3a8   : > { %v4323_v41 = vsel %vm1944_vm4, %v4321_v42, %v4322_v10  ;;  %3933 = vmatprep.mubr.bf16.mxu1 %v7311_v0 }
 0x3a9   : > { %v7392_v22 = vadd.f32 %v4323_v41, %v4241_v12  ;;  %v3200_v40 = vsel %vm1944_vm4, %v3198_v33, %v3199_v31 }
 0x3aa   : > { %v3707_v51 = vpop.f32.mrb[180].mxu1  ;;  %v3271_v57 = vadd.f32 %v3200_v40, %v3079_v48 }
 0x3ab   : > { %v2740_v19 = vpop.f32.mrb[220].mxu0  ;;  %v3708_v62 = vpop.f32.mrb[181].mxu1 }
 0x3ac   : > { %v4324_v16 = vrot.slane %v3708_v62, 1  ;;  %v2741_v53 = vpop.f32.mrb[221].mxu0  ;;  %v3710_v15 = vpop.f32.mrb[182].mxu1  ;;  %v7396_v27 = vadd.f32 %v7353_v45, %v3271_v57 }
 0x3ad   : > { %v3201_v1 = vrot.slane %v2741_v53, 1  ;;  %v2743_v47 = vpop.f32.mrb[222].mxu0  ;;  %v3711_v8 = vpop.f32.mrb[183].mxu1 }
 0x3ae   : > { %v4325_v20 = vsel %vm1944_vm4, %v4322_v10, %v4324_v16  ;;  %v2744_v7 = vpop.f32.mrb[223].mxu0 }
 0x3af   : > { %v7399_v12 = vadd.f32 %v4325_v20, %v4242_v54  ;;  %v3202_v28 = vsel %vm1944_vm4, %v3199_v31, %v3201_v1  ;;  %3934 = vmatmul.mubr.bf16.gmra.mrb[32].mxu1 %v7295_v11 }
 0x3b0   : > { %3943 = vmatprep.mubr.bf16.mxu1 %v7311_v0  ;;  %v3272_v48 = vadd.f32 %v3202_v28, %v3080_v32 }
 0x3b2   : > { %v3714_v4 = vpop.f32.mrb[184].mxu1  ;;  %v7405_v42 = vadd.f32 %v7356_v46, %v3272_v48 }
 0x3b3   : > { %v4243_v45 = vadd.f32 %v3714_v4, %v7183_v14  ;;  %v2747_v5 = vpop.f32.mrb[224].mxu0  ;;  %v3716_v33 = vpop.f32.mrb[185].mxu1 }
 0x3b4   : > { %v3081_v10 = vadd.f32 %v2747_v5, %v7133_v36  ;;  %v2749_v41 = vpop.f32.mrb[225].mxu0  ;;  %v3718_v54 = vpop.f32.mrb[186].mxu1  ;;  %v4326_v11 = vrot.slane %v3716_v33, 1 }
 0x3b5   : > { %v4244_v40 = vadd.f32 %v3718_v54, %v7186_v30  ;;  %v2751_v31 = vpop.f32.mrb[226].mxu0  ;;  %v3720_v51 = vpop.f32.mrb[187].mxu1  ;;  %v3203_v62 = vrot.slane %v2749_v41, 1 }
 0x3b6   : > { %v3082_v57 = vadd.f32 %v2751_v31, %v7142_v23  ;;  %v4327_v32 = vrot.slane %v3720_v51, 1  ;;  %v2753_v19 = vpop.f32.mrb[227].mxu0 }
 0x3b7   : > { %v3204_v46 = vrot.slane %v2753_v19, 1  ;;  %3944 = vmatmul.mubr.bf16.gmra.mrb[36].mxu1 %v7308_v50 }
 0x3b8   : > { %v4328_v14 = vsel %vm1944_vm4, %v4326_v11, %v4327_v32  ;;  %3950 = vmatprep.mubr.bf16.mxu1 %v7311_v0 }
 0x3b9   : > { %v7414_v36 = vadd.f32 %v4328_v14, %v4243_v45  ;;  %v3205_v16 = vsel %vm1944_vm4, %v3203_v62, %v3204_v46 }
 0x3ba   : > { %v3724_v30 = vpop.f32.mrb[188].mxu1  ;;  %v3273_v53 = vadd.f32 %v3205_v16, %v3081_v10 }
 0x3bb   : > { %v2757_v15 = vpop.f32.mrb[228].mxu0  ;;  %v3725_v1 = vpop.f32.mrb[189].mxu1 }
 0x3bc   : > { %v4329_v47 = vrot.slane %v3725_v1, 1  ;;  %v2758_v23 = vpop.f32.mrb[229].mxu0  ;;  %v3727_v8 = vpop.f32.mrb[190].mxu1  ;;  %v7418_v20 = vadd.f32 %v7365_v6, %v3273_v53 }
 0x3bd   : > { %v3206_v7 = vrot.slane %v2758_v23, 1  ;;  %v2760_v50 = vpop.f32.mrb[230].mxu0  ;;  %v3728_v28 = vpop.f32.mrb[191].mxu1 }
 0x3be   : > { %v4330_v48 = vsel %vm1944_vm4, %v4327_v32, %v4329_v47  ;;  %v2761_v4 = vpop.f32.mrb[231].mxu0 }
 0x3bf   : > { %v7421_v45 = vadd.f32 %v4330_v48, %v4244_v40  ;;  %v3207_v5 = vsel %vm1944_vm4, %v3204_v46, %v3206_v7  ;;  %3951 = vmatmul.mubr.bf16.gmra.mrb[40].mxu1 %v7311_v0 }
 0x3c0   : > { %3960 = vmatprep.mubr.bf16.mxu1 %v7311_v0  ;;  %v3274_v33 = vadd.f32 %v3207_v5, %v3082_v57 }
 0x3c2   : > { %v3731_v10 = vpop.f32.mrb[192].mxu1  ;;  %v7427_v41 = vadd.f32 %v7368_v3, %v3274_v33 }
 0x3c3   : > { %v4245_v6 = vadd.f32 %v3731_v10, %v7196_v25  ;;  %v2764_v54 = vpop.f32.mrb[232].mxu0  ;;  %v3733_v31 = vpop.f32.mrb[193].mxu1 }
 0x3c4   : > { %v3083_v51 = vadd.f32 %v2764_v54, %v7152_v21  ;;  %v2766_v11 = vpop.f32.mrb[233].mxu0  ;;  %v3735_v40 = vpop.f32.mrb[194].mxu1  ;;  %v4331_v46 = vrot.slane %v3733_v31, 1 }
 0x3c5   : > { %v4246_v32 = vadd.f32 %v3735_v40, %v7199_v18  ;;  %v2768_v19 = vpop.f32.mrb[234].mxu0  ;;  %v3737_v62 = vpop.f32.mrb[195].mxu1  ;;  %v3208_v30 = vrot.slane %v2766_v11, 1 }
 0x3c6   : > { %v3084_v14 = vadd.f32 %v2768_v19, %v7160_v49  ;;  %v4332_v57 = vrot.slane %v3737_v62, 1  ;;  %v2770_v16 = vpop.f32.mrb[235].mxu0 }
 0x3c7   : > { %v3209_v3 = vrot.slane %v2770_v16, 1  ;;  %3961 = vmatmul.mubr.bf16.gmra.mrb[44].mxu1 %v7311_v0 }
 0x3c8   : > { %v4333_v25 = vsel %vm1944_vm4, %v4331_v46, %v4332_v57 }
 0x3c9   : > { %v7435_v53 = vadd.f32 %v4333_v25, %v4245_v6  ;;  %v3210_v21 = vsel %vm1944_vm4, %v3208_v30, %v3209_v3 }
 0x3ca   : > { %v3741_v15 = vpop.f32.mrb[196].mxu1  ;;  %v3275_v1 = vadd.f32 %v3210_v21, %v3083_v51 }
 0x3cb   : > { %v2774_v18 = vpop.f32.mrb[236].mxu0  ;;  %v3742_v47 = vpop.f32.mrb[197].mxu1 }
 0x3cc   : > { %v4334_v23 = vrot.slane %v3742_v47, 1  ;;  %v2775_v8 = vpop.f32.mrb[237].mxu0  ;;  %v3744_v7 = vpop.f32.mrb[198].mxu1  ;;  %v7439_v49 = vadd.f32 %v7377_v34, %v3275_v1 }
 0x3cd   : > { %v3211_v50 = vrot.slane %v2775_v8, 1  ;;  %v2777_v28 = vpop.f32.mrb[238].mxu0  ;;  %v3745_v48 = vpop.f32.mrb[199].mxu1 }
 0x3ce   : > { %v4335_v0 = vsel %vm1944_vm4, %v4332_v57, %v4334_v23  ;;  %v2778_v4 = vpop.f32.mrb[239].mxu0 }
 0x3cf   : > { %v7442_v5 = vadd.f32 %v4335_v0, %v4246_v32  ;;  %v3212_v33 = vsel %vm1944_vm4, %v3209_v3, %v3211_v50 }
 0x3d0   : > { %v3276_v10 = vadd.f32 %v3212_v33, %v3084_v14 }
 0x3d2   : > { %v3748_v6 = vpop.f32.mrb[200].mxu1  ;;  %v7446_v54 = vadd.f32 %v7380_v58, %v3276_v10 }
 0x3d3   : > { %v4247_v31 = vadd.f32 %v3748_v6, %v7214_v60  ;;  %v3750_v51 = vpop.f32.mrb[201].mxu1  ;;  %v5705_v34 = vpop.f32.mrb[240].mxu0 }
 0x3d4   : > { %v3752_v11 = vpop.f32.mrb[202].mxu1  ;;  %v4002_v40 = vpop.f32.mrb[241].mxu0  ;;  %v4336_v57 = vrot.slane %v3750_v51, 1  ;;  %v4516_v30 = vrot.slane %v5705_v34, 2 }
 0x3d5   : > { %v4248_v19 = vadd.f32 %v3752_v11, %v7217_v38  ;;  %v3754_v62 = vpop.f32.mrb[203].mxu1  ;;  %v5706_v46 = vpop.f32.mrb[242].mxu0  ;;  %v4513_v3 = vrot.slane %v4002_v40, 2  ;;  %v7458_v38 = vld [vmem:[%s7705_s4] ss:$0 sm:$0xff] }
 0x3d6   : > { %v4337_v32 = vrot.slane %v3754_v62, 1  ;;  %v4005_v16 = vpop.f32.mrb[243].mxu0 }
 0x3d7   : > { %v4514_v14 = vrot.slane %v4005_v16, 2 }
 0x3d8   : > { %v4338_v25 = vsel %vm1944_vm4, %v4336_v57, %v4337_v32 }
 0x3d9   : > { %v7451_v58 = vadd.f32 %v4338_v25, %v4247_v31  ;;  %v4515_v60 = vsel %vm2137_vm11, %v4513_v3, %v4514_v14  ;;  %v4517_v21 = vsel %vm2137_vm11, %v4514_v14, %v4516_v30 }
 0x3da   : > { %v4625_v15 = vadd.f32 %v4515_v60, %v7392_v22  ;;  %v4626_v1 = vadd.f32 %v4517_v21, %v7399_v12  ;;  %v3758_v18 = vpop.f32.mrb[204].mxu1 }
 0x3db   : > { %v3759_v47 = vpop.f32.mrb[205].mxu1  ;;  %v5709_v23 = vpop.f32.mrb[244].mxu0 }
 0x3dc   : > { %v4664_v8 = vadd.f32 %v7458_v38, %v4625_v15  ;;  %v4665_v7 = vadd.f32 %v7458_v38, %v4626_v1  ;;  %v4339_v50 = vrot.slane %v3759_v47, 1  ;;  %v3761_v28 = vpop.f32.mrb[206].mxu1  ;;  %v4017_v48 = vpop.f32.mrb[245].mxu0  ;;  %v4521_v12 = vrot.slane %v5709_v23, 2 }
 0x3dd   : > { %v3762_v0 = vpop.f32.mrb[207].mxu1  ;;  %v5710_v4 = vpop.f32.mrb[246].mxu0  ;;  %v4518_v6 = vrot.slane %v4017_v48, 2 }
 0x3de   : > { %vm4696_vm10 = vcmp.gt.f32.partialorder %v4664_v8, 0.0  ;;  %vm4697_vm12 = vcmp.gt.f32.partialorder %v4665_v7, 0.0  ;;  %v4728_v33 = vmul.f32 0.1, %v4664_v8  ;;  %v4729_v10 = vmul.f32 0.1, %v4665_v7 }
 0x3df   : > { %v4340_v22 = vsel %vm1944_vm4, %v4337_v32, %v4339_v50  ;;  %v4020_v31 = vpop.f32.mrb[247].mxu0 }
 0x3e0   : > { %v4760_v51 = vsel %vm4696_vm10, %v4664_v8, %v4728_v33  ;;  %v4761_v34 = vsel %vm4697_vm12, %v4665_v7, %v4729_v10  ;;  %v7465_v11 = vadd.f32 %v4340_v22, %v4248_v19  ;;  %v4519_v40 = vrot.slane %v4020_v31, 2 }
 0x3e1   : > { %v5243_v62 = vpack.c.bf16 %v4761_v34, %v4760_v51 }
 0x3e2   : > { %v4520_v46 = vsel %vm2137_vm11, %v4518_v6, %v4519_v40  ;;  %v4522_v57 = vsel %vm2137_vm11, %v4519_v40, %v4521_v12  ;;  %v3765_v16 = vpop.f32.mrb[208].mxu1 }
 0x3e3   : > { %5244 = vst [vmem:[%s7471_s28] sm:$0xff] %v5243_v62   ;;  %v4627_v32 = vadd.f32 %v4520_v46, %v7414_v36  ;;  %v4628_v30 = vadd.f32 %v4522_v57, %v7421_v45  ;;  %v4249_v3 = vadd.f32 %v3765_v16, %v7232_v43  ;;  %v3767_v19 = vpop.f32.mrb[209].mxu1  ;;  %v5713_v14 = vpop.f32.mrb[248].mxu0 }
 0x3e4   : > { %v3769_v25 = vpop.f32.mrb[210].mxu1  ;;  %v4032_v60 = vpop.f32.mrb[249].mxu0  ;;  %v4341_v23 = vrot.slane %v3767_v19, 1  ;;  %v4526_v43 = vrot.slane %v5713_v14, 2 }
 0x3e5   : > { %v4666_v21 = vadd.f32 %v7458_v38, %v4627_v32  ;;  %v4667_v15 = vadd.f32 %v7458_v38, %v4628_v30  ;;  %v4250_v1 = vadd.f32 %v3769_v25, %v7235_v52  ;;  %v3771_v18 = vpop.f32.mrb[211].mxu1  ;;  %v5714_v47 = vpop.f32.mrb[250].mxu0  ;;  %v4523_v50 = vrot.slane %v4032_v60, 2 }
 0x3e6   : > { %v4342_v8 = vrot.slane %v3771_v18, 1  ;;  %v4035_v7 = vpop.f32.mrb[251].mxu0 }
 0x3e7   : > { %vm4698_vm13 = vcmp.gt.f32.partialorder %v4666_v21, 0.0  ;;  %vm4699_vm14 = vcmp.gt.f32.partialorder %v4667_v15, 0.0  ;;  %v4730_v36 = vmul.f32 0.1, %v4666_v21  ;;  %v4731_v45 = vmul.f32 0.1, %v4667_v15 }
 0x3e8   : > { %v4343_v28 = vsel %vm1944_vm4, %v4341_v23, %v4342_v8  ;;  %v4524_v48 = vrot.slane %v4035_v7, 2 }
 0x3e9   : > { %v4762_v0 = vsel %vm4698_vm13, %v4666_v21, %v4730_v36  ;;  %v4763_v4 = vsel %vm4699_vm14, %v4667_v15, %v4731_v45  ;;  %v7481_v33 = vadd.f32 %v4343_v28, %v4249_v3 }
 0x3ea   : > { %v5248_v52 = vpack.c.bf16 %v4763_v4, %v4762_v0  ;;  %v4525_v10 = vsel %vm2137_vm11, %v4523_v50, %v4524_v48  ;;  %v4527_v22 = vsel %vm2137_vm11, %v4524_v48, %v4526_v43  ;;  %v3775_v12 = vpop.f32.mrb[212].mxu1 }
 0x3eb   : > { %v4629_v6 = vadd.f32 %v4525_v10, %v7435_v53  ;;  %v4630_v31 = vadd.f32 %v4527_v22, %v7442_v5  ;;  %v3776_v51 = vpop.f32.mrb[213].mxu1  ;;  %v5717_v34 = vpop.f32.mrb[252].mxu0 }
 0x3ec   : > { %5320 = vst [vmem:[%s7471_s28 + $0x8] sm:$0xff] %v5248_v52   ;;  %v4344_v40 = vrot.slane %v3776_v51, 1  ;;  %v3778_v62 = vpop.f32.mrb[214].mxu1  ;;  %v4047_v46 = vpop.f32.mrb[253].mxu0  ;;  %v4531_v25 = vrot.slane %v5717_v34, 2 }
 0x3ed   : > { %v4668_v57 = vadd.f32 %v7458_v38, %v4629_v6  ;;  %v4669_v16 = vadd.f32 %v7458_v38, %v4630_v31  ;;  %v3779_v32 = vpop.f32.mrb[215].mxu1  ;;  %v5718_v30 = vpop.f32.mrb[254].mxu0  ;;  %v4528_v60 = vrot.slane %v4047_v46, 2 }
 0x3ee   : > { %v4345_v3 = vsel %vm1944_vm4, %v4342_v8, %v4344_v40  ;;  %v4050_v19 = vpop.f32.mrb[255].mxu0 }
 0x3ef   : > { %vm4700_vm15 = vcmp.gt.f32.partialorder %v4668_v57, 0.0  ;;  %vm4701_vm0 = vcmp.gt.f32.partialorder %v4669_v16, 0.0  ;;  %v4732_v53 = vmul.f32 0.1, %v4668_v57  ;;  %v4733_v14 = vmul.f32 0.1, %v4669_v16 }
 0x3f0   : > { %v4442_v5 = vadd.f32 %v4345_v3, %v4250_v1  ;;  %v4529_v21 = vrot.slane %v4050_v19, 2 }
 0x3f1   : > { %v4764_v15 = vsel %vm4700_vm15, %v4668_v57, %v4732_v53  ;;  %v4765_v18 = vsel %vm4701_vm0, %v4669_v16, %v4733_v14 }
 0x3f2   : > { %v5253_v47 = vpack.c.bf16 %v4765_v18, %v4764_v15  ;;  %v4530_v23 = vsel %vm2137_vm11, %v4528_v60, %v4529_v21  ;;  %v4532_v7 = vsel %vm2137_vm11, %v4529_v21, %v4531_v25  ;;  %v3782_v36 = vpop.f32.mrb[216].mxu1 }
 0x3f3   : > { %v4631_v8 = vadd.f32 %v4530_v23, %v7451_v58  ;;  %v4632_v45 = vadd.f32 %v4532_v7, %v7465_v11  ;;  %v4251_v43 = vadd.f32 %v3782_v36, %v7250_v17  ;;  %v3784_v50 = vpop.f32.mrb[217].mxu1  ;;  %v5721_v28 = vpop.f32.mrb[0].mxu0 }
 0x3f4   : > { %5321 = vst [vmem:[%s7471_s28 + $0x10] sm:$0xff] %v5253_v47   ;;  %v3786_v1 = vpop.f32.mrb[218].mxu1  ;;  %v4062_v48 = vpop.f32.mrb[1].mxu0  ;;  %v4346_v12 = vrot.slane %v3784_v50, 1  ;;  %v4536_v31 = vrot.slane %v5721_v28, 2 }
 0x3f5   : > { %v4670_v0 = vadd.f32 %v7458_v38, %v4631_v8  ;;  %v4671_v4 = vadd.f32 %v7458_v38, %v4632_v45  ;;  %v4252_v52 = vadd.f32 %v3786_v1, %v7253_v35  ;;  %v3788_v10 = vpop.f32.mrb[219].mxu1  ;;  %v5722_v22 = vpop.f32.mrb[2].mxu0  ;;  %v4533_v51 = vrot.slane %v4062_v48, 2 }
 0x3f6   : > { %v4347_v6 = vrot.slane %v3788_v10, 1  ;;  %v4065_v58 = vpop.f32.mrb[3].mxu0 }
 0x3f7   : > { %vm4702_vm1 = vcmp.gt.f32.partialorder %v4670_v0, 0.0  ;;  %vm4703_vm2 = vcmp.gt.f32.partialorder %v4671_v4, 0.0  ;;  %v4734_v11 = vmul.f32 0.1, %v4670_v0  ;;  %v4735_v17 = vmul.f32 0.1, %v4671_v4 }
 0x3f8   : > { %v4348_v34 = vsel %vm1944_vm4, %v4346_v12, %v4347_v6  ;;  %v4534_v40 = vrot.slane %v4065_v58, 2 }
 0x3f9   : > { %v4766_v62 = vsel %vm4702_vm1, %v4670_v0, %v4734_v11  ;;  %v4767_v46 = vsel %vm4703_vm2, %v4671_v4, %v4735_v17  ;;  %v4443_v57 = vadd.f32 %v4348_v34, %v4251_v43 }
 0x3fa   : > { %v5258_v16 = vpack.c.bf16 %v4767_v46, %v4766_v62  ;;  %v4535_v35 = vsel %vm2137_vm11, %v4533_v51, %v4534_v40  ;;  %v4537_v32 = vsel %vm2137_vm11, %v4534_v40, %v4536_v31  ;;  %v3792_v30 = vpop.f32.mrb[220].mxu1 }
 0x3fb   : > { %v4633_v3 = vadd.f32 %v4535_v35, %v7481_v33  ;;  %v4634_v19 = vadd.f32 %v4537_v32, %v4442_v5  ;;  %v3793_v53 = vpop.f32.mrb[221].mxu1  ;;  %v5725_v14 = vpop.f32.mrb[4].mxu0 }
 0x3fc   : > { %5322 = vst [vmem:[%s7471_s28 + $0x18] sm:$0xff] %v5258_v16   ;;  %v4349_v25 = vrot.slane %v3793_v53, 1  ;;  %v3795_v60 = vpop.f32.mrb[222].mxu1  ;;  %v4077_v21 = vpop.f32.mrb[5].mxu0  ;;  %v4541_v45 = vrot.slane %v5725_v14, 2 }
 0x3fd   : > { %v4672_v15 = vadd.f32 %v7458_v38, %v4633_v3  ;;  %v4673_v18 = vadd.f32 %v7458_v38, %v4634_v19  ;;  %v3796_v47 = vpop.f32.mrb[223].mxu1  ;;  %v5726_v23 = vpop.f32.mrb[6].mxu0  ;;  %v4538_v43 = vrot.slane %v4077_v21, 2 }
 0x3fe   : > { %v4350_v7 = vsel %vm1944_vm4, %v4347_v6, %v4349_v25  ;;  %v4080_v36 = vpop.f32.mrb[7].mxu0 }
 0x3ff   : > { %vm4704_vm3 = vcmp.gt.f32.partialorder %v4672_v15, 0.0  ;;  %vm4705_vm5 = vcmp.gt.f32.partialorder %v4673_v18, 0.0  ;;  %v4736_v8 = vmul.f32 0.1, %v4672_v15  ;;  %v4737_v33 = vmul.f32 0.1, %v4673_v18 }
 0x400   : > { %v4444_v5 = vadd.f32 %v4350_v7, %v4252_v52  ;;  %v4539_v50 = vrot.slane %v4080_v36, 2 }
 0x401   : > { %v4768_v28 = vsel %vm4704_vm3, %v4672_v15, %v4736_v8  ;;  %v4769_v1 = vsel %vm4705_vm5, %v4673_v18, %v4737_v33 }
 0x402   : > { %v5263_v48 = vpack.c.bf16 %v4769_v1, %v4768_v28  ;;  %v4540_v0 = vsel %vm2137_vm11, %v4538_v43, %v4539_v50  ;;  %v4542_v4 = vsel %vm2137_vm11, %v4539_v50, %v4541_v45  ;;  %v3799_v10 = vpop.f32.mrb[224].mxu1 }
 0x403   : > { %v4635_v22 = vadd.f32 %v4540_v0, %v4443_v57  ;;  %v4636_v12 = vadd.f32 %v4542_v4, %v4444_v5  ;;  %v4253_v6 = vadd.f32 %v3799_v10, %v7269_v39  ;;  %v3801_v58 = vpop.f32.mrb[225].mxu1  ;;  %v5729_v11 = vpop.f32.mrb[8].mxu0 }
 0x404   : > { %5323 = vst [vmem:[%s7471_s28 + $0x20] sm:$0xff] %v5263_v48   ;;  %v3803_v17 = vpop.f32.mrb[226].mxu1  ;;  %v4092_v52 = vpop.f32.mrb[9].mxu0  ;;  %v4351_v46 = vrot.slane %v3801_v58, 1  ;;  %v4546_v32 = vrot.slane %v5729_v11, 2 }
 0x405   : > { %v4674_v31 = vadd.f32 %v7458_v38, %v4635_v22  ;;  %v4675_v51 = vadd.f32 %v7458_v38, %v4636_v12  ;;  %v4254_v34 = vadd.f32 %v3803_v17, %v7272_v59  ;;  %v3805_v40 = vpop.f32.mrb[227].mxu1  ;;  %v5730_v62 = vpop.f32.mrb[10].mxu0  ;;  %v4543_v30 = vrot.slane %v4092_v52, 2 }
 0x406   : > { %v4352_v16 = vrot.slane %v3805_v40, 1  ;;  %v4095_v35 = vpop.f32.mrb[11].mxu0 }
 0x407   : > { %vm4706_vm6 = vcmp.gt.f32.partialorder %v4674_v31, 0.0  ;;  %vm4707_vm7 = vcmp.gt.f32.partialorder %v4675_v51, 0.0  ;;  %v4738_v57 = vmul.f32 0.1, %v4674_v31  ;;  %v4739_v39 = vmul.f32 0.1, %v4675_v51 }
 0x408   : > { %v4353_v3 = vsel %vm1944_vm4, %v4351_v46, %v4352_v16  ;;  %v4544_v19 = vrot.slane %v4095_v35, 2 }
 0x409   : > { %v4770_v53 = vsel %vm4706_vm6, %v4674_v31, %v4738_v57  ;;  %v4771_v14 = vsel %vm4707_vm7, %v4675_v51, %v4739_v39  ;;  %v4445_v25 = vadd.f32 %v4353_v3, %v4253_v6 }
 0x40a   : > { %v5268_v60 = vpack.c.bf16 %v4771_v14, %v4770_v53  ;;  %v4545_v59 = vsel %vm2137_vm11, %v4543_v30, %v4544_v19  ;;  %v4547_v21 = vsel %vm2137_vm11, %v4544_v19, %v4546_v32  ;;  %v3809_v15 = vpop.f32.mrb[228].mxu1 }
 0x40b   : > { %v4637_v18 = vadd.f32 %v4545_v59, %v4445_v25  ;;  %v3810_v47 = vpop.f32.mrb[229].mxu1  ;;  %v5733_v23 = vpop.f32.mrb[12].mxu0 }
 0x40c   : > { %5324 = vst [vmem:[%s7471_s28 + $0x28] sm:$0xff] %v5268_v60   ;;  %v4354_v7 = vrot.slane %v3810_v47, 1  ;;  %v3812_v36 = vpop.f32.mrb[230].mxu1  ;;  %v4107_v8 = vpop.f32.mrb[13].mxu0  ;;  %v4551_v1 = vrot.slane %v5733_v23, 2 }
 0x40d   : > { %v3813_v33 = vpop.f32.mrb[231].mxu1  ;;  %v5734_v5 = vpop.f32.mrb[14].mxu0  ;;  %v4676_v45 = vadd.f32 %v7458_v38, %v4637_v18  ;;  %v4548_v48 = vrot.slane %v4107_v8, 2 }
 0x40e   : > { %v4355_v43 = vsel %vm1944_vm4, %v4352_v16, %v4354_v7  ;;  %v4110_v50 = vpop.f32.mrb[15].mxu0 }
 0x40f   : > { %v4446_v28 = vadd.f32 %v4355_v43, %v4254_v34  ;;  %v4549_v0 = vrot.slane %v4110_v50, 2  ;;  %v4740_v12 = vmul.f32 0.1, %v4676_v45  ;;  %vm4708_vm8 = vcmp.gt.f32.partialorder %v4676_v45, 0.0 }
 0x411   : > { %v4638_v4 = vadd.f32 %v4547_v21, %v4446_v28  ;;  %v4550_v10 = vsel %vm2137_vm11, %v4548_v48, %v4549_v0  ;;  %v4552_v22 = vsel %vm2137_vm11, %v4549_v0, %v4551_v1  ;;  %v4772_v16 = vsel %vm4708_vm8, %v4676_v45, %v4740_v12 }
 0x412   : > { %v3816_v6 = vpop.f32.mrb[232].mxu1 }
 0x413   : > { %v4677_v58 = vadd.f32 %v7458_v38, %v4638_v4  ;;  %v4255_v11 = vadd.f32 %v3816_v6, %v7285_v13  ;;  %v3818_v17 = vpop.f32.mrb[233].mxu1  ;;  %v5737_v52 = vpop.f32.mrb[16].mxu0 }
 0x414   : > { %v3820_v31 = vpop.f32.mrb[234].mxu1  ;;  %v4122_v51 = vpop.f32.mrb[17].mxu0  ;;  %v4356_v35 = vrot.slane %v3818_v17, 1  ;;  %v4556_v30 = vrot.slane %v5737_v52, 2 }
 0x415   : > { %vm4709_vm9 = vcmp.gt.f32.partialorder %v4677_v58, 0.0  ;;  %v4741_v34 = vmul.f32 0.1, %v4677_v58  ;;  %v4256_v40 = vadd.f32 %v3820_v31, %v7287_v63  ;;  %v3822_v62 = vpop.f32.mrb[235].mxu1  ;;  %v5738_v46 = vpop.f32.mrb[18].mxu0  ;;  %v4553_v3 = vrot.slane %v4122_v51, 2 }
 0x416   : > { %v4357_v57 = vrot.slane %v3822_v62, 1  ;;  %v4125_v39 = vpop.f32.mrb[19].mxu0 }
 0x417   : > { %v4773_v32 = vsel %vm4709_vm9, %v4677_v58, %v4741_v34  ;;  %v4554_v19 = vrot.slane %v4125_v39, 2 }
 0x418   : > { %v5273_v13 = vpack.c.bf16 %v4773_v32, %v4772_v16  ;;  %v4358_v53 = vsel %vm1944_vm4, %v4356_v35, %v4357_v57 }
 0x419   : > { %v4447_v14 = vadd.f32 %v4358_v53, %v4255_v11  ;;  %v4555_v25 = vsel %vm2137_vm11, %v4553_v3, %v4554_v19  ;;  %v7529_v60 = vsel %vm2137_vm11, %v4554_v19, %v4556_v30 }
 0x41a   : > { %5325 = vst [vmem:[%s7471_s28 + $0x30] sm:$0xff] %v5273_v13   ;;  %v3826_v63 = vpop.f32.mrb[236].mxu1 }
 0x41b   : > { %v4639_v59 = vadd.f32 %v4550_v10, %v4447_v14  ;;  %v3827_v21 = vpop.f32.mrb[237].mxu1  ;;  %v5741_v15 = vpop.f32.mrb[20].mxu0 }
 0x41c   : > { %v4359_v18 = vrot.slane %v3827_v21, 1  ;;  %v3829_v47 = vpop.f32.mrb[238].mxu1  ;;  %v4137_v23 = vpop.f32.mrb[21].mxu0  ;;  %v4561_v43 = vrot.slane %v5741_v15, 2 }
 0x41d   : > { %v3830_v7 = vpop.f32.mrb[239].mxu1  ;;  %v5742_v36 = vpop.f32.mrb[22].mxu0  ;;  %v4678_v8 = vadd.f32 %v7458_v38, %v4639_v59  ;;  %v4558_v50 = vrot.slane %v4137_v23, 2 }
 0x41e   : > { %v4360_v33 = vsel %vm1944_vm4, %v4357_v57, %v4359_v18  ;;  %v4140_v5 = vpop.f32.mrb[23].mxu0 }
 0x41f   : > { %v4448_v45 = vadd.f32 %v4360_v33, %v4256_v40  ;;  %v4559_v28 = vrot.slane %v4140_v5, 2  ;;  %v4742_v4 = vmul.f32 0.1, %v4678_v8  ;;  %vm4710_vm10 = vcmp.gt.f32.partialorder %v4678_v8, 0.0 }
 0x421   : > { %v4640_v1 = vadd.f32 %v4552_v22, %v4448_v45  ;;  %v7535_v48 = vsel %vm2137_vm11, %v4558_v50, %v4559_v28  ;;  %v7538_v0 = vsel %vm2137_vm11, %v4559_v28, %v4561_v43  ;;  %v4774_v40 = vsel %vm4710_vm10, %v4678_v8, %v4742_v4 }
 0x422   : > { %v3833_v10 = vpop.f32.mrb[240].mxu1 }
 0x423   : > { %v4679_v12 = vadd.f32 %v7458_v38, %v4640_v1  ;;  %v4257_v6 = vadd.f32 %v3833_v10, %v7302_v2  ;;  %v3835_v58 = vpop.f32.mrb[241].mxu1  ;;  %v5745_v11 = vpop.f32.mrb[24].mxu0 }
 0x424   : > { %v3837_v17 = vpop.f32.mrb[242].mxu1  ;;  %v4152_v52 = vpop.f32.mrb[25].mxu0  ;;  %v4361_v62 = vrot.slane %v3835_v58, 1  ;;  %v4566_v57 = vrot.slane %v5745_v11, 2 }
 0x425   : > { %vm4711_vm12 = vcmp.gt.f32.partialorder %v4679_v12, 0.0  ;;  %v4743_v31 = vmul.f32 0.1, %v4679_v12  ;;  %v4258_v22 = vadd.f32 %v3837_v17, %v7304_v29  ;;  %v3839_v51 = vpop.f32.mrb[243].mxu1  ;;  %v5746_v34 = vpop.f32.mrb[26].mxu0  ;;  %v4563_v39 = vrot.slane %v4152_v52, 2 }
 0x426   : > { %v4362_v46 = vrot.slane %v3839_v51, 1  ;;  %v4155_v16 = vpop.f32.mrb[27].mxu0 }
 0x427   : > { %v4775_v35 = vsel %vm4711_vm12, %v4679_v12, %v4743_v31  ;;  %v4564_v32 = vrot.slane %v4155_v16, 2 }
 0x428   : > { %v5278_v2 = vpack.c.bf16 %v4775_v35, %v4774_v40  ;;  %v4363_v30 = vsel %vm1944_vm4, %v4361_v62, %v4362_v46 }
 0x429   : > { %v4449_v3 = vadd.f32 %v4363_v30, %v4257_v6  ;;  %v7545_v19 = vsel %vm2137_vm11, %v4563_v39, %v4564_v32  ;;  %v7548_v29 = vsel %vm2137_vm11, %v4564_v32, %v4566_v57 }
 0x42a   : > { %5326 = vst [vmem:[%s7471_s28 + $0x38] sm:$0xff] %v5278_v2   ;;  %v3843_v13 = vpop.f32.mrb[244].mxu1 }
 0x42b   : > { %v4641_v53 = vadd.f32 %v4555_v25, %v4449_v3  ;;  %v3844_v14 = vpop.f32.mrb[245].mxu1  ;;  %v5749_v63 = vpop.f32.mrb[28].mxu0 }
 0x42c   : > { %v4364_v59 = vrot.slane %v3844_v14, 1  ;;  %v3846_v21 = vpop.f32.mrb[246].mxu1  ;;  %v4167_v15 = vpop.f32.mrb[29].mxu0  ;;  %v4571_v33 = vrot.slane %v5749_v63, 2 }
 0x42d   : > { %v3847_v18 = vpop.f32.mrb[247].mxu1  ;;  %v5750_v47 = vpop.f32.mrb[30].mxu0  ;;  %v4680_v23 = vadd.f32 %v7458_v38, %v4641_v53  ;;  %v4568_v5 = vrot.slane %v4167_v15, 2 }
 0x42e   : > { %v4365_v7 = vsel %vm1944_vm4, %v4362_v46, %v4364_v59  ;;  %v4170_v36 = vpop.f32.mrb[31].mxu0 }
 0x42f   : > { %v4450_v8 = vadd.f32 %v4365_v7, %v4258_v22  ;;  %v4569_v45 = vrot.slane %v4170_v36, 2  ;;  %v4744_v28 = vmul.f32 0.1, %v4680_v23  ;;  %vm4712_vm13 = vcmp.gt.f32.partialorder %v4680_v23, 0.0 }
 0x431   : > { %v4642_v43 = vadd.f32 %v7529_v60, %v4450_v8  ;;  %v7555_v25 = vsel %vm2137_vm11, %v4568_v5, %v4569_v45  ;;  %v7558_v50 = vsel %vm2137_vm11, %v4569_v45, %v4571_v33  ;;  %v4776_v22 = vsel %vm4712_vm13, %v4680_v23, %v4744_v28 }
 0x432   : > { %v3850_v1 = vpop.f32.mrb[248].mxu1 }
 0x433   : > { %v4681_v4 = vadd.f32 %v7458_v38, %v4642_v43  ;;  %v4259_v10 = vadd.f32 %v3850_v1, %v7317_v26  ;;  %v3852_v12 = vpop.f32.mrb[249].mxu1  ;;  %v5753_v6 = vpop.f32.mrb[32].mxu0 }
 0x434   : > { %v3854_v58 = vpop.f32.mrb[250].mxu1  ;;  %v4182_v11 = vpop.f32.mrb[33].mxu0  ;;  %v4366_v51 = vrot.slane %v3852_v12, 1  ;;  %v4576_v46 = vrot.slane %v5753_v6, 2 }
 0x435   : > { %vm4713_vm14 = vcmp.gt.f32.partialorder %v4681_v4, 0.0  ;;  %v4745_v17 = vmul.f32 0.1, %v4681_v4  ;;  %v4260_v60 = vadd.f32 %v3854_v58, %v7319_v9  ;;  %v3856_v52 = vpop.f32.mrb[251].mxu1  ;;  %v5754_v31 = vpop.f32.mrb[34].mxu0  ;;  %v4573_v16 = vrot.slane %v4182_v11, 2 }
 0x436   : > { %v4367_v34 = vrot.slane %v3856_v52, 1  ;;  %v4185_v40 = vpop.f32.mrb[35].mxu0 }
 0x437   : > { %v4777_v62 = vsel %vm4713_vm14, %v4681_v4, %v4745_v17  ;;  %v4574_v35 = vrot.slane %v4185_v40, 2 }
 0x438   : > { %v5283_v26 = vpack.c.bf16 %v4777_v62, %v4776_v22  ;;  %v4368_v57 = vsel %vm1944_vm4, %v4366_v51, %v4367_v34 }
 0x439   : > { %v4451_v39 = vadd.f32 %v4368_v57, %v4259_v10  ;;  %v7565_v32 = vsel %vm2137_vm11, %v4573_v16, %v4574_v35  ;;  %v7568_v9 = vsel %vm2137_vm11, %v4574_v35, %v4576_v46 }
 0x43a   : > { %5327 = vst [vmem:[%s7471_s28 + $0x40] sm:$0xff] %v5283_v26   ;;  %v3860_v2 = vpop.f32.mrb[252].mxu1 }
 0x43b   : > { %v4643_v30 = vadd.f32 %v7535_v48, %v4451_v39  ;;  %v3861_v3 = vpop.f32.mrb[253].mxu1  ;;  %v5757_v13 = vpop.f32.mrb[36].mxu0 }
 0x43c   : > { %v4369_v53 = vrot.slane %v3861_v3, 1  ;;  %v3863_v14 = vpop.f32.mrb[254].mxu1  ;;  %v4197_v63 = vpop.f32.mrb[37].mxu0  ;;  %v4581_v7 = vrot.slane %v5757_v13, 2 }
 0x43d   : > { %v3864_v59 = vpop.f32.mrb[255].mxu1  ;;  %v5758_v21 = vpop.f32.mrb[38].mxu0  ;;  %v4682_v15 = vadd.f32 %v7458_v38, %v4643_v30  ;;  %v4578_v36 = vrot.slane %v4197_v63, 2 }
 0x43e   : > { %v4370_v18 = vsel %vm1944_vm4, %v4367_v34, %v4369_v53  ;;  %v4200_v47 = vpop.f32.mrb[39].mxu0 }
 0x43f   : > { %v4452_v23 = vadd.f32 %v4370_v18, %v4260_v60  ;;  %v4579_v8 = vrot.slane %v4200_v47, 2  ;;  %v4746_v45 = vmul.f32 0.1, %v4682_v15  ;;  %vm4714_vm15 = vcmp.gt.f32.partialorder %v4682_v15, 0.0 }
 0x441   : > { %v4644_v33 = vadd.f32 %v7538_v0, %v4452_v23  ;;  %v7576_v48 = vsel %vm2137_vm11, %v4578_v36, %v4579_v8  ;;  %v7579_v5 = vsel %vm2137_vm11, %v4579_v8, %v4581_v7  ;;  %v4778_v60 = vsel %vm4714_vm15, %v4682_v15, %v4746_v45 }
 0x442   : > { %v3867_v43 = vpop.f32.mrb[0].mxu1 }
 0x443   : > { %v4683_v28 = vadd.f32 %v7458_v38, %v4644_v33  ;;  %v4261_v1 = vadd.f32 %v3867_v43, %v7329_v44  ;;  %v3869_v4 = vpop.f32.mrb[1].mxu1  ;;  %v5761_v10 = vpop.f32.mrb[40].mxu0 }
 0x444   : > { %v3871_v12 = vpop.f32.mrb[2].mxu1  ;;  %v4212_v6 = vpop.f32.mrb[41].mxu0  ;;  %v4371_v52 = vrot.slane %v3869_v4, 1  ;;  %v4586_v34 = vrot.slane %v5761_v10, 2 }
 0x445   : > { %vm4715_vm0 = vcmp.gt.f32.partialorder %v4683_v28, 0.0  ;;  %v4747_v58 = vmul.f32 0.1, %v4683_v28  ;;  %v4262_v0 = vadd.f32 %v3871_v12, %v7336_v56  ;;  %v3873_v11 = vpop.f32.mrb[3].mxu1  ;;  %v5762_v17 = vpop.f32.mrb[42].mxu0  ;;  %v4583_v40 = vrot.slane %v4212_v6, 2 }
 0x446   : > { %v4372_v31 = vrot.slane %v3873_v11, 1  ;;  %v4215_v22 = vpop.f32.mrb[43].mxu0 }
 0x447   : > { %v4779_v51 = vsel %vm4715_vm0, %v4683_v28, %v4747_v58  ;;  %v4584_v62 = vrot.slane %v4215_v22, 2 }
 0x448   : > { %v5288_v44 = vpack.c.bf16 %v4779_v51, %v4778_v60  ;;  %v4373_v46 = vsel %vm1944_vm4, %v4371_v52, %v4372_v31 }
 0x449   : > { %v4453_v16 = vadd.f32 %v4373_v46, %v4261_v1  ;;  %v7586_v35 = vsel %vm2137_vm11, %v4583_v40, %v4584_v62  ;;  %v7589_v56 = vsel %vm2137_vm11, %v4584_v62, %v4586_v34 }
 0x44a   : > { %5328 = vst [vmem:[%s7471_s28 + $0x48] sm:$0xff] %v5288_v44   ;;  %v3877_v26 = vpop.f32.mrb[4].mxu1 }
 0x44b   : > { %v4645_v57 = vadd.f32 %v7545_v19, %v4453_v16  ;;  %v3878_v39 = vpop.f32.mrb[5].mxu1  ;;  %v5765_v2 = vpop.f32.mrb[44].mxu0 }
 0x44c   : > { %v4374_v30 = vrot.slane %v3878_v39, 1  ;;  %v3880_v3 = vpop.f32.mrb[6].mxu1  ;;  %v4227_v13 = vpop.f32.mrb[45].mxu0  ;;  %v4591_v14 = vrot.slane %v5765_v2, 2 }
 0x44d   : > { %v3881_v53 = vpop.f32.mrb[7].mxu1  ;;  %v4588_v63 = vrot.slane %v4227_v13, 2  ;;  %v5766_v59 = vpop.f32.mrb[46].mxu0  ;;  %v4684_v18 = vadd.f32 %v7458_v38, %v4645_v57 }
 0x44e   : > { %v4375_v21 = vsel %vm1944_vm4, %v4372_v31, %v4374_v30  ;;  %v4230_v15 = vpop.f32.mrb[47].mxu0 }
 0x44f   : > { %v4454_v47 = vadd.f32 %v4375_v21, %v4262_v0  ;;  %v4589_v23 = vrot.slane %v4230_v15, 2  ;;  %v4748_v33 = vmul.f32 0.1, %v4684_v18  ;;  %vm4716_vm1 = vcmp.gt.f32.partialorder %v4684_v18, 0.0 }
 0x451   : > { %v4646_v7 = vadd.f32 %v7548_v29, %v4454_v47  ;;  %v7597_v19 = vsel %vm2137_vm11, %v4588_v63, %v4589_v23  ;;  %v7600_v36 = vsel %vm2137_vm11, %v4589_v23, %v4591_v14  ;;  %v4780_v58 = vsel %vm4716_vm1, %v4684_v18, %v4748_v33 }
 0x452   : > { %v3884_v8 = vpop.f32.mrb[8].mxu1 }
 0x453   : > { %v4685_v45 = vadd.f32 %v7458_v38, %v4646_v7  ;;  %v4263_v43 = vadd.f32 %v3884_v8, %v7347_v55  ;;  %v3886_v28 = vpop.f32.mrb[9].mxu1 }
 0x454   : > { %v3888_v1 = vpop.f32.mrb[10].mxu1  ;;  %v4376_v12 = vrot.slane %v3886_v28, 1 }
 0x455   : > { %vm4717_vm2 = vcmp.gt.f32.partialorder %v4685_v45, 0.0  ;;  %v4749_v4 = vmul.f32 0.1, %v4685_v45  ;;  %v4264_v29 = vadd.f32 %v3888_v1, %v7358_v61  ;;  %v3890_v10 = vpop.f32.mrb[11].mxu1 }
 0x456   : > { %v4377_v6 = vrot.slane %v3890_v10, 1 }
 0x457   : > { %v4781_v0 = vsel %vm4717_vm2, %v4685_v45, %v4749_v4 }
 0x458   : > { %v5293_v11 = vpack.c.bf16 %v4781_v0, %v4780_v58  ;;  %v4378_v17 = vsel %vm1944_vm4, %v4376_v12, %v4377_v6 }
 0x459   : > { %v4455_v60 = vadd.f32 %v4378_v17, %v4263_v43 }
 0x45a   : > { %5329 = vst [vmem:[%s7471_s28 + $0x50] sm:$0xff] %v5293_v11   ;;  %v3894_v52 = vpop.f32.mrb[12].mxu1 }
 0x45b   : > { %v4647_v55 = vadd.f32 %v7555_v25, %v4455_v60  ;;  %v3895_v31 = vpop.f32.mrb[13].mxu1 }
 0x45c   : > { %v4379_v22 = vrot.slane %v3895_v31, 1  ;;  %v3897_v51 = vpop.f32.mrb[14].mxu1 }
 0x45d   : > { %v3898_v34 = vpop.f32.mrb[15].mxu1  ;;  %v4686_v61 = vadd.f32 %v7458_v38, %v4647_v55 }
 0x45e   : > { %v4380_v40 = vsel %vm1944_vm4, %v4377_v6, %v4379_v22 }
 0x45f   : > { %v4456_v62 = vadd.f32 %v4380_v40, %v4264_v29  ;;  %v4750_v16 = vmul.f32 0.1, %v4686_v61  ;;  %vm4718_vm11 = vcmp.gt.f32.partialorder %v4686_v61, 0.0 }
 0x461   : > { %v4648_v44 = vadd.f32 %v7558_v50, %v4456_v62  ;;  %v4782_v14 = vsel %vm4718_vm11, %v4686_v61, %v4750_v16 }
 0x462   : > { %v3901_v46 = vpop.f32.mrb[16].mxu1 }
 0x463   : > { %v4687_v26 = vadd.f32 %v7458_v38, %v4648_v44  ;;  %v4265_v57 = vadd.f32 %v3901_v46, %v7371_v37  ;;  %v3903_v39 = vpop.f32.mrb[17].mxu1 }
 0x464   : > { %v3905_v25 = vpop.f32.mrb[18].mxu1  ;;  %v4381_v13 = vrot.slane %v3903_v39, 1 }
 0x465   : > { %vm4719_vm3 = vcmp.gt.f32.partialorder %v4687_v26, 0.0  ;;  %v4751_v2 = vmul.f32 0.1, %v4687_v26  ;;  %v4266_v30 = vadd.f32 %v3905_v25, %v7383_v24  ;;  %v3907_v3 = vpop.f32.mrb[19].mxu1 }
 0x466   : > { %v4382_v53 = vrot.slane %v3907_v3, 1 }
 0x467   : > { %v4783_v63 = vsel %vm4719_vm3, %v4687_v26, %v4751_v2 }
 0x468   : > { %v5298_v50 = vpack.c.bf16 %v4783_v63, %v4782_v14  ;;  %v4383_v59 = vsel %vm1944_vm4, %v4381_v13, %v4382_v53 }
 0x469   : > { %v4457_v21 = vadd.f32 %v4383_v59, %v4265_v57 }
 0x46a   : > { %5330 = vst [vmem:[%s7471_s28 + $0x58] sm:$0xff] %v5298_v50   ;;  %v3911_v15 = vpop.f32.mrb[20].mxu1 }
 0x46b   : > { %v4649_v37 = vadd.f32 %v7565_v32, %v4457_v21  ;;  %v3912_v18 = vpop.f32.mrb[21].mxu1 }
 0x46c   : > { %v4384_v47 = vrot.slane %v3912_v18, 1  ;;  %v3914_v23 = vpop.f32.mrb[22].mxu1 }
 0x46d   : > { %v3915_v7 = vpop.f32.mrb[23].mxu1  ;;  %v4688_v24 = vadd.f32 %v7458_v38, %v4649_v37 }
 0x46e   : > { %v4385_v8 = vsel %vm1944_vm4, %v4382_v53, %v4384_v47 }
 0x46f   : > { %v4458_v33 = vadd.f32 %v4385_v8, %v4266_v30  ;;  %v4752_v28 = vmul.f32 0.1, %v4688_v24  ;;  %vm4720_vm5 = vcmp.gt.f32.partialorder %v4688_v24, 0.0 }
 0x471   : > { %v4650_v45 = vadd.f32 %v7568_v9, %v4458_v33  ;;  %v4784_v11 = vsel %vm4720_vm5, %v4688_v24, %v4752_v28 }
 0x472   : > { %v3918_v43 = vpop.f32.mrb[24].mxu1 }
 0x473   : > { %v4689_v1 = vadd.f32 %v7458_v38, %v4650_v45  ;;  %v4267_v4 = vadd.f32 %v3918_v43, %v7396_v27  ;;  %v3920_v29 = vpop.f32.mrb[25].mxu1 }
 0x474   : > { %v3922_v32 = vpop.f32.mrb[26].mxu1  ;;  %v4386_v58 = vrot.slane %v3920_v29, 1 }
 0x475   : > { %vm4721_vm6 = vcmp.gt.f32.partialorder %v4689_v1, 0.0  ;;  %v4753_v10 = vmul.f32 0.1, %v4689_v1  ;;  %v4268_v12 = vadd.f32 %v3922_v32, %v7405_v42  ;;  %v3924_v6 = vpop.f32.mrb[27].mxu1 }
 0x476   : > { %v4387_v0 = vrot.slane %v3924_v6, 1 }
 0x477   : > { %v4785_v17 = vsel %vm4721_vm6, %v4689_v1, %v4753_v10 }
 0x478   : > { %v5303_v9 = vpack.c.bf16 %v4785_v17, %v4784_v11  ;;  %v4388_v60 = vsel %vm1944_vm4, %v4386_v58, %v4387_v0 }
 0x479   : > { %v4459_v52 = vadd.f32 %v4388_v60, %v4267_v4 }
 0x47a   : > { %5331 = vst [vmem:[%s7471_s28 + $0x60] sm:$0xff] %v5303_v9   ;;  %v3928_v55 = vpop.f32.mrb[28].mxu1  ;;  %v5990_v9 = vld [vmem:[%s7705_s4] ss:$0 sm:$0xff] }
 0x47b   : > { %v4651_v27 = vadd.f32 %v7576_v48, %v4459_v52  ;;  %v3929_v31 = vpop.f32.mrb[29].mxu1 }
 0x47c   : > { %v4389_v22 = vrot.slane %v3929_v31, 1  ;;  %v3931_v51 = vpop.f32.mrb[30].mxu1 }
 0x47d   : > { %v3932_v34 = vpop.f32.mrb[31].mxu1  ;;  %v4690_v42 = vadd.f32 %v7458_v38, %v4651_v27 }
 0x47e   : > { %v4390_v40 = vsel %vm1944_vm4, %v4387_v0, %v4389_v22 }
 0x47f   : > { %v4460_v61 = vadd.f32 %v4390_v40, %v4268_v12  ;;  %v4754_v46 = vmul.f32 0.1, %v4690_v42  ;;  %vm4722_vm7 = vcmp.gt.f32.partialorder %v4690_v42, 0.0 }
 0x481   : > { %v4652_v62 = vadd.f32 %v7579_v5, %v4460_v61  ;;  %v4786_v13 = vsel %vm4722_vm7, %v4690_v42, %v4754_v46 }
 0x482   : > { %v3935_v44 = vpop.f32.mrb[32].mxu1 }
 0x483   : > { %v4691_v16 = vadd.f32 %v7458_v38, %v4652_v62  ;;  %v4269_v26 = vadd.f32 %v3935_v44, %v7418_v20  ;;  %v3937_v57 = vpop.f32.mrb[33].mxu1 }
 0x484   : > { %v3939_v48 = vpop.f32.mrb[34].mxu1  ;;  %v4391_v30 = vrot.slane %v3937_v57, 1 }
 0x485   : > { %vm4723_vm8 = vcmp.gt.f32.partialorder %v4691_v16, 0.0  ;;  %v4755_v39 = vmul.f32 0.1, %v4691_v16  ;;  %v4270_v25 = vadd.f32 %v3939_v48, %v7427_v41  ;;  %v3941_v2 = vpop.f32.mrb[35].mxu1 }
 0x486   : > { %v4392_v3 = vrot.slane %v3941_v2, 1 }
 0x487   : > { %v4787_v53 = vsel %vm4723_vm8, %v4691_v16, %v4755_v39 }
 0x488   : > { %v5308_v5 = vpack.c.bf16 %v4787_v53, %v4786_v13  ;;  %v4393_v14 = vsel %vm1944_vm4, %v4391_v30, %v4392_v3 }
 0x489   : > { %v4461_v63 = vadd.f32 %v4393_v14, %v4269_v26 }
 0x48a   : > { %5332 = vst [vmem:[%s7471_s28 + $0x68] sm:$0xff] %v5308_v5   ;;  %v3945_v50 = vpop.f32.mrb[36].mxu1 }
 0x48b   : > { %v4653_v20 = vadd.f32 %v7586_v35, %v4461_v63  ;;  %v3946_v59 = vpop.f32.mrb[37].mxu1 }
 0x48c   : > { %v4394_v21 = vrot.slane %v3946_v59, 1  ;;  %v3948_v15 = vpop.f32.mrb[38].mxu1 }
 0x48d   : > { %v3949_v37 = vpop.f32.mrb[39].mxu1  ;;  %v4692_v41 = vadd.f32 %v7458_v38, %v4653_v20 }
 0x48e   : > { %v4395_v18 = vsel %vm1944_vm4, %v4392_v3, %v4394_v21 }
 0x48f   : > { %v4462_v47 = vadd.f32 %v4395_v18, %v4270_v25  ;;  %v4756_v8 = vmul.f32 0.1, %v4692_v41  ;;  %vm4724_vm9 = vcmp.gt.f32.partialorder %v4692_v41, 0.0 }
 0x491   : > { %v4654_v23 = vadd.f32 %v7589_v56, %v4462_v47  ;;  %v4788_v32 = vsel %vm4724_vm9, %v4692_v41, %v4756_v8 }
 0x492   : > { %v3952_v7 = vpop.f32.mrb[40].mxu1 }
 0x493   : > { %v4693_v24 = vadd.f32 %v7458_v38, %v4654_v23  ;;  %v4271_v33 = vadd.f32 %v3952_v7, %v7439_v49  ;;  %v3954_v45 = vpop.f32.mrb[41].mxu1 }
 0x494   : > { %v3956_v35 = vpop.f32.mrb[42].mxu1  ;;  %v4396_v4 = vrot.slane %v3954_v45, 1 }
 0x495   : > { %vm4725_vm10 = vcmp.gt.f32.partialorder %v4693_v24, 0.0  ;;  %v4757_v43 = vmul.f32 0.1, %v4693_v24  ;;  %v4272_v28 = vadd.f32 %v3956_v35, %v7446_v54  ;;  %v3958_v1 = vpop.f32.mrb[43].mxu1 }
 0x496   : > { %v4397_v29 = vrot.slane %v3958_v1, 1 }
 0x497   : > { %v4789_v10 = vsel %vm4725_vm10, %v4693_v24, %v4757_v43 }
 0x498   : > { %v5313_v56 = vpack.c.bf16 %v4789_v10, %v4788_v32  ;;  %v4398_v12 = vsel %vm1944_vm4, %v4396_v4, %v4397_v29 }
 0x499   : > { %v4463_v6 = vadd.f32 %v4398_v12, %v4271_v33 }
 0x49a   : > { %5333 = vst [vmem:[%s7471_s28 + $0x70] sm:$0xff] %v5313_v56   ;;  %v3962_v49 = vpop.f32.mrb[44].mxu1 }
 0x49b   : > { %v4655_v38 = vadd.f32 %v7597_v19, %v4463_v6  ;;  %v3963_v58 = vpop.f32.mrb[45].mxu1 }
 0x49c   : > { %v4399_v0 = vrot.slane %v3963_v58, 1  ;;  %v3965_v11 = vpop.f32.mrb[46].mxu1 }
 0x49d   : > { %v3966_v17 = vpop.f32.mrb[47].mxu1  ;;  %v4694_v60 = vadd.f32 %v5990_v9, %v4655_v38 }
 0x49e   : > { %v4400_v54 = vsel %vm1944_vm4, %v4397_v29, %v4399_v0 }
 0x49f   : > { %v4464_v52 = vadd.f32 %v4400_v54, %v4272_v28  ;;  %v4758_v27 = vmul.f32 0.1, %v4694_v60  ;;  %vm4726_vm12 = vcmp.gt.f32.partialorder %v4694_v60, 0.0 }
 0x4a1   : > { %v4656_v55 = vadd.f32 %v7600_v36, %v4464_v52  ;;  %v4790_v22 = vsel %vm4726_vm12, %v4694_v60, %v4758_v27 }
 0x4a3   : > { %v4695_v31 = vadd.f32 %v5990_v9, %v4656_v55 }
 0x4a5   : > { %vm4727_vm13 = vcmp.gt.f32.partialorder %v4695_v31, 0.0  ;;  %v4759_v19 = vmul.f32 0.1, %v4695_v31 }
 0x4a7   : > { %v4791_v51 = vsel %vm4727_vm13, %v4695_v31, %v4759_v19 }
 0x4a8   : > { %v5318_v36 = vpack.c.bf16 %v4791_v51, %v4790_v22 }
 0x4aa   : > { %5334 = vst [vmem:[%s7471_s28 + $0x78] sm:$0xff] %v5318_v36  }
 0x4ab   : > { %6090 = shalt.err (!%p6087_p1)
}
 0x4ac   : > { %s6091_s26 = scalar_lea.hbm %s7654_s9, 2048  ;;  %s6095_s28 = scalar_lea.hbm %s7706_s5, 4096 }
 0x4ad   : > { %p6092_p13 = scmp.ne.s32.totalorder %s7654_s9, %s6091_s26  ;;  %p6096_p4 = scmp.lt.u32.totalorder %s7654_s9, %s7706_s5 }
 0x4ae   : > { %p6097_p7 = scmp.lt.u32.totalorder %s6095_s28, %s6091_s26  ;;  %p6099_p11 = scmp.lt.u32.totalorder %s6091_s26, %s7654_s9 }
 0x4af   : > { %p6093_p6 = pnand %p6092_p13, %p7726_p0 }
 0x4b0   : > { %p6098_p8 = por %p6097_p7, %p6096_p4 }
 0x4b1   : > { %p6094_p10 = pneg %p6093_p6 }
 0x4b2   : > { %p6100_p2 = por %p6099_p11, %p6098_p8 }
 0x4b4   : > { %p6101_p3 = pnand %p6100_p2, %p6094_p10 }
 0x4b6   : > { %6104 = shalt.err (!%p6101_p3)
}
 0x4b7   : > { %s6158_s11 = smov 64   ;;  %s6159_s12 = smov 4  }
 0x4b8   : > { %5793 = dma.vmem_to_hbm [thread:$0]  (%p7726_p0), %s7656_s29, 2048, %s7654_s9, %s4953_s6, %s6158_s11, %s6158_s11, %s6159_s12  }
 0x4b9 PF: > { %s4981_s30 = sand.u32 1, %s6135_s18   ;;  %p7727_p5 = scmp.ne.s32.totalorder %s7711_s25, 0 }
 0x4ba   : > { %p7728_p9 = scmp.ge.s32.totalorder %s6147_s21, 2  ;;  %s4982_s10 = scalar_lea.sflag [#allocation5], %s4981_s30 }
 0x4bc   : > { %p5807_p12 = pnand %p7728_p9, %p7727_p5 }
 0x4be   : > { %6130 = dma.done.wait (!%p5807_p12), %s4982_s10, 2048  }
 0x4bf   : > { %6132 = vsyncadd (!%p5807_p12), %s4982_s10, 4294965248  ;;  %p19_p1 = scmp.ge.s32.totalorder %s6303_s23, 4   ;;  %s7729_s18 = smov %s6139_s19 }
 0x4c0   : > { %s7730_s19 = smov %s6143_s20  ;;  %s7731_s20 = smov %s6312_s7 }
 0x4c1   : > { %s7732_s21 = smov %s6303_s23  ;;  %21 = sbr.rel (!%p19_p1) target bundleno = 6 (0x6), region = 98 }
 0x4c8   :  { %4987 = vsyncpa [#allocation4], 1 }
 0x4c9   :  { %4989 = vsyncpa [#allocation4 + $0x1], 1 }
 0x4ca   :  { %4990 = vsyncpa [#allocation7], 1 }
 0x4cb   :  { %4991 = vsyncpa [#allocation5], 1 }
 0x4cc   :  { %4993 = vsyncpa [#allocation5 + $0x1], 1 }

</bundles_post_ra>
